<compile_context>
chip_gen: v7x
topology: tpu7x:2x2x1
jax: 0.10.0
libtpu: 0.0.40
codegen_flags: <defaults>
</compile_context>

<pallas_src>
import numpy as np
import jax
import jax.numpy as jnp
from jax.experimental import pallas as pl
from jax.experimental.pallas import tpu as pltpu


_VMEM_LIMIT = 48 * 1024 * 1024   # safe on v5e/v6e and under v7x's 64 MiB ceiling


def _cdiv(a, b):
    return -(-a // b)


# ----------------------------------------------------------------------------
# Kernel 1: fused (M, K) @ (K, Cout) + bias (folded BN) + ReLU.
# Used for the stride-2 3->64 first conv: Cin=3, so im2col in JAX is nearly
# free and the heavy work is one lane-dense matmul.
# ----------------------------------------------------------------------------
def _matmul_bias_relu_kernel(x_ref, w_ref, b_ref, o_ref):
    acc = jnp.dot(x_ref[...], w_ref[...], preferred_element_type=jnp.float32)
    acc = acc + b_ref[...]
    o_ref[...] = jnp.maximum(acc, 0.0).astype(o_ref.dtype)


def matmul_bias_relu_pallas(x, w, b, *, tm=1024):
    M, K = x.shape
    Cout = w.shape[1]
    tm = M if M <= tm else tm
    cost = pl.CostEstimate(
        flops=int(2 * M * K * Cout), transcendentals=0,
        bytes_accessed=int(2 * (M * K + K * Cout + M * Cout) + 4 * Cout))
    return pl.pallas_call(
        _matmul_bias_relu_kernel,
        out_shape=jax.ShapeDtypeStruct((M, Cout), x.dtype),
        grid=(_cdiv(M, tm),),
        in_specs=[pl.BlockSpec((tm, K), lambda i: (i, 0)),
                  pl.BlockSpec((K, Cout), lambda i: (0, 0)),
                  pl.BlockSpec((1, Cout), lambda i: (0, 0))],
        out_specs=pl.BlockSpec((tm, Cout), lambda i: (i, 0)),
        compiler_params=pltpu.CompilerParams(
            dimension_semantics=("parallel",),
            vmem_limit_bytes=_VMEM_LIMIT),
        cost_estimate=cost,
    )(x, w, b.reshape(1, Cout))


def conv3x3_s2_bn_relu_pallas(x, w_f, b_f):
    """3x3 / stride-2 / pad-1 conv (+ folded BN + ReLU), NHWC, Cin tiny."""
    N, H, W, Cin = x.shape
    Cout = w_f.shape[-1]
    Ho = (H - 1) // 2 + 1
    Wo = (W - 1) // 2 + 1
    xp = jnp.pad(x, ((0, 0), (1, 1), (1, 1), (0, 0)))
    taps = []
    for dy in range(3):
        for dx in range(3):
            taps.append(xp[:, dy:dy + 2 * Ho - 1:2, dx:dx + 2 * Wo - 1:2, :])
    patches = jnp.concatenate(taps, axis=-1).reshape(N * Ho * Wo, 9 * Cin)
    w_mat = w_f.reshape(9 * Cin, Cout)          # (dy, dx, cin) order matches taps
    out = matmul_bias_relu_pallas(patches, w_mat, b_f)
    return out.reshape(N, Ho, Wo, Cout)


# ----------------------------------------------------------------------------
# Kernel 2: row-tiled direct 3x3 stride-1 conv + bias (folded BN) + ReLU.
# One grid step = one (TR-row, full-width, full-Cout) output tile; the halo is
# provided by the wrapper-side halo gather.  K = 3*Cin matmuls (3 per tile).
# ----------------------------------------------------------------------------
def _conv3x3_s1_bn_relu_kernel(xg_ref, w_ref, b_ref, o_ref):
    # xg_ref: (TR+2, W+2, Cin) bf16 halo row tile of the zero-padded input
    # w_ref : (3, 3*Cin, Cout) bf16 BN-folded weights;  b_ref: (1, Cout) f32
    # o_ref : (TR, W, Cout)
    TR, W, Cout = o_ref.shape
    Cin = xg_ref.shape[-1]
    acc = None
    for dy in range(3):
        win = jnp.concatenate(
            [xg_ref[dy:dy + TR, dx:dx + W, :] for dx in range(3)], axis=-1)
        part = jnp.dot(win.reshape(TR * W, 3 * Cin), w_ref[dy],
                       preferred_element_type=jnp.float32)
        acc = part + b_ref[...] if acc is None else acc + part
    o_ref[...] = jnp.maximum(acc, 0.0).reshape(TR, W, Cout).astype(o_ref.dtype)


def conv3x3_s1_bn_relu_pallas(x, w_f, b_f, *, tr=32):
    """x: (N, H, W, Cin) NHWC bf16; w_f: (3, 3, Cin, Cout); b_f: (Cout,) f32.
    NOTE: W should be a multiple of 8 for layout-trivial in-kernel reshapes."""
    N, H, W, Cin = x.shape
    Cout = w_f.shape[-1]
    TR = min(tr, H)
    R = _cdiv(H, TR)
    # 1 halo row on top, 1 halo col each side, enough zero rows at the bottom
    # that every (TR+2)-row halo window of the last tile stays in bounds.
    xpad = jnp.pad(x, ((0, 0), (1, R * TR + 1 - H), (1, 1), (0, 0)))
    row_idx = TR * jnp.arange(R)[:, None] + jnp.arange(TR + 2)[None, :]
    xg = jnp.take(xpad, row_idx, axis=1).reshape(N * R, TR + 2, W + 2, Cin)
    w_r = w_f.reshape(3, 3 * Cin, Cout)
    cost = pl.CostEstimate(
        flops=int(2 * N * H * W * 9 * Cin * Cout), transcendentals=0,
        bytes_accessed=int(2 * (N * R * (TR + 2) * (W + 2) * Cin
                                + 9 * Cin * Cout + N * H * W * Cout) + 4 * Cout))
    return pl.pallas_call(
        _conv3x3_s1_bn_relu_kernel,
        out_shape=jax.ShapeDtypeStruct((N, H, W, Cout), x.dtype),
        grid=(N, R),
        in_specs=[pl.BlockSpec((None, TR + 2, W + 2, Cin),
                               lambda n, r: (n * R + r, 0, 0, 0)),
                  pl.BlockSpec((3, 3 * Cin, Cout), lambda n, r: (0, 0, 0)),
                  pl.BlockSpec((1, Cout), lambda n, r: (0, 0))],
        out_specs=pl.BlockSpec((None, TR, W, Cout), lambda n, r: (n, r, 0, 0)),
        compiler_params=pltpu.CompilerParams(
            dimension_semantics=("parallel", "parallel"),
            vmem_limit_bytes=_VMEM_LIMIT),
        cost_estimate=cost,
    )(xg, w_r, b_f.reshape(1, Cout))


# ----------------------------------------------------------------------------
# Kernel 3: row-tiled 3x3/s1 conv + bias + ReLU with the 3x3/s2/p1 max-pool
# fused into the epilogue (the full-resolution conv3 activation never hits
# HBM).  ReLU outputs are >= 0, so the pool's -inf padding can be replaced by
# 0 without changing the result.
# ----------------------------------------------------------------------------
def conv3x3_s1_bn_relu_maxpool_pallas(x, w_f, b_f, *, tp=16):
    N, H, W, Cin = x.shape
    Cout = w_f.shape[-1]
    Hp = (H - 1) // 2 + 1
    Wp = (W - 1) // 2 + 1
    TP = min(tp, Hp)          # pool rows per grid step
    P = _cdiv(Hp, TP)
    TRc = 2 * TP + 2          # conv rows computed per tile (even, pair-split)
    nrows = TRc + 2           # input rows per tile (1-row conv halo)
    # 2 zero rows on top (pool pad + conv halo), 1 zero col each side, and
    # enough zero rows at the bottom that every gather window is in bounds.
    xpad = jnp.pad(x, ((0, 0), (2, 2 * P * TP + 2 - H), (1, 1), (0, 0)))
    row_idx = (2 * TP) * jnp.arange(P)[:, None] + jnp.arange(nrows)[None, :]
    xg = jnp.take(xpad, row_idx, axis=1).reshape(N * P, nrows, W + 2, Cin)
    w_r = w_f.reshape(3, 3 * Cin, Cout)

    def kernel(xg_ref, w_ref, b_ref, o_ref, ysc_ref, rsc_ref):
        # xg_ref : (2*TP+4, W+2, Cin)  w_ref: (3, 3*Cin, Cout)  b_ref: (1, Cout)
        # o_ref  : (TP, Wp, Cout)
        # ysc_ref: (TP+1, 2, W+2, Cout) f32   rsc_ref: (TP, W+2, Cout) f32
        pt = pl.program_id(1)
        # ---- direct 3x3 conv + bias + ReLU for the TRc rows of this tile ----
        acc = None
        for dy in range(3):
            win = jnp.concatenate(
                [xg_ref[dy:dy + TRc, dx:dx + W, :] for dx in range(3)], axis=-1)
            part = jnp.dot(win.reshape(TRc * W, 3 * Cin), w_ref[dy],
                           preferred_element_type=jnp.float32)
            acc = part + b_ref[...] if acc is None else acc + part
        y = jnp.maximum(acc, 0.0).reshape(TRc, W, Cout)
        # Conv rows outside [0, H) are the pool's padding: force them to 0.
        row = 2 * pt * TP - 1 + jax.lax.broadcasted_iota(jnp.int32, (TRc, 1, 1), 0)
        y = jnp.where((row >= 0) & (row < H), y, 0.0)
        # ---- stash into the pair-split scratch with zero pool-pad columns ----
        ysc_ref[:, :, 1:W + 1, :] = y.reshape(TP + 1, 2, W, Cout)
        ysc_ref[:, :, 0:1, :] = jnp.zeros((TP + 1, 2, 1, Cout), jnp.float32)
        ysc_ref[:, :, W + 1:W + 2, :] = jnp.zeros((TP + 1, 2, 1, Cout), jnp.float32)
        # ---- 3x1 / stride-2 row max-pool: pool row p <- conv rows 2p,2p+1,2p+2
        rsc_ref[...] = jnp.maximum(
            jnp.maximum(ysc_ref[0:TP, 0, :, :], ysc_ref[0:TP, 1, :, :]),
            ysc_ref[1:TP + 1, 0, :, :])
        # ---- 1x3 / stride-2 column max-pool via sublane-strided reads ----
        m = rsc_ref[:, pl.ds(0, Wp, stride=2), :]
        m = jnp.maximum(m, rsc_ref[:, pl.ds(1, Wp, stride=2), :])
        m = jnp.maximum(m, rsc_ref[:, pl.ds(2, Wp, stride=2), :])
        o_ref[...] = m.astype(o_ref.dtype)

    cost = pl.CostEstimate(
        flops=int(2 * N * P * TRc * W * 9 * Cin * Cout), transcendentals=0,
        bytes_accessed=int(2 * (N * P * nrows * (W + 2) * Cin
                                + 9 * Cin * Cout + N * Hp * Wp * Cout) + 4 * Cout))
    return pl.pallas_call(
        kernel,
        out_shape=jax.ShapeDtypeStruct((N, Hp, Wp, Cout), x.dtype),
        grid=(N, P),
        in_specs=[pl.BlockSpec((None, nrows, W + 2, Cin),
                               lambda n, p: (n * P + p, 0, 0, 0)),
                  pl.BlockSpec((3, 3 * Cin, Cout), lambda n, p: (0, 0, 0)),
                  pl.BlockSpec((1, Cout), lambda n, p: (0, 0))],
        out_specs=pl.BlockSpec((None, TP, Wp, Cout), lambda n, p: (n, p, 0, 0)),
        scratch_shapes=[pltpu.VMEM((TP + 1, 2, W + 2, Cout), jnp.float32),
                        pltpu.VMEM((TP, W + 2, Cout), jnp.float32)],
        compiler_params=pltpu.CompilerParams(
            dimension_semantics=("parallel", "parallel"),
            vmem_limit_bytes=_VMEM_LIMIT),
        cost_estimate=cost,
    )(xg, w_r, b_f.reshape(1, Cout))


# ----------------------------------------------------------------------------
# BatchNorm folding, parameters and the full forward pass
# ----------------------------------------------------------------------------
def fold_bn(w, bn, eps=1e-5):
    """Fold inference-mode BatchNorm into the conv: scaled weights + bias."""
    gamma, beta, mean, var = bn
    scale = gamma / jnp.sqrt(var + eps)                 # (Cout,)
    return w * scale[None, None, None, :], beta - mean * scale


def init_params(key):
    ks = jax.random.split(key, 6)

    def bn_params(k, c):
        k1, k2, k3, k4 = jax.random.split(k, 4)
        gamma = 1.0 + 0.1 * jax.random.normal(k1, (c,), jnp.float32)
        beta = 0.1 * jax.random.normal(k2, (c,), jnp.float32)
        mean = 0.1 * jax.random.normal(k3, (c,), jnp.float32)
        var = 0.5 + jax.random.uniform(k4, (c,), jnp.float32)
        return (gamma, beta, mean, var)

    return {
        "w1": 0.1 * jax.random.normal(ks[0], (3, 3, 3, 64), jnp.float32),   # HWIO
        "bn1": bn_params(ks[1], 64),
        "w2": 0.1 * jax.random.normal(ks[2], (3, 3, 64, 64), jnp.float32),
        "bn2": bn_params(ks[3], 64),
        "w3": 0.1 * jax.random.normal(ks[4], (3, 3, 64, 128), jnp.float32),
        "bn3": bn_params(ks[5], 128),
    }


def feature_map_convolution_forward(x_nchw, params, *, compute_dtype=jnp.bfloat16):
    """FeatureMap_convolution.forward: NCHW in -> NCHW out (like PyTorch)."""
    x = jnp.transpose(x_nchw, (0, 2, 3, 1)).astype(compute_dtype)   # NCHW -> NHWC
    w1, b1 = fold_bn(params["w1"], params["bn1"])
    x = conv3x3_s2_bn_relu_pallas(x, w1.astype(compute_dtype), b1)  # 3   -> 64, /2
    w2, b2 = fold_bn(params["w2"], params["bn2"])
    x = conv3x3_s1_bn_relu_pallas(x, w2.astype(compute_dtype), b2)  # 64  -> 64
    w3, b3 = fold_bn(params["w3"], params["bn3"])
    x = conv3x3_s1_bn_relu_maxpool_pallas(x, w3.astype(compute_dtype), b3)
    return jnp.transpose(x, (0, 3, 1, 2)).astype(x_nchw.dtype)      # NHWC -> NCHW


# ----------------------------------------------------------------------------
if __name__ == "__main__":
    key = jax.random.PRNGKey(0)
    kx, kp = jax.random.split(key)

    N, Cin, H, W = 2, 3, 16, 16
    x = jax.random.normal(kx, (N, Cin, H, W), jnp.float32)
    params = init_params(kp)

    fwd = jax.jit(feature_map_convolution_forward)
    out = jax.block_until_ready(fwd(x, params))
    assert out.shape == (N, 128, 4, 4), out.shape

    # Pure-JAX reference: bf16 inputs / folded bf16 weights, fp32 accumulation
    # (matches the kernels' compute dtype), reduce_window max-pool.
    def ref_cbnr(y, w, bn, stride):
        gamma, beta, mean, var = bn
        scale = gamma / jnp.sqrt(var + 1e-5)
        wf = (w * scale[None, None, None, :]).astype(jnp.bfloat16)
        y = jax.lax.conv_general_dilated(
            y.astype(jnp.bfloat16), wf, window_strides=(stride, stride),
            padding=((1, 1), (1, 1)),
            dimension_numbers=("NHWC", "HWIO", "NHWC"),
            preferred_element_type=jnp.float32)
        return jnp.maximum(y + (beta - mean * scale), 0.0)

    r = jnp.transpose(x, (0, 2, 3, 1))
    r = ref_cbnr(r, params["w1"], params["bn1"], 2)
    r = ref_cbnr(r, params["w2"], params["bn2"], 1)
    r = ref_cbnr(r, params["w3"], params["bn3"], 1)
    r = jax.lax.reduce_window(r, -jnp.inf, jax.lax.max,
                              (1, 3, 3, 1), (1, 2, 2, 1),
                              ((0, 0), (1, 1), (1, 1), (0, 0)))
    r = jnp.transpose(r, (0, 3, 1, 2))
    np.testing.assert_allclose(np.asarray(out), np.asarray(r), rtol=5e-2, atol=5e-2)

    print("KERNEL_OK")
</pallas_src>

<mosaic_0001>
module attributes {stable_mosaic.version = 11 : i64} {
  func.func @_matmul_bias_relu_kernel(%arg0: i32, %arg1: memref<128x27xbf16, #tpu.memory_space<vmem>>, %arg2: memref<27x64xbf16, #tpu.memory_space<vmem>>, %arg3: memref<1x64xf32, #tpu.memory_space<vmem>>, %arg4: memref<128x64xbf16, #tpu.memory_space<vmem>>) attributes {dimension_semantics = [#tpu.dimension_semantics<parallel>], iteration_bounds = array<i64: 1>, scalar_prefetch = 0 : i64, scratch_operands = 0 : i64, tpu.core_type = #tpu.core_type<tc>, window_params = [{transform_indices = @transform_0, window_bounds = array<i64: 128, 27>}, {pipeline_mode = #tpu.pipeline_mode<synchronous>, transform_indices = @transform_1, window_bounds = array<i64: 27, 64>}, {pipeline_mode = #tpu.pipeline_mode<synchronous>, transform_indices = @transform_2, window_bounds = array<i64: 1, 64>}, {transform_indices = @transform_3, window_bounds = array<i64: 128, 64>}]} {
    %c0 = arith.constant 0 : index
    %c0_0 = arith.constant 0 : index
    %0 = vector.load %arg1[%c0, %c0_0] : memref<128x27xbf16, #tpu.memory_space<vmem>>, vector<128x27xbf16>
    %c0_1 = arith.constant 0 : index
    %c0_2 = arith.constant 0 : index
    %1 = vector.load %arg2[%c0_1, %c0_2] : memref<27x64xbf16, #tpu.memory_space<vmem>>, vector<27x64xbf16>
    %cst = arith.constant dense<0.000000e+00> : vector<128x64xf32>
    %2 = tpu.matmul %0, %1, %cst {dimension_numbers = #tpu.dot_dimension_numbers<[1], [0], [0], [1], [0, 0, 1, 1], [], []>} : vector<128x27xbf16>, vector<27x64xbf16>, vector<128x64xf32> -> vector<128x64xf32>
    %c0_3 = arith.constant 0 : index
    %c0_4 = arith.constant 0 : index
    %3 = vector.load %arg3[%c0_3, %c0_4] : memref<1x64xf32, #tpu.memory_space<vmem>>, vector<1x64xf32>
    %4 = vector.broadcast %3 : vector<1x64xf32> to vector<128x64xf32>
    %5 = arith.addf %2, %4 : vector<128x64xf32>
    %cst_5 = arith.constant 0.000000e+00 : f32
    %6 = vector.broadcast %cst_5 : f32 to vector<128x64xf32>
    %7 = arith.maximumf %5, %6 : vector<128x64xf32>
    %8 = arith.truncf %7 : vector<128x64xf32> to vector<128x64xbf16>
    %c0_6 = arith.constant 0 : index
    %c0_7 = arith.constant 0 : index
    %9 = vector.load %arg4[%c0_6, %c0_7] : memref<128x64xbf16, #tpu.memory_space<vmem>>, vector<128x64xbf16>
    tpu.vector_store %arg4[%c0_6, %c0_7], %8 {strides = array<i32>} : memref<128x64xbf16, #tpu.memory_space<vmem>>, vector<128x64xbf16>,
    return
  }
  func.func @transform_0(%arg0: i32) -> (i32, i32) {
    %c0_i32 = arith.constant 0 : i32
    %c0_i32_0 = arith.constant 0 : i32
    return %arg0, %c0_i32 : i32, i32
  }
  func.func @transform_1(%arg0: i32) -> (i32, i32) {
    %c0_i32 = arith.constant 0 : i32
    %c0_i32_0 = arith.constant 0 : i32
    %c0_i32_1 = arith.constant 0 : i32
    return %c0_i32, %c0_i32_0 : i32, i32
  }
  func.func @transform_2(%arg0: i32) -> (i32, i32) {
    %c0_i32 = arith.constant 0 : i32
    %c0_i32_0 = arith.constant 0 : i32
    %c0_i32_1 = arith.constant 0 : i32
    return %c0_i32, %c0_i32_0 : i32, i32
  }
  func.func @transform_3(%arg0: i32) -> (i32, i32) {
    %c0_i32 = arith.constant 0 : i32
    %c0_i32_0 = arith.constant 0 : i32
    return %arg0, %c0_i32 : i32, i32
  }
}

module attributes {stable_mosaic.version = 11 : i64} {
  func.func @_conv3x3_s1_bn_relu_kernel(%arg0: i32, %arg1: i32, %arg2: memref<1x10x10x64xbf16, #tpu.memory_space<vmem>>, %arg3: memref<3x192x64xbf16, #tpu.memory_space<vmem>>, %arg4: memref<1x64xf32, #tpu.memory_space<vmem>>, %arg5: memref<1x8x8x64xbf16, #tpu.memory_space<vmem>>) attributes {dimension_semantics = [#tpu.dimension_semantics<parallel>, #tpu.dimension_semantics<parallel>], iteration_bounds = array<i64: 2, 1>, scalar_prefetch = 0 : i64, scratch_operands = 0 : i64, tpu.core_type = #tpu.core_type<tc>, window_params = [{transform_indices = @transform_0, window_bounds = array<i64: 1, 10, 10, 64>}, {pipeline_mode = #tpu.pipeline_mode<synchronous>, transform_indices = @transform_1, window_bounds = array<i64: 3, 192, 64>}, {pipeline_mode = #tpu.pipeline_mode<synchronous>, transform_indices = @transform_2, window_bounds = array<i64: 1, 64>}, {transform_indices = @transform_3, window_bounds = array<i64: 1, 8, 8, 64>}]} {
    %c0 = arith.constant 0 : index
    %c0_0 = arith.constant 0 : index
    %c0_1 = arith.constant 0 : index
    %c0_2 = arith.constant 0 : index
    %0 = vector.load %arg2[%c0, %c0_0, %c0_1, %c0_2] : memref<1x10x10x64xbf16, #tpu.memory_space<vmem>>, vector<1x8x8x64xbf16>
    %1 = vector.shape_cast %0 : vector<1x8x8x64xbf16> to vector<8x8x64xbf16>
    %c0_3 = arith.constant 0 : index
    %c0_4 = arith.constant 0 : index
    %c1 = arith.constant 1 : index
    %c0_5 = arith.constant 0 : index
    %2 = vector.load %arg2[%c0_3, %c0_4, %c1, %c0_5] : memref<1x10x10x64xbf16, #tpu.memory_space<vmem>>, vector<1x8x8x64xbf16>
    %3 = vector.shape_cast %2 : vector<1x8x8x64xbf16> to vector<8x8x64xbf16>
    %c0_6 = arith.constant 0 : index
    %c0_7 = arith.constant 0 : index
    %c2 = arith.constant 2 : index
    %c0_8 = arith.constant 0 : index
    %4 = vector.load %arg2[%c0_6, %c0_7, %c2, %c0_8] : memref<1x10x10x64xbf16, #tpu.memory_space<vmem>>, vector<1x8x8x64xbf16>
    %5 = vector.shape_cast %4 : vector<1x8x8x64xbf16> to vector<8x8x64xbf16>
    %6 = tpu.concatenate %1, %3, %5 in 2 : vector<8x8x64xbf16>, vector<8x8x64xbf16>, vector<8x8x64xbf16> -> vector<8x8x192xbf16>
    %7 = vector.shape_cast %6 : vector<8x8x192xbf16> to vector<64x192xbf16>
    %c0_9 = arith.constant 0 : index
    %c0_10 = arith.constant 0 : index
    %c0_11 = arith.constant 0 : index
    %8 = vector.load %arg3[%c0_9, %c0_10, %c0_11] : memref<3x192x64xbf16, #tpu.memory_space<vmem>>, vector<1x192x64xbf16>
    %9 = vector.shape_cast %8 : vector<1x192x64xbf16> to vector<192x64xbf16>
    %cst = arith.constant dense<0.000000e+00> : vector<64x64xf32>
    %10 = tpu.matmul %7, %9, %cst {dimension_numbers = #tpu.dot_dimension_numbers<[1], [0], [0], [1], [0, 0, 1, 1], [], []>} : vector<64x192xbf16>, vector<192x64xbf16>, vector<64x64xf32> -> vector<64x64xf32>
    %c0_12 = arith.constant 0 : index
    %c0_13 = arith.constant 0 : index
    %11 = vector.load %arg4[%c0_12, %c0_13] : memref<1x64xf32, #tpu.memory_space<vmem>>, vector<1x64xf32>
    %12 = vector.broadcast %11 : vector<1x64xf32> to vector<64x64xf32>
    %13 = arith.addf %10, %12 : vector<64x64xf32>
    %c0_14 = arith.constant 0 : index
    %c1_15 = arith.constant 1 : index
    %c0_16 = arith.constant 0 : index
    %c0_17 = arith.constant 0 : index
    %14 = vector.load %arg2[%c0_14, %c1_15, %c0_16, %c0_17] : memref<1x10x10x64xbf16, #tpu.memory_space<vmem>>, vector<1x8x8x64xbf16>
    %15 = vector.shape_cast %14 : vector<1x8x8x64xbf16> to vector<8x8x64xbf16>
    %c0_18 = arith.constant 0 : index
    %c1_19 = arith.constant 1 : index
    %c1_20 = arith.constant 1 : index
    %c0_21 = arith.constant 0 : index
    %16 = vector.load %arg2[%c0_18, %c1_19, %c1_20, %c0_21] : memref<1x10x10x64xbf16, #tpu.memory_space<vmem>>, vector<1x8x8x64xbf16>
    %17 = vector.shape_cast %16 : vector<1x8x8x64xbf16> to vector<8x8x64xbf16>
    %c0_22 = arith.constant 0 : index
    %c1_23 = arith.constant 1 : index
    %c2_24 = arith.constant 2 : index
    %c0_25 = arith.constant 0 : index
    %18 = vector.load %arg2[%c0_22, %c1_23, %c2_24, %c0_25] : memref<1x10x10x64xbf16, #tpu.memory_space<vmem>>, vector<1x8x8x64xbf16>
    %19 = vector.shape_cast %18 : vector<1x8x8x64xbf16> to vector<8x8x64xbf16>
    %20 = tpu.concatenate %15, %17, %19 in 2 : vector<8x8x64xbf16>, vector<8x8x64xbf16>, vector<8x8x64xbf16> -> vector<8x8x192xbf16>
    %21 = vector.shape_cast %20 : vector<8x8x192xbf16> to vector<64x192xbf16>
    %c1_26 = arith.constant 1 : index
    %c0_27 = arith.constant 0 : index
    %c0_28 = arith.constant 0 : index
    %22 = vector.load %arg3[%c1_26, %c0_27, %c0_28] : memref<3x192x64xbf16, #tpu.memory_space<vmem>>, vector<1x192x64xbf16>
    %23 = vector.shape_cast %22 : vector<1x192x64xbf16> to vector<192x64xbf16>
    %cst_29 = arith.constant dense<0.000000e+00> : vector<64x64xf32>
    %24 = tpu.matmul %21, %23, %cst_29 {dimension_numbers = #tpu.dot_dimension_numbers<[1], [0], [0], [1], [0, 0, 1, 1], [], []>} : vector<64x192xbf16>, vector<192x64xbf16>, vector<64x64xf32> -> vector<64x64xf32>
    %25 = arith.addf %13, %24 : vector<64x64xf32>
    %c0_30 = arith.constant 0 : index
    %c2_31 = arith.constant 2 : index
    %c0_32 = arith.constant 0 : index
    %c0_33 = arith.constant 0 : index
    %26 = vector.load %arg2[%c0_30, %c2_31, %c0_32, %c0_33] : memref<1x10x10x64xbf16, #tpu.memory_space<vmem>>, vector<1x8x8x64xbf16>
    %27 = vector.shape_cast %26 : vector<1x8x8x64xbf16> to vector<8x8x64xbf16>
    %c0_34 = arith.constant 0 : index
    %c2_35 = arith.constant 2 : index
    %c1_36 = arith.constant 1 : index
    %c0_37 = arith.constant 0 : index
    %28 = vector.load %arg2[%c0_34, %c2_35, %c1_36, %c0_37] : memref<1x10x10x64xbf16, #tpu.memory_space<vmem>>, vector<1x8x8x64xbf16>
    %29 = vector.shape_cast %28 : vector<1x8x8x64xbf16> to vector<8x8x64xbf16>
    %c0_38 = arith.constant 0 : index
    %c2_39 = arith.constant 2 : index
    %c2_40 = arith.constant 2 : index
    %c0_41 = arith.constant 0 : index
    %30 = vector.load %arg2[%c0_38, %c2_39, %c2_40, %c0_41] : memref<1x10x10x64xbf16, #tpu.memory_space<vmem>>, vector<1x8x8x64xbf16>
    %31 = vector.shape_cast %30 : vector<1x8x8x64xbf16> to vector<8x8x64xbf16>
    %32 = tpu.concatenate %27, %29, %31 in 2 : vector<8x8x64xbf16>, vector<8x8x64xbf16>, vector<8x8x64xbf16> -> vector<8x8x192xbf16>
    %33 = vector.shape_cast %32 : vector<8x8x192xbf16> to vector<64x192xbf16>
    %c2_42 = arith.constant 2 : index
    %c0_43 = arith.constant 0 : index
    %c0_44 = arith.constant 0 : index
    %34 = vector.load %arg3[%c2_42, %c0_43, %c0_44] : memref<3x192x64xbf16, #tpu.memory_space<vmem>>, vector<1x192x64xbf16>
    %35 = vector.shape_cast %34 : vector<1x192x64xbf16> to vector<192x64xbf16>
    %cst_45 = arith.constant dense<0.000000e+00> : vector<64x64xf32>
    %36 = tpu.matmul %33, %35, %cst_45 {dimension_numbers = #tpu.dot_dimension_numbers<[1], [0], [0], [1], [0, 0, 1, 1], [], []>} : vector<64x192xbf16>, vector<192x64xbf16>, vector<64x64xf32> -> vector<64x64xf32>
    %37 = arith.addf %25, %36 : vector<64x64xf32>
    %cst_46 = arith.constant 0.000000e+00 : f32
    %38 = vector.broadcast %cst_46 : f32 to vector<64x64xf32>
    %39 = arith.maximumf %37, %38 : vector<64x64xf32>
    %40 = vector.shape_cast %39 : vector<64x64xf32> to vector<8x8x64xf32>
    %41 = arith.truncf %40 : vector<8x8x64xf32> to vector<8x8x64xbf16>
    %c0_47 = arith.constant 0 : index
    %c0_48 = arith.constant 0 : index
    %c0_49 = arith.constant 0 : index
    %c0_50 = arith.constant 0 : index
    %42 = vector.load %arg5[%c0_47, %c0_48, %c0_49, %c0_50] : memref<1x8x8x64xbf16, #tpu.memory_space<vmem>>, vector<1x8x8x64xbf16>
    %43 = vector.shape_cast %42 : vector<1x8x8x64xbf16> to vector<8x8x64xbf16>
    %44 = vector.shape_cast %41 : vector<8x8x64xbf16> to vector<1x8x8x64xbf16>
    tpu.vector_store %arg5[%c0_47, %c0_48, %c0_49, %c0_50], %44 {strides = array<i32>} : memref<1x8x8x64xbf16, #tpu.memory_space<vmem>>, vector<1x8x8x64xbf16>,
    return
  }
  func.func @transform_0(%arg0: i32, %arg1: i32) -> (i32, i32, i32, i32) {
    %c1_i32 = arith.constant 1 : i32
    %0 = arith.muli %arg0, %c1_i32 : i32
    %1 = arith.addi %0, %arg1 : i32
    %c0_i32 = arith.constant 0 : i32
    %c0_i32_0 = arith.constant 0 : i32
    %c0_i32_1 = arith.constant 0 : i32
    %c0_i32_2 = arith.constant 0 : i32
    return %1, %c0_i32, %c0_i32_0, %c0_i32_1 : i32, i32, i32, i32
  }
  func.func @transform_1(%arg0: i32, %arg1: i32) -> (i32, i32, i32) {
    %c0_i32 = arith.constant 0 : i32
    %c0_i32_0 = arith.constant 0 : i32
    %c0_i32_1 = arith.constant 0 : i32
    %c0_i32_2 = arith.constant 0 : i32
    return %c0_i32, %c0_i32_0, %c0_i32_1 : i32, i32, i32
  }
  func.func @transform_2(%arg0: i32, %arg1: i32) -> (i32, i32) {
    %c0_i32 = arith.constant 0 : i32
    %c0_i32_0 = arith.constant 0 : i32
    %c0_i32_1 = arith.constant 0 : i32
    return %c0_i32, %c0_i32_0 : i32, i32
  }
  func.func @transform_3(%arg0: i32, %arg1: i32) -> (i32, i32, i32, i32) {
    %c0_i32 = arith.constant 0 : i32
    %c0_i32_0 = arith.constant 0 : i32
    %c0_i32_1 = arith.constant 0 : i32
    return %arg0, %arg1, %c0_i32, %c0_i32_0 : i32, i32, i32, i32
  }
}

module attributes {stable_mosaic.version = 11 : i64} {
  func.func @kernel(%arg0: i32, %arg1: i32, %arg2: memref<1x12x10x64xbf16, #tpu.memory_space<vmem>>, %arg3: memref<3x192x128xbf16, #tpu.memory_space<vmem>>, %arg4: memref<1x128xf32, #tpu.memory_space<vmem>>, %arg5: memref<1x4x4x128xbf16, #tpu.memory_space<vmem>>, %arg6: memref<5x2x10x128xf32, #tpu.memory_space<vmem>>, %arg7: memref<4x10x128xf32, #tpu.memory_space<vmem>>) attributes {dimension_semantics = [#tpu.dimension_semantics<parallel>, #tpu.dimension_semantics<parallel>], iteration_bounds = array<i64: 2, 1>, scalar_prefetch = 0 : i64, scratch_operands = 2 : i64, tpu.core_type = #tpu.core_type<tc>, window_params = [{transform_indices = @transform_0, window_bounds = array<i64: 1, 12, 10, 64>}, {pipeline_mode = #tpu.pipeline_mode<synchronous>, transform_indices = @transform_1, window_bounds = array<i64: 3, 192, 128>}, {pipeline_mode = #tpu.pipeline_mode<synchronous>, transform_indices = @transform_2, window_bounds = array<i64: 1, 128>}, {transform_indices = @transform_3, window_bounds = array<i64: 1, 4, 4, 128>}]} {
    %c0 = arith.constant 0 : index
    %c0_0 = arith.constant 0 : index
    %c0_1 = arith.constant 0 : index
    %c0_2 = arith.constant 0 : index
    %0 = vector.load %arg2[%c0, %c0_0, %c0_1, %c0_2] : memref<1x12x10x64xbf16, #tpu.memory_space<vmem>>, vector<1x10x8x64xbf16>
    %1 = vector.shape_cast %0 : vector<1x10x8x64xbf16> to vector<10x8x64xbf16>
    %c0_3 = arith.constant 0 : index
    %c0_4 = arith.constant 0 : index
    %c1 = arith.constant 1 : index
    %c0_5 = arith.constant 0 : index
    %2 = vector.load %arg2[%c0_3, %c0_4, %c1, %c0_5] : memref<1x12x10x64xbf16, #tpu.memory_space<vmem>>, vector<1x10x8x64xbf16>
    %3 = vector.shape_cast %2 : vector<1x10x8x64xbf16> to vector<10x8x64xbf16>
    %c0_6 = arith.constant 0 : index
    %c0_7 = arith.constant 0 : index
    %c2 = arith.constant 2 : index
    %c0_8 = arith.constant 0 : index
    %4 = vector.load %arg2[%c0_6, %c0_7, %c2, %c0_8] : memref<1x12x10x64xbf16, #tpu.memory_space<vmem>>, vector<1x10x8x64xbf16>
    %5 = vector.shape_cast %4 : vector<1x10x8x64xbf16> to vector<10x8x64xbf16>
    %6 = tpu.concatenate %1, %3, %5 in 2 : vector<10x8x64xbf16>, vector<10x8x64xbf16>, vector<10x8x64xbf16> -> vector<10x8x192xbf16>
    %7 = vector.shape_cast %6 : vector<10x8x192xbf16> to vector<80x192xbf16>
    %c0_9 = arith.constant 0 : index
    %c0_10 = arith.constant 0 : index
    %c0_11 = arith.constant 0 : index
    %8 = vector.load %arg3[%c0_9, %c0_10, %c0_11] : memref<3x192x128xbf16, #tpu.memory_space<vmem>>, vector<1x192x128xbf16>
    %9 = vector.shape_cast %8 : vector<1x192x128xbf16> to vector<192x128xbf16>
    %cst = arith.constant dense<0.000000e+00> : vector<80x128xf32>
    %10 = tpu.matmul %7, %9, %cst {dimension_numbers = #tpu.dot_dimension_numbers<[1], [0], [0], [1], [0, 0, 1, 1], [], []>} : vector<80x192xbf16>, vector<192x128xbf16>, vector<80x128xf32> -> vector<80x128xf32>
    %c0_12 = arith.constant 0 : index
    %c0_13 = arith.constant 0 : index
    %11 = vector.load %arg4[%c0_12, %c0_13] : memref<1x128xf32, #tpu.memory_space<vmem>>, vector<1x128xf32>
    %12 = vector.broadcast %11 : vector<1x128xf32> to vector<80x128xf32>
    %13 = arith.addf %10, %12 : vector<80x128xf32>
    %c0_14 = arith.constant 0 : index
    %c1_15 = arith.constant 1 : index
    %c0_16 = arith.constant 0 : index
    %c0_17 = arith.constant 0 : index
    %14 = vector.load %arg2[%c0_14, %c1_15, %c0_16, %c0_17] : memref<1x12x10x64xbf16, #tpu.memory_space<vmem>>, vector<1x10x8x64xbf16>
    %15 = vector.shape_cast %14 : vector<1x10x8x64xbf16> to vector<10x8x64xbf16>
    %c0_18 = arith.constant 0 : index
    %c1_19 = arith.constant 1 : index
    %c1_20 = arith.constant 1 : index
    %c0_21 = arith.constant 0 : index
    %16 = vector.load %arg2[%c0_18, %c1_19, %c1_20, %c0_21] : memref<1x12x10x64xbf16, #tpu.memory_space<vmem>>, vector<1x10x8x64xbf16>
    %17 = vector.shape_cast %16 : vector<1x10x8x64xbf16> to vector<10x8x64xbf16>
    %c0_22 = arith.constant 0 : index
    %c1_23 = arith.constant 1 : index
    %c2_24 = arith.constant 2 : index
    %c0_25 = arith.constant 0 : index
    %18 = vector.load %arg2[%c0_22, %c1_23, %c2_24, %c0_25] : memref<1x12x10x64xbf16, #tpu.memory_space<vmem>>, vector<1x10x8x64xbf16>
    %19 = vector.shape_cast %18 : vector<1x10x8x64xbf16> to vector<10x8x64xbf16>
    %20 = tpu.concatenate %15, %17, %19 in 2 : vector<10x8x64xbf16>, vector<10x8x64xbf16>, vector<10x8x64xbf16> -> vector<10x8x192xbf16>
    %21 = vector.shape_cast %20 : vector<10x8x192xbf16> to vector<80x192xbf16>
    %c1_26 = arith.constant 1 : index
    %c0_27 = arith.constant 0 : index
    %c0_28 = arith.constant 0 : index
    %22 = vector.load %arg3[%c1_26, %c0_27, %c0_28] : memref<3x192x128xbf16, #tpu.memory_space<vmem>>, vector<1x192x128xbf16>
    %23 = vector.shape_cast %22 : vector<1x192x128xbf16> to vector<192x128xbf16>
    %cst_29 = arith.constant dense<0.000000e+00> : vector<80x128xf32>
    %24 = tpu.matmul %21, %23, %cst_29 {dimension_numbers = #tpu.dot_dimension_numbers<[1], [0], [0], [1], [0, 0, 1, 1], [], []>} : vector<80x192xbf16>, vector<192x128xbf16>, vector<80x128xf32> -> vector<80x128xf32>
    %25 = arith.addf %13, %24 : vector<80x128xf32>
    %c0_30 = arith.constant 0 : index
    %c2_31 = arith.constant 2 : index
    %c0_32 = arith.constant 0 : index
    %c0_33 = arith.constant 0 : index
    %26 = vector.load %arg2[%c0_30, %c2_31, %c0_32, %c0_33] : memref<1x12x10x64xbf16, #tpu.memory_space<vmem>>, vector<1x10x8x64xbf16>
    %27 = vector.shape_cast %26 : vector<1x10x8x64xbf16> to vector<10x8x64xbf16>
    %c0_34 = arith.constant 0 : index
    %c2_35 = arith.constant 2 : index
    %c1_36 = arith.constant 1 : index
    %c0_37 = arith.constant 0 : index
    %28 = vector.load %arg2[%c0_34, %c2_35, %c1_36, %c0_37] : memref<1x12x10x64xbf16, #tpu.memory_space<vmem>>, vector<1x10x8x64xbf16>
    %29 = vector.shape_cast %28 : vector<1x10x8x64xbf16> to vector<10x8x64xbf16>
    %c0_38 = arith.constant 0 : index
    %c2_39 = arith.constant 2 : index
    %c2_40 = arith.constant 2 : index
    %c0_41 = arith.constant 0 : index
    %30 = vector.load %arg2[%c0_38, %c2_39, %c2_40, %c0_41] : memref<1x12x10x64xbf16, #tpu.memory_space<vmem>>, vector<1x10x8x64xbf16>
    %31 = vector.shape_cast %30 : vector<1x10x8x64xbf16> to vector<10x8x64xbf16>
    %32 = tpu.concatenate %27, %29, %31 in 2 : vector<10x8x64xbf16>, vector<10x8x64xbf16>, vector<10x8x64xbf16> -> vector<10x8x192xbf16>
    %33 = vector.shape_cast %32 : vector<10x8x192xbf16> to vector<80x192xbf16>
    %c2_42 = arith.constant 2 : index
    %c0_43 = arith.constant 0 : index
    %c0_44 = arith.constant 0 : index
    %34 = vector.load %arg3[%c2_42, %c0_43, %c0_44] : memref<3x192x128xbf16, #tpu.memory_space<vmem>>, vector<1x192x128xbf16>
    %35 = vector.shape_cast %34 : vector<1x192x128xbf16> to vector<192x128xbf16>
    %cst_45 = arith.constant dense<0.000000e+00> : vector<80x128xf32>
    %36 = tpu.matmul %33, %35, %cst_45 {dimension_numbers = #tpu.dot_dimension_numbers<[1], [0], [0], [1], [0, 0, 1, 1], [], []>} : vector<80x192xbf16>, vector<192x128xbf16>, vector<80x128xf32> -> vector<80x128xf32>
    %37 = arith.addf %25, %36 : vector<80x128xf32>
    %cst_46 = arith.constant 0.000000e+00 : f32
    %38 = vector.broadcast %cst_46 : f32 to vector<80x128xf32>
    %39 = arith.maximumf %37, %38 : vector<80x128xf32>
    %40 = vector.shape_cast %39 : vector<80x128xf32> to vector<10x8x128xf32>
    %c2_i32 = arith.constant 2 : i32
    %41 = arith.muli %c2_i32, %arg1 : i32
    %c4_i32 = arith.constant 4 : i32
    %42 = arith.muli %41, %c4_i32 : i32
    %c1_i32 = arith.constant 1 : i32
    %43 = arith.subi %42, %c1_i32 : i32
    %44 = tpu.iota {dimensions = array<i32: 0>} : vector<10x1x1xi32>
    %45 = vector.broadcast %43 : i32 to vector<10x1x1xi32>
    %46 = arith.addi %45, %44 : vector<10x1x1xi32>
    %c0_i32 = arith.constant 0 : i32
    %47 = vector.broadcast %c0_i32 : i32 to vector<10x1x1xi32>
    %48 = arith.cmpi sge, %46, %47 : vector<10x1x1xi32>
    %c8_i32 = arith.constant 8 : i32
    %49 = vector.broadcast %c8_i32 : i32 to vector<10x1x1xi32>
    %50 = arith.cmpi slt, %46, %49 : vector<10x1x1xi32>
    %51 = arith.andi %48, %50 : vector<10x1x1xi1>
    %cst_47 = arith.constant 0.000000e+00 : f32
    %52 = vector.shape_cast %51 : vector<10x1x1xi1> to vector<10x1x1xi1>
    %53 = vector.broadcast %52 : vector<10x1x1xi1> to vector<10x8x128xi1>
    %54 = vector.broadcast %cst_47 : f32 to vector<10x8x128xf32>
    %55 = arith.select %53, %40, %54 : vector<10x8x128xi1>, vector<10x8x128xf32>
    %56 = vector.shape_cast %55 : vector<10x8x128xf32> to vector<5x2x8x128xf32>
    %c0_48 = arith.constant 0 : index
    %c0_49 = arith.constant 0 : index
    %c1_50 = arith.constant 1 : index
    %c0_51 = arith.constant 0 : index
    %57 = vector.load %arg6[%c0_48, %c0_49, %c1_50, %c0_51] : memref<5x2x10x128xf32, #tpu.memory_space<vmem>>, vector<5x2x8x128xf32>
    tpu.vector_store %arg6[%c0_48, %c0_49, %c1_50, %c0_51], %56 {strides = array<i32>} : memref<5x2x10x128xf32, #tpu.memory_space<vmem>>, vector<5x2x8x128xf32>,
    %cst_52 = arith.constant 0.000000e+00 : f32
    %58 = vector.broadcast %cst_52 : f32 to vector<5x2x1x128xf32>
    %c0_53 = arith.constant 0 : index
    %c0_54 = arith.constant 0 : index
    %c0_55 = arith.constant 0 : index
    %c0_56 = arith.constant 0 : index
    %59 = vector.load %arg6[%c0_53, %c0_54, %c0_55, %c0_56] : memref<5x2x10x128xf32, #tpu.memory_space<vmem>>, vector<5x2x1x128xf32>
    tpu.vector_store %arg6[%c0_53, %c0_54, %c0_55, %c0_56], %58 {strides = array<i32>} : memref<5x2x10x128xf32, #tpu.memory_space<vmem>>, vector<5x2x1x128xf32>,
    %cst_57 = arith.constant 0.000000e+00 : f32
    %60 = vector.broadcast %cst_57 : f32 to vector<5x2x1x128xf32>
    %c0_58 = arith.constant 0 : index
    %c0_59 = arith.constant 0 : index
    %c9 = arith.constant 9 : index
    %c0_60 = arith.constant 0 : index
    %61 = vector.load %arg6[%c0_58, %c0_59, %c9, %c0_60] : memref<5x2x10x128xf32, #tpu.memory_space<vmem>>, vector<5x2x1x128xf32>
    tpu.vector_store %arg6[%c0_58, %c0_59, %c9, %c0_60], %60 {strides = array<i32>} : memref<5x2x10x128xf32, #tpu.memory_space<vmem>>, vector<5x2x1x128xf32>,
    %c0_61 = arith.constant 0 : index
    %c0_62 = arith.constant 0 : index
    %c0_63 = arith.constant 0 : index
    %c0_64 = arith.constant 0 : index
    %62 = vector.load %arg6[%c0_61, %c0_62, %c0_63, %c0_64] : memref<5x2x10x128xf32, #tpu.memory_space<vmem>>, vector<4x1x10x128xf32>
    %63 = vector.shape_cast %62 : vector<4x1x10x128xf32> to vector<4x10x128xf32>
    %c0_65 = arith.constant 0 : index
    %c1_66 = arith.constant 1 : index
    %c0_67 = arith.constant 0 : index
    %c0_68 = arith.constant 0 : index
    %64 = vector.load %arg6[%c0_65, %c1_66, %c0_67, %c0_68] : memref<5x2x10x128xf32, #tpu.memory_space<vmem>>, vector<4x1x10x128xf32>
    %65 = vector.shape_cast %64 : vector<4x1x10x128xf32> to vector<4x10x128xf32>
    %66 = arith.maximumf %63, %65 : vector<4x10x128xf32>
    %c1_69 = arith.constant 1 : index
    %c0_70 = arith.constant 0 : index
    %c0_71 = arith.constant 0 : index
    %c0_72 = arith.constant 0 : index
    %67 = vector.load %arg6[%c1_69, %c0_70, %c0_71, %c0_72] : memref<5x2x10x128xf32, #tpu.memory_space<vmem>>, vector<4x1x10x128xf32>
    %68 = vector.shape_cast %67 : vector<4x1x10x128xf32> to vector<4x10x128xf32>
    %69 = arith.maximumf %66, %68 : vector<4x10x128xf32>
    %c0_73 = arith.constant 0 : index
    %c0_74 = arith.constant 0 : index
    %c0_75 = arith.constant 0 : index
    %70 = vector.load %arg7[%c0_73, %c0_74, %c0_75] : memref<4x10x128xf32, #tpu.memory_space<vmem>>, vector<4x10x128xf32>
    tpu.vector_store %arg7[%c0_73, %c0_74, %c0_75], %69 {strides = array<i32>} : memref<4x10x128xf32, #tpu.memory_space<vmem>>, vector<4x10x128xf32>,
    %c0_76 = arith.constant 0 : index
    %c0_77 = arith.constant 0 : index
    %c0_78 = arith.constant 0 : index
    %71 = tpu.strided_load %arg7[%c0_76, %c0_77, %c0_78] {strides = array<i32: 1, 2, 1>} : memref<4x10x128xf32, #tpu.memory_space<vmem>>, vector<4x4x128xf32>
    %c0_79 = arith.constant 0 : index
    %c1_80 = arith.constant 1 : index
    %c0_81 = arith.constant 0 : index
    %72 = tpu.strided_load %arg7[%c0_79, %c1_80, %c0_81] {strides = array<i32: 1, 2, 1>} : memref<4x10x128xf32, #tpu.memory_space<vmem>>, vector<4x4x128xf32>
    %73 = arith.maximumf %71, %72 : vector<4x4x128xf32>
    %c0_82 = arith.constant 0 : index
    %c2_83 = arith.constant 2 : index
    %c0_84 = arith.constant 0 : index
    %74 = tpu.strided_load %arg7[%c0_82, %c2_83, %c0_84] {strides = array<i32: 1, 2, 1>} : memref<4x10x128xf32, #tpu.memory_space<vmem>>, vector<4x4x128xf32>
    %75 = arith.maximumf %73, %74 : vector<4x4x128xf32>
    %76 = arith.truncf %75 : vector<4x4x128xf32> to vector<4x4x128xbf16>
    %c0_85 = arith.constant 0 : index
    %c0_86 = arith.constant 0 : index
    %c0_87 = arith.constant 0 : index
    %c0_88 = arith.constant 0 : index
    %77 = vector.load %arg5[%c0_85, %c0_86, %c0_87, %c0_88] : memref<1x4x4x128xbf16, #tpu.memory_space<vmem>>, vector<1x4x4x128xbf16>
    %78 = vector.shape_cast %77 : vector<1x4x4x128xbf16> to vector<4x4x128xbf16>
    %79 = vector.shape_cast %76 : vector<4x4x128xbf16> to vector<1x4x4x128xbf16>
    tpu.vector_store %arg5[%c0_85, %c0_86, %c0_87, %c0_88], %79 {strides = array<i32>} : memref<1x4x4x128xbf16, #tpu.memory_space<vmem>>, vector<1x4x4x128xbf16>,
    return
  }
  func.func @transform_0(%arg0: i32, %arg1: i32) -> (i32, i32, i32, i32) {
    %c1_i32 = arith.constant 1 : i32
    %0 = arith.muli %arg0, %c1_i32 : i32
    %1 = arith.addi %0, %arg1 : i32
    %c0_i32 = arith.constant 0 : i32
    %c0_i32_0 = arith.constant 0 : i32
    %c0_i32_1 = arith.constant 0 : i32
    %c0_i32_2 = arith.constant 0 : i32
    return %1, %c0_i32, %c0_i32_0, %c0_i32_1 : i32, i32, i32, i32
  }
  func.func @transform_1(%arg0: i32, %arg1: i32) -> (i32, i32, i32) {
    %c0_i32 = arith.constant 0 : i32
    %c0_i32_0 = arith.constant 0 : i32
    %c0_i32_1 = arith.constant 0 : i32
    %c0_i32_2 = arith.constant 0 : i32
    return %c0_i32, %c0_i32_0, %c0_i32_1 : i32, i32, i32
  }
  func.func @transform_2(%arg0: i32, %arg1: i32) -> (i32, i32) {
    %c0_i32 = arith.constant 0 : i32
    %c0_i32_0 = arith.constant 0 : i32
    %c0_i32_1 = arith.constant 0 : i32
    return %c0_i32, %c0_i32_0 : i32, i32
  }
  func.func @transform_3(%arg0: i32, %arg1: i32) -> (i32, i32, i32, i32) {
    %c0_i32 = arith.constant 0 : i32
    %c0_i32_0 = arith.constant 0 : i32
    %c0_i32_1 = arith.constant 0 : i32
    return %arg0, %arg1, %c0_i32, %c0_i32_0 : i32, i32, i32, i32
  }
}

</mosaic_0001>

<bundles_post_ra>
// kernel: feature_map_convolution_forward.3
= control target key start
LH: loop header
LB: loop body
LE: loop exit
PB: predicated region body
PF: predicated region fallthrough
CT: control target
= control target key end

     0   :  { %vm118_vm0 = vcmask 1044480   ;;  %vm119_vm1 = vcmask 1045504   ;;  %vm93_vm2 = vcmask 220160   ;;  %v419_v1 = vmov 65535   ;;  %s545_s1 = inlined_call_operand.vmem [shape: bf16[27,64], index: 1, kind: input, shape index: {}]   ;;  %s546_s0 = inlined_call_operand.vmem [shape: bf16[128,27], index: 0, kind: input, shape index: {}]   ;;  %s547_s2 = inlined_call_operand.vmem [shape: f32[1,64], index: 2, kind: input, shape index: {}]   ;;  %s548_s3 = inlined_call_operand.vmem [shape: bf16[128,64], index: 3, kind: output, shape index: {}]  }
   0x1   :  { %v409_v0 = vld [vmem:[%s545_s1] sm:$0xff]   ;;  %v120_v2 = vsel %vm118_vm0, 4294967295, %v419_v1  ;;  %v410_v3 = vld [vmem:[%s545_s1 + $0x8] sm:$0x3f]   ;;  %v415_v10 = vld [vmem:[%s546_s0 + $0x10] sm:$0xff]   ;;  %vm302_vm3 = vcmask 519168  }
   0x2   :  { %384 = vmatprep.subr.bf16.mxu0 %v409_v0  ;;  %404 = vmatprep.subr.bf16.mxu1 %v409_v0  ;;  %v121_v4 = vsel %vm119_vm1, %v120_v2, 0  ;;  %v411_v5 = vld [vmem:[%s546_s0] sm:$0xff]   ;;  %v413_v8 = vld [vmem:[%s546_s0 + $0x8] sm:$0xff]   ;;  %v416_v11 = vld [vmem:[%s546_s0 + $0x30] sm:$0xff]  }
   0x3   :  { %385 = vmatpush3.bf16.msra.mxu0 %v409_v0  ;;  %406 = vmatpush3.bf16.msra.mxu1 %v409_v0  ;;  %v123_v6 = vand.u32 %v410_v3, %v121_v4  ;;  %v412_v7 = vld [vmem:[%s546_s0 + $0x20] sm:$0xff]   ;;  %v414_v9 = vld [vmem:[%s546_s0 + $0x28] sm:$0xff]   ;;  %v417_v12 = vld [vmem:[%s546_s0 + $0x18] sm:$0xff]  }
   0x4   :  { %388 = vmatprep.mubr.msk.bf16.mxu0 %vm93_vm2, %v411_v5  ;;  %396 = vmatprep.mubr.msk.bf16.mxu1 %vm93_vm2, %v412_v7  ;;  %v418_v13 = vld [vmem:[%s546_s0 + $0x38] sm:$0xff]   ;;  %v323_v14 = vld [vmem:[%s547_s2] ss:$0 sm:$0xff] }
   0x5   :  { %386 = vmatprep.subr.bf16.mxu0 %v123_v6  ;;  %405 = vmatprep.subr.bf16.mxu1 %v123_v6 }
   0x7   :  { %387 = vmatpush3.bf16.msra.mxu0 %v123_v6  ;;  %407 = vmatpush3.bf16.msra.mxu1 %v123_v6 }
   0xa   :  { %389 = vmatmul.mubr.msk.bf16.vlgmr.msra.gmra.mrb[0].mxu0 %vm93_vm2, %v413_v8  ;;  %397 = vmatmul.mubr.msk.bf16.vlgmr.msra.gmra.mrb[0].mxu1 %vm93_vm2, %v414_v9 }
   0xb   :  { %392 = vmatprep.mubr.msk.bf16.mxu0 %vm93_vm2, %v415_v10  ;;  %400 = vmatprep.mubr.msk.bf16.mxu1 %vm93_vm2, %v416_v11 }
  0x12   :  { %393 = vmatmul.mubr.msk.bf16.gmra.mrb[4].mxu0 %vm93_vm2, %v417_v12  ;;  %401 = vmatmul.mubr.msk.bf16.gmra.mrb[4].mxu1 %vm93_vm2, %v418_v13 }
  0xdd   :  { %v390_v15 = vpop.f32.mrb[0].mxu0  ;;  %v398_v16 = vpop.f32.mrb[0].mxu1 }
  0xde   :  { %v168_v17 = vadd.f32 %v390_v15, %v323_v14  ;;  %v200_v18 = vadd.f32 %v398_v16, %v323_v14  ;;  %v159_v19 = vpop.f32.mrb[1].mxu0  ;;  %v191_v20 = vpop.f32.mrb[1].mxu1 }
  0xdf   :  { %v160_v21 = vadd.f32 %v323_v14, %v159_v19  ;;  %v192_v22 = vadd.f32 %v323_v14, %v191_v20  ;;  %v391_v23 = vpop.f32.mrb[2].mxu0  ;;  %v399_v24 = vpop.f32.mrb[2].mxu1 }
  0xe0   :  { %v224_v25 = vmax.f32 %v168_v17, 0.0  ;;  %v232_v26 = vmax.f32 %v200_v18, 0.0  ;;  %v171_v27 = vadd.f32 %v391_v23, %v323_v14  ;;  %v203_v28 = vadd.f32 %v399_v24, %v323_v14  ;;  %v162_v29 = vpop.f32.mrb[3].mxu0  ;;  %v194_v30 = vpop.f32.mrb[3].mxu1 }
  0xe1   :  { %v222_v31 = vmax.f32 %v160_v21, 0.0  ;;  %v230_v32 = vmax.f32 %v192_v22, 0.0  ;;  %v163_v33 = vadd.f32 %v323_v14, %v162_v29  ;;  %v195_v34 = vadd.f32 %v323_v14, %v194_v30 }
  0xe2   :  { %v360_v35 = vpack.c.bf16 %v224_v25, %v224_v25  ;;  %v368_v36 = vpack.c.bf16 %v232_v26, %v232_v26  ;;  %v225_v37 = vmax.f32 %v171_v27, 0.0  ;;  %v233_v38 = vmax.f32 %v203_v28, 0.0 }
  0xe3   :  { %v358_v39 = vpack.c.bf16 %v222_v31, %v222_v31  ;;  %v366_v40 = vpack.c.bf16 %v230_v32, %v230_v32  ;;  %v223_v41 = vmax.f32 %v163_v33, 0.0  ;;  %v231_v42 = vmax.f32 %v195_v34, 0.0 }
  0xe4   :  { %305 = vst.msk [vmem:[%s548_s3 + $0x8] sm:$0xf] %vm302_vm3, %v360_v35  ;;  %313 = vst.msk [vmem:[%s548_s3 + $0x28] sm:$0xf] %vm302_vm3, %v368_v36  ;;  %v361_v43 = vpack.c.bf16 %v225_v37, %v225_v37  ;;  %v369_v44 = vpack.c.bf16 %v233_v38, %v233_v38 }
  0xe5   :  { %303 = vst.msk [vmem:[%s548_s3] sm:$0xf] %vm302_vm3, %v358_v39  ;;  %311 = vst.msk [vmem:[%s548_s3 + $0x20] sm:$0xf] %vm302_vm3, %v366_v40  ;;  %v359_v45 = vpack.c.bf16 %v223_v41, %v223_v41  ;;  %v367_v46 = vpack.c.bf16 %v231_v42, %v231_v42  ;;  %v394_v47 = vpop.f32.mrb[4].mxu0  ;;  %v402_v48 = vpop.f32.mrb[4].mxu1 }
  0xe6   :  { %306 = vst.msk [vmem:[%s548_s3 + $0xc] sm:$0xf] %vm302_vm3, %v361_v43  ;;  %314 = vst.msk [vmem:[%s548_s3 + $0x2c] sm:$0xf] %vm302_vm3, %v369_v44  ;;  %v184_v49 = vadd.f32 %v394_v47, %v323_v14  ;;  %v216_v50 = vadd.f32 %v402_v48, %v323_v14  ;;  %v175_v51 = vpop.f32.mrb[5].mxu0  ;;  %v207_v52 = vpop.f32.mrb[5].mxu1 }
  0xe7   :  { %304 = vst.msk [vmem:[%s548_s3 + $0x4] sm:$0xf] %vm302_vm3, %v359_v45  ;;  %312 = vst.msk [vmem:[%s548_s3 + $0x24] sm:$0xf] %vm302_vm3, %v367_v46  ;;  %v176_v53 = vadd.f32 %v323_v14, %v175_v51  ;;  %v208_v54 = vadd.f32 %v323_v14, %v207_v52  ;;  %v395_v55 = vpop.f32.mrb[6].mxu0  ;;  %v403_v56 = vpop.f32.mrb[6].mxu1 }
  0xe8   :  { %v228_v57 = vmax.f32 %v184_v49, 0.0  ;;  %v236_v58 = vmax.f32 %v216_v50, 0.0  ;;  %v187_v59 = vadd.f32 %v395_v55, %v323_v14  ;;  %v219_v60 = vadd.f32 %v403_v56, %v323_v14  ;;  %v178_v61 = vpop.f32.mrb[7].mxu0  ;;  %v210_v62 = vpop.f32.mrb[7].mxu1 }
  0xe9   :  { %v226_v63 = vmax.f32 %v176_v53, 0.0  ;;  %v234_v0 = vmax.f32 %v208_v54, 0.0  ;;  %v179_v1 = vadd.f32 %v323_v14, %v178_v61  ;;  %v211_v2 = vadd.f32 %v323_v14, %v210_v62 }
  0xea   :  { %v364_v3 = vpack.c.bf16 %v228_v57, %v228_v57  ;;  %v372_v4 = vpack.c.bf16 %v236_v58, %v236_v58  ;;  %v229_v5 = vmax.f32 %v187_v59, 0.0  ;;  %v237_v6 = vmax.f32 %v219_v60, 0.0 }
  0xeb   :  { %v362_v7 = vpack.c.bf16 %v226_v63, %v226_v63  ;;  %v370_v8 = vpack.c.bf16 %v234_v0, %v234_v0  ;;  %v227_v9 = vmax.f32 %v179_v1, 0.0  ;;  %v235_v10 = vmax.f32 %v211_v2, 0.0 }
  0xec   :  { %309 = vst.msk [vmem:[%s548_s3 + $0x18] sm:$0xf] %vm302_vm3, %v364_v3  ;;  %317 = vst.msk [vmem:[%s548_s3 + $0x38] sm:$0xf] %vm302_vm3, %v372_v4  ;;  %v365_v11 = vpack.c.bf16 %v229_v5, %v229_v5  ;;  %v373_v12 = vpack.c.bf16 %v237_v6, %v237_v6 }
  0xed   :  { %307 = vst.msk [vmem:[%s548_s3 + $0x10] sm:$0xf] %vm302_vm3, %v362_v7  ;;  %315 = vst.msk [vmem:[%s548_s3 + $0x30] sm:$0xf] %vm302_vm3, %v370_v8  ;;  %v363_v13 = vpack.c.bf16 %v227_v9, %v227_v9  ;;  %v371_v14 = vpack.c.bf16 %v235_v10, %v235_v10 }
  0xee   :  { %310 = vst.msk [vmem:[%s548_s3 + $0x1c] sm:$0xf] %vm302_vm3, %v365_v11  ;;  %318 = vst.msk [vmem:[%s548_s3 + $0x3c] sm:$0xf] %vm302_vm3, %v373_v12 }
  0xef   :  { %308 = vst.msk [vmem:[%s548_s3 + $0x14] sm:$0xf] %vm302_vm3, %v363_v13  ;;  %316 = vst.msk [vmem:[%s548_s3 + $0x34] sm:$0xf] %vm302_vm3, %v371_v14 }

// kernel: feature_map_convolution_forward.4
= control target key start
LH: loop header
LB: loop body
LE: loop exit
PB: predicated region body
PF: predicated region fallthrough
CT: control target
= control target key end

     0   :  { %s1976_s12 = smov 0   ;;  %s1978_s13 = smov 0   ;;  %s2672_s0 = inlined_call_operand.vmem [shape: bf16[2,10,10,64], index: 0, kind: input, shape index: {}]   ;;  %s2673_s1 = inlined_call_operand.vmem [shape: bf16[3,192,64], index: 1, kind: input, shape index: {}]   ;;  %s2674_s2 = inlined_call_operand.vmem [shape: f32[1,64], index: 2, kind: input, shape index: {}]   ;;  %s2675_s3 = inlined_call_operand.vmem [shape: bf16[2,8,8,64], index: 3, kind: output, shape index: {}]  }
   0x1   :  { %s1980_s14 = smov 0  }
   0x2 LB: > { %s25_s15 = sadd.s32 1, %s1948_s13  ;;  %p1543_p0 = scmp.ge.s32.totalorder %s1952_s14, 1  ;;  %s1952_s14 = sphi %s1980_s14, %s13_s14   ;;  %s1948_s13 = sphi %s1978_s13, %s2737_s13   ;;  %s1944_s12 = sphi %s1976_s12, %s2736_s12  }
   0x3   : > { %p27_p1 = scmp.ge.s32.totalorder %s25_s15, 2  ;;  %p155_p2 = scmp.lt.s32.totalorder %s1952_s14, 3 }
   0x5   : > { %s2739_s15 = smov (%p27_p1, %s25_s15), 0  ;;  %p156_p3 = pnand %p1543_p0, %p155_p2 }
   0x7   : > { %159 = sbr.rel (%p156_p3) target bundleno = 429 (0x1ad), region = 32 }
   0xe   : > { %p185_p4 = scmp.lt.s32.totalorder %s1944_s12, 1  ;;  %v1870_v0 = vld [vmem:[%s2673_s1] sm:$0xff]   ;;  %v2678_v1 = vmov 0   ;;  %v1872_v3 = vld [vmem:[%s2673_s1 + $0x8] sm:$0xff]   ;;  %v1874_v5 = vld [vmem:[%s2673_s1 + $0x10] sm:$0xff]   ;;  %s1955_s9 = smov 64  }
   0xf   : > { %546 = vmatprep.subr.bf16.mxu1 %v2678_v1  ;;  %949 = vmatprep.subr.bf16.mxu0 %v2678_v1  ;;  %v1871_v2 = vld [vmem:[%s2673_s1 + $0x60] sm:$0xff]   ;;  %v1873_v4 = vld [vmem:[%s2673_s1 + $0x68] sm:$0xff]   ;;  %v1875_v6 = vld [vmem:[%s2673_s1 + $0x70] sm:$0xff]   ;;  %vm370_vm0 = vcmask 523264   ;;  %vm1449_vm1 = vcmask 519168  }
  0x10   : > { %s2741_s12 = smov (!%p185_p4, %s1944_s12), 1  ;;  %547 = vmatpush1.bf16.msra.mxu1 %v1870_v0  ;;  %950 = vmatpush1.bf16.msra.mxu0 %v1871_v2  ;;  %v1876_v34 = vld [vmem:[%s2673_s1 + $0x18] sm:$0xff]   ;;  %v1878_v57 = vld [vmem:[%s2673_s1 + $0x20] sm:$0xff]  }
  0x11   : > { %548 = vmatprep.subr.bf16.mxu1 %v2678_v1  ;;  %s1819_s22 = smul.u32 80, %s2741_s12  ;;  %951 = vmatprep.subr.bf16.mxu0 %v2678_v1  ;;  %v1877_v45 = vld [vmem:[%s2673_s1 + $0x78] sm:$0xff]   ;;  %v1879_v0 = vld [vmem:[%s2673_s1 + $0x80] sm:$0xff]   ;;  %s1766_s26 = sshll.u32 %s2741_s12, 5 }
  0x12   : > { %s2645_s30 = scalar_lea.vmem %s2675_s3, %s1766_s26 }
  0x13   : > { %s2019_s29 = scalar_lea.vmem %s2672_s0, %s1819_s22 }
  0x14   : > { %549 = vmatpush1.bf16.msra.mxu1 %v1872_v3  ;;  %v2025_v7 = vld [vmem:[%s2019_s29 + $0x8] sm:$0xf]  ;;  %v2028_v8 = vld [vmem:[%s2019_s29 + $0xc] sm:$0x1]  ;;  %v2031_v9 = vld [vmem:[%s2019_s29] sm:$0xf]  ;;  %952 = vmatpush1.bf16.msra.mxu0 %v1873_v4 }
  0x15   : > { %550 = vmatprep.subr.bf16.mxu1 %v2678_v1  ;;  %v1612_v10 = vcombine.low %v2025_v7, %v2028_v8  ;;  %v2037_v11 = vld [vmem:[%s2019_s29 + $0x4] sm:$0x1]  ;;  %v2040_v12 = vld [vmem:[%s2019_s29 + $0x10] sm:$0xf]  ;;  %v2043_v13 = vld [vmem:[%s2019_s29 + $0x14] sm:$0x1]  ;;  %953 = vmatprep.subr.bf16.mxu0 %v2678_v1 }
  0x16   : > { %v1547_v14 = vcombine.low %v2031_v9, %v2037_v11  ;;  %v1613_v15 = vcombine.low %v2040_v12, %v2043_v13  ;;  %v2050_v16 = vld [vmem:[%s2019_s29 + $0x8] sm:$0xf]  ;;  %v2053_v17 = vld [vmem:[%s2019_s29 + $0xc] sm:$0x1]  ;;  %v2056_v18 = vld [vmem:[%s2019_s29 + $0x18] sm:$0xf] }
  0x17   : > { %v677_v19 = vshrl.u32 %v1612_v10, 16  ;;  %v679_v20 = vshll.u32 %v1612_v10, 16  ;;  %v1548_v21 = vcombine.low %v2050_v16, %v2053_v17  ;;  %v2062_v22 = vld [vmem:[%s2019_s29 + $0x1c] sm:$0x1]  ;;  %v2065_v23 = vld [vmem:[%s2019_s29 + $0x10] sm:$0xf] }
  0x18   : > { %2696 = vst [vmem:[#allocation2_spill] sm:$0xff] %v2065_v23  ;;  %551 = vmatpush1.bf16.msra.mxu1 %v1874_v5  ;;  %v267_v24 = vshrl.u32 %v1547_v14, 16  ;;  %v269_v25 = vshll.u32 %v1547_v14, 16  ;;  %v684_v26 = vshrl.u32 %v1613_v15, 16  ;;  %v686_v27 = vshll.u32 %v1613_v15, 16  ;;  %954 = vmatpush1.bf16.msra.mxu0 %v1875_v6  ;;  %v1880_v4 = vld [vmem:[%s2673_s1 + $0x28] sm:$0xff]  }
  0x19   : > { %v2068_v28 = vld [vmem:[%s2019_s29 + $0x14] sm:$0x1]  ;;  %552 = vmatprep.subr.bf16.mxu1 %v2678_v1  ;;  %v681_v29 = vrot.slane %v679_v20, 1  ;;  %v274_v30 = vshrl.u32 %v1548_v21, 16  ;;  %v276_v31 = vshll.u32 %v1548_v21, 16  ;;  %v1550_v32 = vcombine.low %v2056_v18, %v2062_v22  ;;  %955 = vmatprep.subr.bf16.mxu0 %v2678_v1 }
  0x1a   : > { %v2074_v33 = vld [vmem:[%s2019_s29 + $0x20] sm:$0xf]  ;;  %v271_v35 = vrot.slane %v269_v25, 1  ;;  %v688_v36 = vrot.slane %v686_v27, 1  ;;  %v1549_v37 = vcombine.low %v2065_v23, %v2068_v28  ;;  %v2082_v38 = vld [vmem:[%s2019_s29 + $0x24] sm:$0x1] }
  0x1b   : > { %2697 = vst [vmem:[#allocation3_spill] sm:$0xff] %v2074_v33  ;;  %v2085_v39 = vld [vmem:[%s2019_s29 + $0x18] sm:$0xf]  ;;  %v682_v40 = vor.u32 %v681_v29, %v677_v19  ;;  %v278_v41 = vrot.slane %v276_v31, 1  ;;  %v288_v42 = vshrl.u32 %v1550_v32, 16  ;;  %v290_v43 = vshll.u32 %v1550_v32, 16 }
  0x1c   : > { %2698 = vst [vmem:[#allocation4_spill] sm:$0xff] %v2085_v39  ;;  %v2089_v44 = vld [vmem:[%s2019_s29 + $0x1c] sm:$0x1]  ;;  %553 = vmatpush1.bf16.msra.mxu1 %v1876_v34  ;;  %v272_v46 = vor.u32 %v271_v35, %v267_v24  ;;  %v281_v47 = vshrl.u32 %v1549_v37, 16  ;;  %v283_v48 = vshll.u32 %v1549_v37, 16  ;;  %v689_v51 = vor.u32 %v688_v36, %v684_v26  ;;  %956 = vmatpush1.bf16.msra.mxu0 %v1877_v45  ;;  %v1881_v25 = vld [vmem:[%s2673_s1 + $0x88] sm:$0xff]  }
  0x1d   : > { %v2095_v49 = vld [vmem:[%s2019_s29 + $0x28] sm:$0xf]  ;;  %v2098_v50 = vld [vmem:[%s2019_s29 + $0x2c] sm:$0x1]  ;;  %554 = vmatprep.subr.bf16.mxu1 %v2678_v1  ;;  %732 = vrot.lane.b32.xlu1 %v682_v40, %s1955_s9  ;;  %v292_v52 = vrot.slane %v290_v43, 1  ;;  %v1615_v53 = vcombine.low %v2074_v33, %v2082_v38  ;;  %v1614_v54 = vcombine.low %v2085_v39, %v2089_v44  ;;  %v279_v58 = vor.u32 %v278_v41, %v274_v30  ;;  %v1882_v37 = vld [vmem:[%s2673_s1 + $0x30] sm:$0xff]  }
  0x1e   : > { %2699 = vst [vmem:[#allocation5_spill] sm:$0xff] %v2095_v49  ;;  %v2107_v55 = vld [vmem:[%s2019_s29 + $0x20] sm:$0xf]  ;;  %v2110_v56 = vld [vmem:[%s2019_s29 + $0x24] sm:$0x1]  ;;  %322 = vrot.lane.b32.xlu0 %v272_v46, %s1955_s9  ;;  %v285_v59 = vrot.slane %v283_v48, 1  ;;  %v1552_v60 = vcombine.low %v2095_v49, %v2098_v50  ;;  %957 = vmatprep.subr.bf16.mxu0 %v2678_v1 }
  0x1f   : > { %2700 = vst [vmem:[#allocation6_spill] sm:$0xff] %v2107_v55  ;;  %v2120_v61 = vcombine.low %v2107_v55, %v2110_v56  ;;  %v2123_v62 = vld [vmem:[%s2019_s29 + $0x30] sm:$0xf]  ;;  %v2126_v63 = vld [vmem:[%s2019_s29 + $0x34] sm:$0x1]  ;;  %v700_v2 = vshll.u32 %v1615_v53, 16  ;;  %v293_v5 = vor.u32 %v292_v52, %v288_v42 }
  0x20   : > { %2701 = vst [vmem:[#allocation7_spill] sm:$0xff] %v2123_v62  ;;  %v2133_v3 = vld [vmem:[%s2019_s29 + $0x28] sm:$0xf]  ;;  %555 = vmatpush1.bf16.msra.mxu1 %v1878_v57  ;;  %v693_v6 = vshll.u32 %v1614_v54, 16  ;;  %v304_v10 = vshll.u32 %v1552_v60, 16  ;;  %v698_v15 = vshrl.u32 %v1615_v53, 16  ;;  %v2145_v21 = vcombine.low %v2123_v62, %v2126_v63  ;;  %958 = vmatpush1.bf16.msra.mxu0 %v1879_v0 }
  0x21   : > { %2702 = vst [vmem:[#allocation8_spill] sm:$0xff] %v2133_v3  ;;  %v2139_v14 = vld [vmem:[%s2019_s29 + $0x2c] sm:$0x1]  ;;  %556 = vmatprep.subr.bf16.mxu1 %v2678_v1  ;;  %734 = vrot.lane.b32.xlu1 %v689_v51, %s1955_s9  ;;  %v702_v19 = vrot.slane %v700_v2, 1  ;;  %v691_v20 = vshrl.u32 %v1614_v54, 16  ;;  %v286_v26 = vor.u32 %v285_v59, %v281_v47  ;;  %v297_v29 = vshll.u32 %v2120_v61, 16 }
  0x22   : > { %v2148_v24 = vld [vmem:[%s2019_s29 + $0x38] sm:$0xf]  ;;  %324 = vrot.lane.b32.xlu0 %v279_v58, %s1955_s9  ;;  %v695_v27 = vrot.slane %v693_v6, 1  ;;  %v2157_v30 = vcombine.low %v2133_v3, %v2139_v14  ;;  %v2160_v31 = vld [vmem:[%s2019_s29 + $0x3c] sm:$0x1]  ;;  %959 = vmatprep.subr.bf16.mxu0 %v2678_v1  ;;  %v302_v34 = vshrl.u32 %v1552_v60, 16 }
  0x23   : > { %2703 = vst [vmem:[#allocation9_spill] sm:$0xff] %v2148_v24  ;;  %v2163_v32 = vld [vmem:[%s2019_s29 + $0x30] sm:$0xf]  ;;  %v306_v35 = vrot.slane %v304_v10, 1  ;;  %v2167_v36 = vld [vmem:[%s2019_s29 + $0x34] sm:$0x1]  ;;  %v703_v45 = vor.u32 %v702_v19, %v698_v15  ;;  %v2184_v46 = vcombine.low %v2148_v24, %v2160_v31 }
  0x24   : > { %2704 = vst [vmem:[#allocation10_spill] sm:$0xff] %v2163_v32  ;;  %557 = vmatpush1.bf16.msra.mxu1 %v1880_v4  ;;  %v714_v40 = vshll.u32 %v2145_v21, 16  ;;  %v707_v41 = vshll.u32 %v2157_v30, 16  ;;  %v2175_v42 = vld [vmem:[%s2019_s29 + $0x40] sm:$0xf]  ;;  %v2188_v47 = vcombine.low %v2163_v32, %v2167_v36  ;;  %960 = vmatpush1.bf16.msra.mxu0 %v1881_v25  ;;  %v1883_v52 = vld [vmem:[%s2673_s1 + $0x90] sm:$0xff]   ;;  %v696_v53 = vor.u32 %v695_v27, %v691_v20 }
  0x25   : > { %2705 = vst [vmem:[#allocation11_spill] sm:$0xff] %v2175_v42  ;;  %v2178_v43 = vld [vmem:[%s2019_s29 + $0x44] sm:$0x1]  ;;  %558 = vmatprep.subr.bf16.mxu1 %v2678_v1  ;;  %328 = vrot.lane.b32.xlu1 %v293_v5, %s1955_s9  ;;  %v2191_v48 = vld [vmem:[%s2019_s29 + $0x38] sm:$0xf]  ;;  %v295_v54 = vshrl.u32 %v2120_v61, 16  ;;  %v307_v0 = vor.u32 %v306_v35, %v302_v34 }
  0x26   : > { %2706 = vst [vmem:[#allocation12_spill] sm:$0xff] %v2191_v48  ;;  %v2194_v51 = vld [vmem:[%s2019_s29 + $0x3c] sm:$0x1]  ;;  %326 = vrot.lane.b32.xlu0 %v286_v26, %s1955_s9  ;;  %v299_v57 = vrot.slane %v297_v29, 1  ;;  %v2203_v58 = vcombine.low %v2175_v42, %v2178_v43  ;;  %v2206_v59 = vld [vmem:[%s2019_s29 + $0x18] sm:$0xf]  ;;  %961 = vmatprep.subr.bf16.mxu0 %v2678_v1 }
  0x27   : > { %2707 = vst [vmem:[#allocation13_spill] sm:$0xff] %v2206_v59  ;;  %v2209_v60 = vld [vmem:[%s2019_s29 + $0x1c] sm:$0x1]  ;;  %v712_v2 = vshrl.u32 %v2145_v21, 16  ;;  %v318_v4 = vshll.u32 %v2184_v46, 16  ;;  %v2216_v61 = vcombine.low %v2191_v48, %v2194_v51  ;;  %v716_v10 = vrot.slane %v714_v40, 1 }
  0x28   : > { %v2219_v5 = vld [vmem:[%s2019_s29 + $0x10] sm:$0xf]  ;;  %559 = vmatpush1.bf16.msra.mxu1 %v1882_v37  ;;  %v1884_v6 = vld [vmem:[%s2673_s1 + $0x38] sm:$0xff]   ;;  %v705_v15 = vshrl.u32 %v2157_v30, 16  ;;  %v709_v19 = vrot.slane %v707_v41, 1  ;;  %v316_v20 = vshrl.u32 %v2184_v46, 16  ;;  %v2236_v29 = vcombine.low %v2206_v59, %v2209_v60  ;;  %962 = vmatpush1.bf16.msra.mxu0 %v1883_v52 }
  0x29   : > { %2708 = vst [vmem:[#allocation14_spill] sm:$0xff] %v2219_v5  ;;  %v2227_v21 = vld [vmem:[%s2019_s29 + $0x14] sm:$0x1]  ;;  %560 = vmatprep.subr.bf16.mxu1 %v2678_v1  ;;  %738 = vrot.lane.b32.xlu1 %v703_v45, %s1955_s9  ;;  %v311_v26 = vshll.u32 %v2188_v47, 16  ;;  %v728_v27 = vshll.u32 %v2203_v58, 16  ;;  %v1885_v30 = vld [vmem:[%s2673_s1 + $0x98] sm:$0xff]   ;;  %v300_v35 = vor.u32 %v299_v57, %v295_v54  ;;  %v717_v25 = vor.u32 %v716_v10, %v712_v2 }
  0x2a   : > { %v1886_v34 = vld [vmem:[%s2673_s1 + $0x40] sm:$0xff]   ;;  %736 = vrot.lane.b32.xlu0 %v696_v53, %s1955_s9  ;;  %v2247_v37 = vcombine.low %v2219_v5, %v2227_v21  ;;  %v2250_v40 = vld [vmem:[%s2019_s29 + $0x38] sm:$0xf]  ;;  %v2253_v41 = vld [vmem:[%s2019_s29 + $0x3c] sm:$0x1]  ;;  %963 = vmatprep.subr.bf16.mxu0 %v2678_v1  ;;  %v320_v46 = vrot.slane %v318_v4, 1 }
  0x2b   : > { %2709 = vst [vmem:[#allocation15_spill] sm:$0xff] %v2250_v40  ;;  %v2256_v45 = vld [vmem:[%s2019_s29 + $0x30] sm:$0xf]  ;;  %v721_v53 = vshll.u32 %v2216_v61, 16  ;;  %v2262_v54 = vld [vmem:[%s2019_s29 + $0x34] sm:$0x1]  ;;  %v2280_v2 = vcombine.low %v2250_v40, %v2253_v41 }
  0x2c   : > { %2710 = vst [vmem:[#allocation16_spill] sm:$0xff] %v2256_v45  ;;  %561 = vmatpush1.bf16.msra.mxu1 %v1884_v6  ;;  %v1887_v57 = vld [vmem:[%s2673_s1 + $0xa0] sm:$0xff]   ;;  %v1097_v59 = vshll.u32 %v2236_v29, 16  ;;  %v2270_v1 = vld [vmem:[%s2019_s29 + $0x28] sm:$0xf]  ;;  %v2712_v52 = vmov 0   ;;  %v710_v6 = vor.u32 %v709_v19, %v705_v15  ;;  %v2284_v10 = vcombine.low %v2256_v45, %v2262_v54  ;;  %964 = vmatpush1.bf16.msra.mxu0 %v1885_v30 }
  0x2d   : > { %2711 = vst [vmem:[#allocation17_spill] sm:$0xff] %v2270_v1  ;;  %v2273_v4 = vld [vmem:[%s2019_s29 + $0x2c] sm:$0x1]  ;;  %562 = vmatprep.subr.bf16.mxu1 %v2712_v52  ;;  %332 = vrot.lane.b32.xlu1 %v307_v0, %s1955_s9  ;;  %v1090_v48 = vshll.u32 %v2247_v37, 16  ;;  %v2287_v5 = vld [vmem:[%s2019_s29 + $0x20] sm:$0xf]  ;;  %v321_v24 = vor.u32 %v320_v46, %v316_v20 }
  0x2e   : > { %2713 = vst [vmem:[#allocation18_spill] sm:$0xff] %v2287_v5  ;;  %v2290_v42 = vld [vmem:[%s2019_s29 + $0x24] sm:$0x1]  ;;  %v1888_v0 = vld [vmem:[%s2673_s1 + $0x48] sm:$0xff]   ;;  %330 = vrot.lane.b32.xlu0 %v300_v35, %s1955_s9  ;;  %v313_v15 = vrot.slane %v311_v26, 1  ;;  %v730_v19 = vrot.slane %v728_v27, 1  ;;  %v2298_v40 = vcombine.low %v2270_v1, %v2273_v4  ;;  %965 = vmatprep.subr.bf16.mxu0 %v2712_v52 }
  0x2f   : > { %v2302_v45 = vcombine.low %v2287_v5, %v2290_v42  ;;  %v2305_v32 = vld [vmem:[%s2019_s29 + $0x48] sm:$0xf]  ;;  %v2308_v30 = vld [vmem:[%s2019_s29 + $0x4c] sm:$0x1]  ;;  %v723_v3 = vrot.slane %v721_v53, 1  ;;  %v1095_v26 = vshrl.u32 %v2236_v29, 16 }
  0x30   : > { %2714 = vst [vmem:[#allocation19_spill] sm:$0xff] %v2305_v32  ;;  %v1125_v27 = vshll.u32 %v2280_v2, 16  ;;  %v2314_v35 = vld [vmem:[%s2019_s29 + $0x40] sm:$0xf]  ;;  %563 = vmatpush1.bf16.msra.mxu1 %v1886_v34  ;;  %v1889_v5 = vld [vmem:[%s2673_s1 + $0xa8] sm:$0xff]   ;;  %v1099_v1 = vrot.slane %v1097_v59, 1  ;;  %v2331_v59 = vcombine.low %v2305_v32, %v2308_v30  ;;  %966 = vmatpush1.bf16.msra.mxu0 %v1887_v57 }
  0x31   : > { %v1088_v62 = vshrl.u32 %v2247_v37, 16  ;;  %v1118_v55 = vshll.u32 %v2284_v10, 16  ;;  %v1111_v49 = vshll.u32 %v2298_v40, 16  ;;  %v2323_v20 = vld [vmem:[%s2019_s29 + $0x44] sm:$0x1]  ;;  %564 = vmatprep.subr.bf16.mxu1 %v2712_v52  ;;  %742 = vrot.lane.b32.xlu1 %v717_v25, %s1955_s9  ;;  %v1092_v29 = vrot.slane %v1090_v48, 1 }
  0x32   : > { %v1123_v34 = vshrl.u32 %v2280_v2, 16  ;;  %v1104_v46 = vshll.u32 %v2302_v45, 16  ;;  %v1890_v37 = vld [vmem:[%s2673_s1 + $0x50] sm:$0xff]   ;;  %740 = vrot.lane.b32.xlu0 %v710_v6, %s1955_s9  ;;  %v2715_v53 = vshrl.u32 %v2188_v47, 16  ;;  %v1116_v48 = vshrl.u32 %v2284_v10, 16  ;;  %967 = vmatprep.subr.bf16.mxu0 %v2712_v52 }
  0x33   : > { %v1109_v25 = vshrl.u32 %v2298_v40, 16  ;;  %v2343_v2 = vcombine.low %v2314_v35, %v2323_v20  ;;  %v1127_v57 = vrot.slane %v1125_v27, 1  ;;  %v1120_v32 = vrot.slane %v1118_v55, 1  ;;  %v1891_v47 = vld [vmem:[%s2673_s1 + $0xb0] sm:$0xff]  }
  0x34   : > { %v314_v39 = vor.u32 %v313_v15, %v2715_v53  ;;  %v1102_v33 = vshrl.u32 %v2302_v45, 16  ;;  %v1139_v23 = vshll.u32 %v2331_v59, 16  ;;  %565 = vmatpush1.bf16.msra.mxu1 %v1888_v0  ;;  %v1113_v6 = vrot.slane %v1111_v49, 1  ;;  %968 = vmatpush1.bf16.msra.mxu0 %v1889_v5  ;;  %v1892_v0 = vld [vmem:[%s2673_s1 + $0x58] sm:$0xff]   ;;  %v219_v5 = vld [vmem:[%s2019_s29 + $0x8] sm:$0xe] }
  0x35   : > { %v1106_v10 = vrot.slane %v1104_v46, 1  ;;  %566 = vmatprep.subr.bf16.mxu1 %v2712_v52  ;;  %336 = vrot.lane.b32.xlu1 %v321_v24, %s1955_s9  ;;  %v2716_v40 = vshrl.u32 %v2203_v58, 16  ;;  %v1137_v55 = vshrl.u32 %v2331_v59, 16  ;;  %v1130_v45 = vshrl.u32 %v2343_v2, 16  ;;  %v1893_v58 = vld [vmem:[%s2673_s1 + $0xb8] sm:$0xff]  }
  0x36   : > { %334 = vrot.lane.b32.xlu0 %v314_v39, %s1955_s9  ;;  %v2717_v49 = vshrl.u32 %v2216_v61, 16  ;;  %v1141_v46 = vrot.slane %v1139_v23, 1  ;;  %v1132_v24 = vshll.u32 %v2343_v2, 16  ;;  %969 = vmatprep.subr.bf16.mxu0 %v2712_v52  ;;  %v1100_v39 = vor.u32 %v1099_v1, %v1095_v26  ;;  %v218_v1 = vld [vmem:[%s2019_s29] sm:$0xe] }
  0x37   : > { %v731_v15 = vor.u32 %v730_v19, %v2716_v40  ;;  %v1093_v23 = vor.u32 %v1092_v29, %v1088_v62  ;;  %v1121_v61 = vor.u32 %v1120_v32, %v1116_v48  ;;  %v1604_v19 = vld [vmem:[%s2019_s29 + $0x8] sm:$0xe]  ;;  %v1555_v26 = vcombine.low %v218_v1, %v2037_v11  ;;  %v1605_v29 = vld [vmem:[%s2019_s29 + $0x10] sm:$0xe]  ;;  %v1607_v40 = vld [vmem:[%s2019_s29 + $0x20] sm:$0xe] }
  0x38   : > { %v724_v27 = vor.u32 %v723_v3, %v2717_v49  ;;  %567 = vmatpush1.bf16.msra.mxu1 %v1890_v37  ;;  %970 = vmatpush1.bf16.msra.mxu0 %v1891_v47  ;;  %v1128_v3 = vor.u32 %v1127_v57, %v1123_v34  ;;  %v1556_v62 = vcombine.low %v219_v5, %v2053_v17  ;;  %v1134_v53 = vrot.slane %v1132_v24, 1  ;;  %v220_v47 = vld [vmem:[%s2019_s29 + $0x10] sm:$0xe]  ;;  %v225_v5 = vld [vmem:[%s2019_s29 + $0x38] sm:$0xe] }
  0x39   : > { %568 = vmatprep.subr.bf16.mxu1 %v2712_v52  ;;  %746 = vrot.lane.b32.xlu1 %v731_v15, %s1955_s9  ;;  %v1620_v59 = vcombine.low %v1604_v19, %v2028_v8  ;;  %v1114_v34 = vor.u32 %v1113_v6, %v1109_v25  ;;  %v1107_v37 = vor.u32 %v1106_v10, %v1102_v33  ;;  %v362_v48 = vrot.slane %v1555_v26, 1  ;;  %v221_v8 = vld [vmem:[%s2019_s29 + $0x18] sm:$0xe]  ;;  %v224_v1 = vld [vmem:[%s2019_s29 + $0x30] sm:$0xe] }
  0x3a   : > { %744 = vrot.lane.b32.xlu0 %v724_v27, %s1955_s9  ;;  %971 = vmatprep.subr.bf16.mxu0 %v2712_v52  ;;  %v1621_v32 = vcombine.low %v1605_v29, %v2043_v13  ;;  %v363_v11 = vrot.slane %v1556_v62, 1  ;;  %v1142_v33 = vor.u32 %v1141_v46, %v1137_v55  ;;  %v1557_v13 = vcombine.low %v220_v47, %v2068_v28  ;;  %v1606_v10 = vld [vmem:[%s2019_s29 + $0x18] sm:$0xe]  ;;  %v222_v27 = vld [vmem:[%s2019_s29 + $0x20] sm:$0xe] }
  0x3b   : > { %v772_v2 = vrot.slane %v1620_v59, 1  ;;  %v1558_v6 = vcombine.low %v221_v8, %v2062_v22  ;;  %v1135_v15 = vor.u32 %v1134_v53, %v1130_v45  ;;  %v1623_v49 = vcombine.low %v1607_v40, %v2082_v38  ;;  %v223_v22 = vld [vmem:[%s2019_s29 + $0x28] sm:$0xe]  ;;  %v1610_v59 = vld [vmem:[%s2019_s29 + $0x38] sm:$0xe] }
  0x3c   : > { %569 = vmatpush1.bf16.msra.mxu1 %v1892_v0  ;;  %972 = vmatpush1.bf16.msra.mxu0 %v1893_v58  ;;  %v773_v17 = vrot.slane %v1621_v32, 1  ;;  %v1565_v57 = vcombine.low %v362_v48, %v363_v11  ;;  %v1622_v0 = vcombine.low %v1606_v10, %v2089_v44  ;;  %v2399_v55 = vrot.slane %v1557_v13, 1  ;;  %v1696_v47 = vld [vmem:[%s2019_s29 + $0x30] sm:$0xe]  ;;  %v1697_v8 = vld [vmem:[%s2019_s29 + $0x38] sm:$0xe] }
  0x3d   : > { %1767 = vmatprep.subr.bf16.mxu1 %v2712_v52  ;;  %1145 = vrot.lane.b32.xlu1 %v1100_v39, %s1955_s9  ;;  %v2401_v28 = vrot.slane %v1558_v6, 1  ;;  %v1559_v45 = vcombine.low %v222_v27, %v2110_v56  ;;  %v2407_v24 = vrot.slane %v1623_v49, 1  ;;  %v1560_v44 = vcombine.low %v223_v22, %v2098_v50  ;;  %v1608_v39 = vld [vmem:[%s2019_s29 + $0x28] sm:$0xe]  ;;  %v1698_v40 = vld [vmem:[%s2019_s29 + $0x40] sm:$0xe] }
  0x3e   : > { %1143 = vrot.lane.b32.xlu0 %v1093_v23, %s1955_s9  ;;  %1360 = vmatprep.subr.bf16.mxu0 %v2712_v52  ;;  %v1653_v25 = vcombine.low %v772_v2, %v773_v17  ;;  %v2405_v46 = vrot.slane %v1622_v0, 1  ;;  %v1609_v23 = vld [vmem:[%s2019_s29 + $0x30] sm:$0xe]  ;;  %v1624_v50 = vcombine.low %v1608_v39, %v2139_v14  ;;  %v1561_v29 = vcombine.low %v224_v1, %v2167_v36  ;;  %v1693_v2 = vld [vmem:[%s2019_s29 + $0x18] sm:$0xe] }
  0x3f   : > { %1584 = vmatprep.mubr.msk.bf16.mxu1 %vm370_vm0, %v1565_v57  ;;  %v1567_v38 = vcombine.low %v2399_v55, %v2401_v28  ;;  %v2413_v58 = vrot.slane %v1559_v45, 1  ;;  %v1562_v14 = vcombine.low %v225_v5, %v2160_v31  ;;  %v1692_v31 = vld [vmem:[%s2019_s29 + $0x10] sm:$0xe]  ;;  %v1709_v57 = vcombine.low %v1693_v2, %v2209_v60  ;;  %v1695_v6 = vld [vmem:[%s2019_s29 + $0x28] sm:$0xe]  ;;  %v2718_v2 = vld [vmem:[#allocation2_spill] sm:$0xff] }
  0x40   : > { %1672 = vmatprep.mubr.msk.bf16.mxu0 %vm370_vm0, %v1653_v25  ;;  %v1655_v56 = vcombine.low %v2405_v46, %v2407_v24  ;;  %v2428_v26 = vrot.slane %v1624_v50, 1  ;;  %v2439_v32 = vrot.slane %v1561_v29, 1  ;;  %v1708_v17 = vcombine.low %v1692_v31, %v2227_v21  ;;  %v2720_v55 = vld [vmem:[#allocation4_spill] sm:$0xff] }
  0x41   : > { %1153 = vrot.lane.b32.xlu1 %v1128_v3, %s1955_s9  ;;  %v2420_v3 = vrot.slane %v1560_v44, 1  ;;  %v2442_v48 = vrot.slane %v1562_v14, 1  ;;  %v1712_v25 = vcombine.low %v1696_v47, %v2262_v54  ;;  %v1713_v13 = vcombine.low %v1697_v8, %v2253_v41  ;;  %v2719_v47 = vld [vmem:[#allocation3_spill] sm:$0xff] }
  0x42   : > { %1151 = vrot.lane.b32.xlu0 %v1121_v61, %s1955_s9  ;;  %v1625_v61 = vcombine.low %v1609_v23, %v2126_v63  ;;  %v1611_v63 = vld [vmem:[%s2019_s29 + $0x40] sm:$0xe]  ;;  %v2465_v0 = vrot.slane %v1708_v17, 1  ;;  %v2467_v21 = vrot.slane %v1709_v57, 1  ;;  %v1711_v60 = vcombine.low %v1695_v6, %v2273_v4 }
  0x43   : > { %v1569_v19 = vcombine.low %v2413_v58, %v2420_v3  ;;  %v1627_v53 = vcombine.low %v1611_v63, %v2178_v43  ;;  %v1694_v43 = vld [vmem:[%s2019_s29 + $0x20] sm:$0xe]  ;;  %v1714_v49 = vcombine.low %v1698_v40, %v2323_v20  ;;  %v2471_v27 = vrot.slane %v1712_v25, 1  ;;  %v2721_v25 = vld [vmem:[#allocation5_spill] sm:$0xff]  ;;  %v2724_v58 = vld [vmem:[#allocation8_spill] sm:$0xff] }
  0x44   : > { %v2430_v62 = vrot.slane %v1625_v61, 1  ;;  %v1710_v10 = vcombine.low %v1694_v43, %v2290_v42  ;;  %v2473_v22 = vrot.slane %v1713_v13, 1  ;;  %v1741_v42 = vcombine.low %v2465_v0, %v2467_v21  ;;  %v2722_v6 = vld [vmem:[#allocation6_spill] sm:$0xff]  ;;  %v1919_v0 = vld [vmem:[%s2673_s1 + $0x108] sm:$0xff]  }
  0x45   : > { %1149 = vrot.lane.b32.xlu1 %v1114_v34, %s1955_s9  ;;  %v1626_v34 = vcombine.low %v1610_v59, %v2194_v51  ;;  %v2446_v11 = vrot.slane %v1627_v53, 1  ;;  %v1571_v51 = vcombine.low %v2439_v32, %v2442_v48  ;;  %v2480_v45 = vrot.slane %v1711_v60, 1  ;;  %v1898_v59 = vld [vmem:[%s2673_s1 + $0xc0] sm:$0xff]   ;;  %v2728_v32 = vld [vmem:[#allocation12_spill] sm:$0xff] }
  0x46   : > { %1147 = vrot.lane.b32.xlu0 %v1107_v37, %s1955_s9  ;;  %v1657_v37 = vcombine.low %v2428_v26, %v2430_v62  ;;  %v2475_v54 = vrot.slane %v1710_v10, 1  ;;  %v2482_v44 = vrot.slane %v1714_v49, 1  ;;  %v1745_v4 = vcombine.low %v2471_v27, %v2473_v22  ;;  %v2723_v49 = vld [vmem:[#allocation7_spill] sm:$0xff]  ;;  %v1920_v22 = vld [vmem:[%s2673_s1 + $0x110] sm:$0xff]  }
  0x47   : > { %v2444_v36 = vrot.slane %v1626_v34, 1  ;;  %v1907_v62 = vld [vmem:[%s2673_s1 + $0xe8] sm:$0xff]  }
  0x48   : > { %v1743_v20 = vcombine.low %v2475_v54, %v2480_v45 }
  0x49   : > { %1157 = vrot.lane.b32.xlu1 %v1142_v33, %s1955_s9  ;;  %v1659_v33 = vcombine.low %v2444_v36, %v2446_v11  ;;  %v1913_v11 = vld [vmem:[%s2673_s1 + $0xf8] sm:$0xff]  }
  0x4a   : > { %1155 = vrot.lane.b32.xlu0 %v1135_v15, %s1955_s9  ;;  %v1699_v15 = vld [vmem:[%s2019_s29 + $0x48] sm:$0xe] }
  0x4b   : > { %v1715_v41 = vcombine.low %v1699_v15, %v2308_v30  ;;  %v1904_v15 = vld [vmem:[%s2673_s1 + $0xe0] sm:$0xff]  }
  0x4d   : > { %v2486_v39 = vrot.slane %v1715_v41, 1 }
  0x4f   : > { %v1747_v23 = vcombine.low %v2482_v44, %v2486_v39  ;;  %v1563_v39 = vld [vmem:[%s2674_s2] ss:$0 sm:$0xff] }
  0x8f   : > { %v733_v50 = vpop.permute.xlu1 %732 }
  0x90   : > { %v323_v30 = vpop.permute.xlu0 %322  ;;  %v782_v1 = vsel %vm370_vm0, %v2025_v7, %v733_v50  ;;  %v1899_v7 = vld [vmem:[%s2673_s1 + $0xc8] sm:$0xff]  }
  0x91   : > { %v373_v14 = vsel %vm370_vm0, %v2031_v9, %v323_v30  ;;  %v2725_v30 = vld [vmem:[#allocation9_spill] sm:$0xff] }
  0x93   : > { %v735_v61 = vpop.permute.xlu1 %734 }
  0x94   : > { %v785_v5 = vsel %vm370_vm0, %v2040_v12, %v735_v61  ;;  %v325_v29 = vpop.permute.xlu0 %324 }
  0x95   : > { %v1652_v63 = vcombine.low %v782_v1, %v785_v5  ;;  %v376_v34 = vsel %vm370_vm0, %v2050_v16, %v325_v29  ;;  %v2726_v1 = vld [vmem:[#allocation10_spill] sm:$0xff] }
  0x96   : > { %v1564_v53 = vcombine.low %v373_v14, %v376_v34 }
  0x97   : > { %982 = vmatmul.mubr.bf16.vlgmr.msra.gmra.mrb[0].mxu0 %v1652_v63  ;;  %v329_v31 = vpop.permute.xlu1 %328  ;;  %v2727_v63 = vld [vmem:[#allocation11_spill] sm:$0xff] }
  0x98   : > { %579 = vmatmul.mubr.bf16.vlgmr.msra.gmra.mrb[0].mxu1 %v1564_v53  ;;  %1361 = vmatpush1.bf16.msra.mxu0 %v1898_v59  ;;  %v327_v12 = vpop.permute.xlu0 %326  ;;  %v382_v9 = vsel %vm370_vm0, %v2056_v18, %v329_v31  ;;  %v1900_v18 = vld [vmem:[%s2673_s1 + $0xd0] sm:$0xff]  }
  0x99   : > { %1779 = vmatpush1.bf16.msra.mxu1 %v1898_v59  ;;  %1362 = vmatprep.subr.bf16.mxu0 %v2712_v52  ;;  %v379_v17 = vsel %vm370_vm0, %v2718_v2, %v327_v12  ;;  %v1910_v59 = vld [vmem:[%s2673_s1 + $0xf0] sm:$0xff]   ;;  %v2729_v12 = vld [vmem:[#allocation15_spill] sm:$0xff] }
  0x9a   : > { %1768 = vmatprep.subr.bf16.mxu1 %v2712_v52  ;;  %1585 = vmatprep.mubr.msk.bf16.mxu1 %vm370_vm0, %v1567_v38  ;;  %v1566_v57 = vcombine.low %v379_v17, %v382_v9  ;;  %v1901_v38 = vld [vmem:[%s2673_s1 + $0xd8] sm:$0xff]   ;;  %v2730_v2 = vld [vmem:[#allocation16_spill] sm:$0xff] }
  0x9b   : > { %v739_v16 = vpop.permute.xlu1 %738  ;;  %1673 = vmatprep.mubr.msk.bf16.mxu0 %vm370_vm0, %v1655_v56 }
  0x9c   : > { %1363 = vmatpush1.bf16.msra.mxu0 %v1899_v7  ;;  %v791_v8 = vsel %vm370_vm0, %v2719_v47, %v739_v16  ;;  %v737_v43 = vpop.permute.xlu0 %736  ;;  %v2731_v16 = vld [vmem:[#allocation13_spill] sm:$0xff] }
  0x9d   : > { %1780 = vmatpush1.bf16.msra.mxu1 %v1899_v7  ;;  %1364 = vmatprep.subr.bf16.mxu0 %v2712_v52  ;;  %v788_v28 = vsel %vm370_vm0, %v2720_v55, %v737_v43 }
  0x9e   : > { %1769 = vmatprep.subr.bf16.mxu1 %v2712_v52  ;;  %v1654_v46 = vcombine.low %v788_v28, %v791_v8 }
  0x9f   : > { %v333_v24 = vpop.permute.xlu1 %332 }
  0xa0   : > { %1365 = vmatpush1.bf16.msra.mxu0 %v1900_v18  ;;  %587 = vmatmul.mubr.bf16.gmra.mrb[4].mxu1 %v1566_v57  ;;  %v331_v56 = vpop.permute.xlu0 %330  ;;  %v388_v13 = vsel %vm370_vm0, %v2721_v25, %v333_v24  ;;  %v2732_v57 = vld [vmem:[#allocation14_spill] sm:$0xff] }
  0xa1   : > { %1781 = vmatpush1.bf16.msra.mxu1 %v1900_v18  ;;  %1366 = vmatprep.subr.bf16.mxu0 %v2712_v52  ;;  %v385_v10 = vsel %vm370_vm0, %v2722_v6, %v331_v56  ;;  %v2735_v25 = vld [vmem:[#allocation18_spill] sm:$0xff] }
  0xa2   : > { %1770 = vmatprep.subr.bf16.mxu1 %v2712_v52  ;;  %990 = vmatmul.mubr.bf16.gmra.mrb[4].mxu0 %v1654_v46  ;;  %v1568_v60 = vcombine.low %v385_v10, %v388_v13  ;;  %v2733_v46 = vld [vmem:[#allocation19_spill] sm:$0xff] }
  0xa3   : > { %v743_v40 = vpop.permute.xlu1 %742  ;;  %1586 = vmatprep.mubr.msk.bf16.mxu1 %vm370_vm0, %v1569_v19  ;;  %1674 = vmatprep.mubr.msk.bf16.mxu0 %vm370_vm0, %v1657_v37 }
  0xa4   : > { %1367 = vmatpush1.bf16.msra.mxu0 %v1901_v38  ;;  %v797_v41 = vsel %vm370_vm0, %v2723_v49, %v743_v40  ;;  %v741_v50 = vpop.permute.xlu0 %740 }
  0xa5   : > { %1782 = vmatpush1.bf16.msra.mxu1 %v1901_v38  ;;  %1368 = vmatprep.subr.bf16.mxu0 %v2712_v52  ;;  %v794_v3 = vsel %vm370_vm0, %v2724_v58, %v741_v50 }
  0xa6   : > { %1771 = vmatprep.subr.bf16.mxu1 %v2712_v52  ;;  %v1656_v19 = vcombine.low %v794_v3, %v797_v41 }
  0xa7   : > { %v337_v26 = vpop.permute.xlu1 %336 }
  0xa8   : > { %1369 = vmatpush1.bf16.msra.mxu0 %v1904_v15  ;;  %595 = vmatmul.mubr.bf16.gmra.mrb[8].mxu1 %v1568_v60  ;;  %v335_v37 = vpop.permute.xlu0 %334  ;;  %v394_v61 = vsel %vm370_vm0, %v2725_v30, %v337_v26 }
  0xa9   : > { %1783 = vmatpush1.bf16.msra.mxu1 %v1904_v15  ;;  %1370 = vmatprep.subr.bf16.mxu0 %v2712_v52  ;;  %v391_v5 = vsel %vm370_vm0, %v2726_v1, %v335_v37 }
  0xaa   : > { %1772 = vmatprep.subr.bf16.mxu1 %v2712_v52  ;;  %998 = vmatmul.mubr.bf16.gmra.mrb[8].mxu0 %v1656_v19  ;;  %v1570_v14 = vcombine.low %v391_v5, %v394_v61 }
  0xab   : > { %v747_v29 = vpop.permute.xlu1 %746  ;;  %1587 = vmatprep.mubr.msk.bf16.mxu1 %vm370_vm0, %v1571_v51  ;;  %1675 = vmatprep.mubr.msk.bf16.mxu0 %vm370_vm0, %v1659_v33  ;;  %v1916_v51 = vld [vmem:[%s2673_s1 + $0x100] sm:$0xff]  }
  0xac   : > { %1371 = vmatpush1.bf16.msra.mxu0 %v1907_v62  ;;  %v803_v34 = vsel %vm370_vm0, %v2727_v63, %v747_v29  ;;  %v745_v53 = vpop.permute.xlu0 %744 }
  0xad   : > { %1784 = vmatpush1.bf16.msra.mxu1 %v1907_v62  ;;  %1372 = vmatprep.subr.bf16.mxu0 %v2712_v52  ;;  %v800_v48 = vsel %vm370_vm0, %v2728_v32, %v745_v53 }
  0xae   : > { %1773 = vmatprep.subr.bf16.mxu1 %v2712_v52  ;;  %v1658_v36 = vcombine.low %v800_v48, %v803_v34 }
  0xaf   : > { %v1146_v33 = vpop.permute.xlu1 %1145 }
  0xb0   : > { %1373 = vmatpush1.bf16.msra.mxu0 %v1910_v59  ;;  %603 = vmatmul.mubr.bf16.gmra.mrb[12].mxu1 %v1570_v14  ;;  %v1144_v31 = vpop.permute.xlu0 %1143  ;;  %v1196_v18 = vsel %vm370_vm0, %v2731_v16, %v1146_v33 }
  0xb1   : > { %1785 = vmatpush1.bf16.msra.mxu1 %v1910_v59  ;;  %1374 = vmatprep.subr.bf16.mxu0 %v2712_v52  ;;  %v1193_v47 = vsel %vm370_vm0, %v2732_v57, %v1144_v31 }
  0xb2   : > { %1774 = vmatprep.subr.bf16.mxu1 %v2712_v52  ;;  %1006 = vmatmul.mubr.bf16.gmra.mrb[12].mxu0 %v1658_v36  ;;  %v1740_v43 = vcombine.low %v1193_v47, %v1196_v18 }
  0xb3   : > { %1760 = vmatprep.mubr.msk.bf16.mxu0 %vm370_vm0, %v1741_v42  ;;  %1762 = vmatprep.mubr.msk.bf16.mxu1 %vm370_vm0, %v1745_v4  ;;  %v1154_v21 = vpop.permute.xlu1 %1153  ;;  %v1921_v42 = vld [vmem:[%s2673_s1 + $0x118] sm:$0xff]  }
  0xb4   : > { %1375 = vmatpush1.bf16.msra.mxu0 %v1913_v11  ;;  %v1152_v27 = vpop.permute.xlu0 %1151  ;;  %v1208_v9 = vsel %vm370_vm0, %v2729_v12, %v1154_v21 }
  0xb5   : > { %1786 = vmatpush1.bf16.msra.mxu1 %v1913_v11  ;;  %1376 = vmatprep.subr.bf16.mxu0 %v2712_v52  ;;  %v1205_v17 = vsel %vm370_vm0, %v2730_v2, %v1152_v27 }
  0xb6   : > { %1775 = vmatprep.subr.bf16.mxu1 %v2712_v52  ;;  %v1744_v8 = vcombine.low %v1205_v17, %v1208_v9 }
  0xb7   : > { %v1150_v4 = vpop.permute.xlu1 %1149 }
  0xb8   : > { %1377 = vmatpush1.bf16.msra.mxu0 %v1916_v51  ;;  %v1148_v7 = vpop.permute.xlu0 %1147 }
  0xb9   : > { %1787 = vmatpush1.bf16.msra.mxu1 %v1916_v51  ;;  %1378 = vmatprep.subr.bf16.mxu0 %v2712_v52  ;;  %v1199_v13 = vsel %vm370_vm0, %v2735_v25, %v1148_v7 }
  0xba   : > { %1776 = vmatprep.subr.bf16.mxu1 %v2712_v52 }
  0xbb   : > { %v1158_v55 = vpop.permute.xlu1 %1157 }
  0xbc   : > { %1379 = vmatpush1.bf16.msra.mxu0 %v1919_v0  ;;  %v1156_v28 = vpop.permute.xlu0 %1155  ;;  %v1214_v24 = vsel %vm370_vm0, %v2733_v46, %v1158_v55 }
  0xbd   : > { %1788 = vmatpush1.bf16.msra.mxu1 %v1919_v0  ;;  %1380 = vmatprep.subr.bf16.mxu0 %v2712_v52  ;;  %v1211_v38 = vsel %vm370_vm0, %v2314_v35, %v1156_v28 }
  0xbe   : > { %1777 = vmatprep.subr.bf16.mxu1 %v2712_v52  ;;  %v1746_v54 = vcombine.low %v1211_v38, %v1214_v24 }
  0xc0   : > { %1381 = vmatpush1.bf16.msra.mxu0 %v1920_v22 }
  0xc1   : > { %1789 = vmatpush1.bf16.msra.mxu1 %v1920_v22  ;;  %1382 = vmatprep.subr.bf16.mxu0 %v2712_v52 }
  0xc2   : > { %1778 = vmatprep.subr.bf16.mxu1 %v2712_v52  ;;  %v2734_v52 = vld [vmem:[#allocation17_spill] sm:$0xff] }
  0xc3   : > { %v1202_v56 = vsel %vm370_vm0, %v2734_v52, %v1150_v4 }
  0xc4   : > { %1383 = vmatpush1.bf16.msra.mxu0 %v1921_v42  ;;  %v1742_v45 = vcombine.low %v1199_v13, %v1202_v56 }
  0xc5   : > { %1790 = vmatpush1.bf16.msra.mxu1 %v1921_v42 }
  0xc7   : > { %1393 = vmatmul.mubr.bf16.vlgmr.msra.gmra.mrb[0].mxu0 %v1740_v43 }
  0xc8   : > { %1409 = vmatmul.mubr.bf16.vlgmr.msra.gmra.mrb[16].mxu1 %v1744_v8  ;;  %1761 = vmatprep.mubr.msk.bf16.mxu0 %vm370_vm0, %v1743_v20 }
  0xc9   : > { %1763 = vmatprep.mubr.msk.bf16.mxu1 %vm370_vm0, %v1747_v23 }
  0xcf   : > { %1401 = vmatmul.mubr.bf16.gmra.mrb[4].mxu0 %v1742_v45 }
  0xd0   : > { %1417 = vmatmul.mubr.bf16.gmra.mrb[20].mxu1 %v1746_v54 }
 0x16b   : > { %v580_v20 = vpop.f32.mrb[0].mxu1 }
 0x16c   : > { %v582_v6 = vpop.f32.mrb[1].mxu1  ;;  %v581_v51 = vadd.f32 %v1563_v39, %v580_v20 }
 0x16d   : > { %v583_v10 = vpop.f32.mrb[2].mxu1 }
 0x16e   : > { %v585_v40 = vpop.f32.mrb[3].mxu1  ;;  %v584_v31 = vadd.f32 %v1563_v39, %v583_v10 }
 0x173   : > { %v588_v35 = vpop.f32.mrb[4].mxu1 }
 0x174   : > { %v590_v15 = vpop.f32.mrb[5].mxu1  ;;  %v589_v55 = vadd.f32 %v1563_v39, %v588_v35 }
 0x175   : > { %v591_v60 = vpop.f32.mrb[6].mxu1 }
 0x176   : > { %v593_v44 = vpop.f32.mrb[7].mxu1  ;;  %v592_v38 = vadd.f32 %v1563_v39, %v591_v60 }
 0x17b   : > { %v596_v23 = vpop.f32.mrb[8].mxu1 }
 0x17c   : > { %v597_v49 = vadd.f32 %v1563_v39, %v596_v23  ;;  %v598_v41 = vpop.f32.mrb[9].mxu1 }
 0x17d   : > { %v599_v50 = vpop.f32.mrb[10].mxu1  ;;  %v999_v58 = vpop.f32.mrb[8].mxu0 }
 0x17e   : > { %v600_v3 = vadd.f32 %v1563_v39, %v599_v50  ;;  %v601_v19 = vpop.f32.mrb[11].mxu1  ;;  %v1018_v26 = vadd.f32 %v999_v58, %v597_v49  ;;  %v1001_v62 = vpop.f32.mrb[9].mxu0 }
 0x17f   : > { %v1002_v37 = vpop.f32.mrb[10].mxu0 }
 0x180   : > { %v1019_v30 = vadd.f32 %v1002_v37, %v600_v3  ;;  %v1004_v61 = vpop.f32.mrb[11].mxu0 }
 0x183   : > { %v604_v1 = vpop.f32.mrb[12].mxu1 }
 0x184   : > { %v605_v5 = vadd.f32 %v1563_v39, %v604_v1  ;;  %v606_v29 = vpop.f32.mrb[13].mxu1 }
 0x185   : > { %v607_v59 = vpop.f32.mrb[14].mxu1  ;;  %v1007_v14 = vpop.f32.mrb[12].mxu0 }
 0x186   : > { %v608_v63 = vadd.f32 %v1563_v39, %v607_v59  ;;  %v609_v34 = vpop.f32.mrb[15].mxu1  ;;  %v1020_v53 = vadd.f32 %v1007_v14, %v605_v5  ;;  %v1009_v32 = vpop.f32.mrb[13].mxu0 }
 0x187   : > { %v1010_v48 = vpop.f32.mrb[14].mxu0 }
 0x188   : > { %v1021_v36 = vadd.f32 %v1010_v48, %v608_v63  ;;  %v1012_v11 = vpop.f32.mrb[15].mxu0 }
 0x19a   : > { %v1394_v33 = vpop.f32.mrb[0].mxu0 }
 0x19b   : > { %v1792_v0 = vadd.f32 %v1394_v33, %v581_v51  ;;  %v1410_v21 = vpop.f32.mrb[16].mxu1  ;;  %v1396_v27 = vpop.f32.mrb[1].mxu0 }
 0x19c   : > { %v1429_v22 = vadd.f32 %v1410_v21, %v1018_v26  ;;  %v1412_v42 = vpop.f32.mrb[17].mxu1  ;;  %v1397_v4 = vpop.f32.mrb[2].mxu0 }
 0x19d   : > { %v1433_v7 = vmax.f32 %v1792_v0, 0.0  ;;  %v1794_v12 = vadd.f32 %v1397_v4, %v584_v31  ;;  %v1413_v9 = vpop.f32.mrb[18].mxu1  ;;  %v1399_v2 = vpop.f32.mrb[3].mxu0 }
 0x19e   : > { %v1437_v17 = vmax.f32 %v1429_v22, 0.0  ;;  %v1430_v16 = vadd.f32 %v1413_v9, %v1019_v30  ;;  %v1415_v18 = vpop.f32.mrb[19].mxu1 }
 0x19f   : > { %v1441_v57 = vpack.c.bf16 %v1433_v7, %v1433_v7  ;;  %v1434_v47 = vmax.f32 %v1794_v12, 0.0 }
 0x1a0   : > { %v1445_v8 = vpack.c.bf16 %v1437_v17, %v1437_v17  ;;  %v1438_v43 = vmax.f32 %v1430_v16, 0.0 }
 0x1a1   : > { %1450 = vst.msk [vmem:[%s2645_s30] sm:$0xf] %vm1449_vm1, %v1441_v57  ;;  %v1442_v28 = vpack.c.bf16 %v1434_v47, %v1434_v47 }
 0x1a2   : > { %1454 = vst.msk [vmem:[%s2645_s30 + $0x10] sm:$0xf] %vm1449_vm1, %v1445_v8  ;;  %v1446_v46 = vpack.c.bf16 %v1438_v43, %v1438_v43  ;;  %v1402_v24 = vpop.f32.mrb[4].mxu0 }
 0x1a3   : > { %1451 = vst.msk [vmem:[%s2645_s30 + $0x4] sm:$0xf] %vm1449_vm1, %v1442_v28  ;;  %v1796_v52 = vadd.f32 %v1402_v24, %v589_v55  ;;  %v1418_v56 = vpop.f32.mrb[20].mxu1  ;;  %v1404_v25 = vpop.f32.mrb[5].mxu0 }
 0x1a4   : > { %1455 = vst.msk [vmem:[%s2645_s30 + $0x14] sm:$0xf] %vm1449_vm1, %v1446_v46  ;;  %v1431_v13 = vadd.f32 %v1418_v56, %v1020_v53  ;;  %v1420_v54 = vpop.f32.mrb[21].mxu1  ;;  %v1405_v45 = vpop.f32.mrb[6].mxu0 }
 0x1a5   : > { %v1435_v20 = vmax.f32 %v1796_v52, 0.0  ;;  %v1798_v6 = vadd.f32 %v1405_v45, %v592_v38  ;;  %v1421_v10 = vpop.f32.mrb[22].mxu1  ;;  %v1407_v40 = vpop.f32.mrb[7].mxu0 }
 0x1a6   : > { %v1439_v35 = vmax.f32 %v1431_v13, 0.0  ;;  %v1432_v15 = vadd.f32 %v1421_v10, %v1021_v36  ;;  %v1423_v60 = vpop.f32.mrb[23].mxu1 }
 0x1a7   : > { %v1443_v44 = vpack.c.bf16 %v1435_v20, %v1435_v20  ;;  %v1436_v39 = vmax.f32 %v1798_v6, 0.0 }
 0x1a8   : > { %v1447_v23 = vpack.c.bf16 %v1439_v35, %v1439_v35  ;;  %v1440_v49 = vmax.f32 %v1432_v15, 0.0 }
 0x1a9   : > { %1452 = vst.msk [vmem:[%s2645_s30 + $0x8] sm:$0xf] %vm1449_vm1, %v1443_v44  ;;  %v1444_v41 = vpack.c.bf16 %v1436_v39, %v1436_v39 }
 0x1aa   : > { %1456 = vst.msk [vmem:[%s2645_s30 + $0x18] sm:$0xf] %vm1449_vm1, %v1447_v23  ;;  %v1448_v50 = vpack.c.bf16 %v1440_v49, %v1440_v49 }
 0x1ab   : > { %1453 = vst.msk [vmem:[%s2645_s30 + $0xc] sm:$0xf] %vm1449_vm1, %v1444_v41 }
 0x1ac   : > { %1457 = vst.msk [vmem:[%s2645_s30 + $0x1c] sm:$0xf] %vm1449_vm1, %v1448_v50 }
 0x1ad PF: > { %s13_s14 = sadd.s32 1, %s1952_s14   ;;  %s2736_s12 = smov %s1948_s13 }
 0x1ae   : > { %p10_p5 = scmp.ge.s32.totalorder %s13_s14, 4   ;;  %s2737_s13 = smov %s2739_s15 }
 0x1b0   :  { %12 = sbr.rel (!%p10_p5) target bundleno = 2 (0x2), region = 66 }

// kernel: feature_map_convolution_forward.5
= control target key start
LH: loop header
LB: loop body
LE: loop exit
PB: predicated region body
PF: predicated region fallthrough
CT: control target
= control target key end

     0   :  { %s2410_s12 = smov 0   ;;  %s2412_s13 = smov 0   ;;  %s3237_s0 = inlined_call_operand.vmem [shape: bf16[2,12,10,64], index: 0, kind: input, shape index: {}]   ;;  %s3238_s1 = inlined_call_operand.vmem [shape: bf16[3,192,128], index: 1, kind: input, shape index: {}]   ;;  %s3239_s2 = inlined_call_operand.vmem [shape: f32[1,128], index: 2, kind: input, shape index: {}]   ;;  %s3240_s3 = inlined_call_operand.vmem [shape: bf16[2,4,4,128], index: 3, kind: output, shape index: {}]  }
   0x1   :  { %s2414_s14 = smov 0  }
   0x2 LB: > { %s25_s15 = sadd.s32 1, %s2381_s13  ;;  %p1927_p0 = scmp.ge.s32.totalorder %s2385_s14, 1  ;;  %s2385_s14 = sphi %s2414_s14, %s13_s14   ;;  %s2381_s13 = sphi %s2412_s13, %s3347_s13   ;;  %s2377_s12 = sphi %s2410_s12, %s3346_s12  }
   0x3   : > { %p27_p1 = scmp.ge.s32.totalorder %s25_s15, 2  ;;  %p155_p2 = scmp.lt.s32.totalorder %s2385_s14, 3 }
   0x5   : > { %s3349_s15 = smov (%p27_p1, %s25_s15), 0  ;;  %p156_p3 = pnand %p1927_p0, %p155_p2 }
   0x7   : > { %159 = sbr.rel (%p156_p3) target bundleno = 465 (0x1d1), region = 32 }
   0xe   : > { %p185_p4 = scmp.lt.s32.totalorder %s2377_s12, 1  ;;  %v2297_v0 = vld [vmem:[%s3238_s1] sm:$0xff]   ;;  %v3245_v1 = vmov 0   ;;  %v2299_v3 = vld [vmem:[%s3238_s1 + $0x8] sm:$0xff]   ;;  %v2301_v5 = vld [vmem:[%s3238_s1 + $0x10] sm:$0xff]   ;;  %s2388_s9 = smov 64  }
   0xf   : > { %606 = vmatprep.subr.bf16.mxu1 %v3245_v1  ;;  %1077 = vmatprep.subr.bf16.mxu0 %v3245_v1  ;;  %v2298_v2 = vld [vmem:[%s3238_s1 + $0x60] sm:$0xff]   ;;  %v2300_v4 = vld [vmem:[%s3238_s1 + $0x68] sm:$0xff]   ;;  %v2302_v6 = vld [vmem:[%s3238_s1 + $0x70] sm:$0xff]   ;;  %vm412_vm0 = vcmask 523264  }
  0x10   : > { %s3351_s12 = smov (!%p185_p4, %s2377_s12), 1  ;;  %607 = vmatpush1.bf16.msra.mxu1 %v2297_v0  ;;  %1078 = vmatpush1.bf16.msra.mxu0 %v2298_v2  ;;  %v2303_v34 = vld [vmem:[%s3238_s1 + $0x18] sm:$0xff]   ;;  %v2305_v57 = vld [vmem:[%s3238_s1 + $0x20] sm:$0xff]  }
  0x11   : > { %608 = vmatprep.subr.bf16.mxu1 %v3245_v1  ;;  %s2239_s22 = smul.u32 96, %s3351_s12  ;;  %1079 = vmatprep.subr.bf16.mxu0 %v3245_v1  ;;  %v2304_v45 = vld [vmem:[%s3238_s1 + $0x78] sm:$0xff]   ;;  %v2306_v0 = vld [vmem:[%s3238_s1 + $0x80] sm:$0xff]   ;;  %s2183_s26 = sshll.u32 %s3351_s12, 3 }
  0x12   : > { %s199_s30 = scalar_lea.vmem %s3240_s3, %s2183_s26 }
  0x13   : > { %s2453_s29 = scalar_lea.vmem %s3237_s0, %s2239_s22 }
  0x14   : > { %609 = vmatpush1.bf16.msra.mxu1 %v2299_v3  ;;  %v2459_v7 = vld [vmem:[%s2453_s29 + $0x8] sm:$0xf]  ;;  %v2462_v8 = vld [vmem:[%s2453_s29 + $0xc] sm:$0x1]  ;;  %v2465_v9 = vld [vmem:[%s2453_s29] sm:$0xf]  ;;  %1080 = vmatpush1.bf16.msra.mxu0 %v2300_v4 }
  0x15   : > { %3276 = vst [vmem:[#allocation4_spill] sm:$0xff] %v2459_v7  ;;  %3277 = vst [vmem:[#allocation5_spill] sm:$0xff] %v2465_v9  ;;  %610 = vmatprep.subr.bf16.mxu1 %v3245_v1  ;;  %v2009_v10 = vcombine.low %v2459_v7, %v2462_v8  ;;  %v2471_v11 = vld [vmem:[%s2453_s29 + $0x4] sm:$0x1]  ;;  %v2474_v12 = vld [vmem:[%s2453_s29 + $0x10] sm:$0xf]  ;;  %1081 = vmatprep.subr.bf16.mxu0 %v3245_v1 }
  0x16   : > { %3278 = vst [vmem:[#allocation6_spill] sm:$0xff] %v2474_v12  ;;  %v2477_v13 = vld [vmem:[%s2453_s29 + $0x14] sm:$0x1]  ;;  %v1931_v14 = vcombine.low %v2465_v9, %v2471_v11  ;;  %v2484_v16 = vld [vmem:[%s2453_s29 + $0x8] sm:$0xf] }
  0x17   : > { %v2010_v15 = vcombine.low %v2474_v12, %v2477_v13  ;;  %3279 = vst [vmem:[#allocation7_spill] sm:$0xff] %v2484_v16  ;;  %v2487_v17 = vld [vmem:[%s2453_s29 + $0xc] sm:$0x1]  ;;  %v2490_v18 = vld [vmem:[%s2453_s29 + $0x18] sm:$0xf]  ;;  %v761_v19 = vshrl.u32 %v2009_v10, 16 }
  0x18   : > { %3280 = vst [vmem:[#allocation8_spill] sm:$0xff] %v2490_v18  ;;  %v763_v20 = vshll.u32 %v2009_v10, 16  ;;  %v1932_v21 = vcombine.low %v2484_v16, %v2487_v17  ;;  %v2496_v22 = vld [vmem:[%s2453_s29 + $0x1c] sm:$0x1]  ;;  %v2499_v23 = vld [vmem:[%s2453_s29 + $0x20] sm:$0xf]  ;;  %611 = vmatpush1.bf16.msra.mxu1 %v2301_v5  ;;  %1082 = vmatpush1.bf16.msra.mxu0 %v2302_v6 }
  0x19   : > { %3281 = vst [vmem:[#allocation9_spill] sm:$0xff] %v2499_v23  ;;  %v283_v24 = vshrl.u32 %v1931_v14, 16  ;;  %v285_v25 = vshll.u32 %v1931_v14, 16  ;;  %v768_v26 = vshrl.u32 %v2010_v15, 16  ;;  %v770_v27 = vshll.u32 %v2010_v15, 16  ;;  %612 = vmatprep.subr.bf16.mxu1 %v3245_v1  ;;  %1083 = vmatprep.subr.bf16.mxu0 %v3245_v1  ;;  %v2307_v4 = vld [vmem:[%s3238_s1 + $0x28] sm:$0xff]  }
  0x1a   : > { %v2502_v28 = vld [vmem:[%s2453_s29 + $0x24] sm:$0x1]  ;;  %v765_v29 = vrot.slane %v763_v20, 1  ;;  %v290_v30 = vshrl.u32 %v1932_v21, 16  ;;  %v292_v31 = vshll.u32 %v1932_v21, 16  ;;  %v2011_v32 = vcombine.low %v2490_v18, %v2496_v22 }
  0x1b   : > { %v2508_v33 = vld [vmem:[%s2453_s29 + $0x28] sm:$0xf]  ;;  %v287_v35 = vrot.slane %v285_v25, 1  ;;  %v772_v36 = vrot.slane %v770_v27, 1  ;;  %v2012_v37 = vcombine.low %v2499_v23, %v2502_v28  ;;  %v2516_v38 = vld [vmem:[%s2453_s29 + $0x2c] sm:$0x1] }
  0x1c   : > { %3282 = vst [vmem:[#allocation10_spill] sm:$0xff] %v2508_v33  ;;  %v2519_v39 = vld [vmem:[%s2453_s29 + $0x30] sm:$0xf]  ;;  %v766_v40 = vor.u32 %v765_v29, %v761_v19  ;;  %v294_v41 = vrot.slane %v292_v31, 1  ;;  %v775_v42 = vshrl.u32 %v2011_v32, 16  ;;  %v777_v43 = vshll.u32 %v2011_v32, 16  ;;  %613 = vmatpush1.bf16.msra.mxu1 %v2303_v34  ;;  %1084 = vmatpush1.bf16.msra.mxu0 %v2304_v45 }
  0x1d   : > { %3283 = vst [vmem:[#allocation11_spill] sm:$0xff] %v2519_v39  ;;  %v2523_v44 = vld [vmem:[%s2453_s29 + $0x34] sm:$0x1]  ;;  %v288_v46 = vor.u32 %v287_v35, %v283_v24  ;;  %v782_v47 = vshrl.u32 %v2012_v37, 16  ;;  %v784_v48 = vshll.u32 %v2012_v37, 16  ;;  %614 = vmatprep.subr.bf16.mxu1 %v3245_v1  ;;  %v773_v51 = vor.u32 %v772_v36, %v768_v26  ;;  %1085 = vmatprep.subr.bf16.mxu0 %v3245_v1  ;;  %v2308_v25 = vld [vmem:[%s3238_s1 + $0x88] sm:$0xff]  }
  0x1e   : > { %v2529_v49 = vld [vmem:[%s2453_s29 + $0x10] sm:$0xf]  ;;  %v2532_v50 = vld [vmem:[%s2453_s29 + $0x14] sm:$0x1]  ;;  %830 = vrot.lane.b32.xlu0 %v766_v40, %s2388_s9  ;;  %v779_v52 = vrot.slane %v777_v43, 1  ;;  %v2013_v53 = vcombine.low %v2508_v33, %v2516_v38  ;;  %v2014_v54 = vcombine.low %v2519_v39, %v2523_v44  ;;  %v295_v58 = vor.u32 %v294_v41, %v290_v30 }
  0x1f   : > { %3284 = vst [vmem:[#allocation12_spill] sm:$0xff] %v2529_v49  ;;  %v2541_v55 = vld [vmem:[%s2453_s29 + $0x18] sm:$0xf]  ;;  %v2544_v56 = vld [vmem:[%s2453_s29 + $0x1c] sm:$0x1]  ;;  %352 = vrot.lane.b32.xlu1 %v288_v46, %s2388_s9  ;;  %v786_v59 = vrot.slane %v784_v48, 1  ;;  %v2552_v60 = vcombine.low %v2529_v49, %v2532_v50 }
  0x20   : > { %3285 = vst [vmem:[#allocation13_spill] sm:$0xff] %v2541_v55  ;;  %v2556_v61 = vcombine.low %v2541_v55, %v2544_v56  ;;  %v2559_v62 = vld [vmem:[%s2453_s29 + $0x38] sm:$0xf]  ;;  %v2562_v63 = vld [vmem:[%s2453_s29 + $0x3c] sm:$0x1]  ;;  %v791_v2 = vshll.u32 %v2013_v53, 16  ;;  %615 = vmatpush1.bf16.msra.mxu1 %v2305_v57  ;;  %v780_v5 = vor.u32 %v779_v52, %v775_v42  ;;  %1086 = vmatpush1.bf16.msra.mxu0 %v2306_v0 }
  0x21   : > { %3286 = vst [vmem:[#allocation14_spill] sm:$0xff] %v2559_v62  ;;  %v2569_v3 = vld [vmem:[%s2453_s29 + $0x40] sm:$0xf]  ;;  %v789_v6 = vshrl.u32 %v2013_v53, 16  ;;  %v798_v10 = vshll.u32 %v2014_v54, 16  ;;  %v299_v14 = vshll.u32 %v2552_v60, 16  ;;  %616 = vmatprep.subr.bf16.mxu1 %v3245_v1  ;;  %v2583_v24 = vcombine.low %v2559_v62, %v2562_v63  ;;  %1087 = vmatprep.subr.bf16.mxu0 %v3245_v1 }
  0x22   : > { %3287 = vst [vmem:[#allocation15_spill] sm:$0xff] %v2569_v3  ;;  %v2576_v15 = vld [vmem:[%s2453_s29 + $0x44] sm:$0x1]  ;;  %832 = vrot.lane.b32.xlu0 %v773_v51, %s2388_s9  ;;  %v793_v19 = vrot.slane %v791_v2, 1  ;;  %v796_v20 = vshrl.u32 %v2014_v54, 16  ;;  %v297_v21 = vshrl.u32 %v2552_v60, 16  ;;  %v787_v26 = vor.u32 %v786_v59, %v782_v47 }
  0x23   : > { %354 = vrot.lane.b32.xlu1 %v295_v58, %s2388_s9  ;;  %v800_v27 = vrot.slane %v798_v10, 1  ;;  %v306_v29 = vshll.u32 %v2556_v61, 16  ;;  %v2592_v30 = vcombine.low %v2569_v3, %v2576_v15  ;;  %v2595_v31 = vld [vmem:[%s2453_s29 + $0x20] sm:$0xf]  ;;  %v2598_v32 = vld [vmem:[%s2453_s29 + $0x24] sm:$0x1] }
  0x24   : > { %3288 = vst [vmem:[#allocation16_spill] sm:$0xff] %v2595_v31  ;;  %v304_v34 = vshrl.u32 %v2556_v61, 16  ;;  %v2603_v35 = vld [vmem:[%s2453_s29 + $0x28] sm:$0xf]  ;;  %v2606_v36 = vld [vmem:[%s2453_s29 + $0x2c] sm:$0x1]  ;;  %617 = vmatpush1.bf16.msra.mxu1 %v2307_v4  ;;  %v794_v45 = vor.u32 %v793_v19, %v789_v6  ;;  %v2623_v47 = vcombine.low %v2595_v31, %v2598_v32  ;;  %1088 = vmatpush1.bf16.msra.mxu0 %v2308_v25 }
  0x25   : > { %3289 = vst [vmem:[#allocation17_spill] sm:$0xff] %v2603_v35  ;;  %v2309_v37 = vld [vmem:[%s3238_s1 + $0x30] sm:$0xff]   ;;  %v301_v40 = vrot.slane %v299_v14, 1  ;;  %v805_v41 = vshll.u32 %v2583_v24, 16  ;;  %v2613_v42 = vld [vmem:[%s2453_s29 + $0x48] sm:$0xf]  ;;  %618 = vmatprep.subr.bf16.mxu1 %v3245_v1  ;;  %v801_v53 = vor.u32 %v800_v27, %v796_v20  ;;  %v2637_v57 = vcombine.low %v2603_v35, %v2606_v36  ;;  %1089 = vmatprep.subr.bf16.mxu0 %v3245_v1 }
  0x26   : > { %3290 = vst [vmem:[#allocation18_spill] sm:$0xff] %v2613_v42  ;;  %v2616_v43 = vld [vmem:[%s2453_s29 + $0x4c] sm:$0x1]  ;;  %834 = vrot.lane.b32.xlu0 %v780_v5, %s2388_s9  ;;  %v812_v46 = vshll.u32 %v2592_v30, 16  ;;  %v2626_v48 = vld [vmem:[%s2453_s29 + $0x50] sm:$0xf] }
  0x27   : > { %3291 = vst [vmem:[#allocation19_spill] sm:$0xff] %v2626_v48  ;;  %v2629_v51 = vld [vmem:[%s2453_s29 + $0x54] sm:$0x1]  ;;  %836 = vrot.lane.b32.xlu1 %v787_v26, %s2388_s9  ;;  %v308_v54 = vrot.slane %v306_v29, 1  ;;  %v2641_v58 = vcombine.low %v2613_v42, %v2616_v43  ;;  %v2644_v59 = vld [vmem:[%s2453_s29 + $0x30] sm:$0xf]  ;;  %v302_v5 = vor.u32 %v301_v40, %v297_v21 }
  0x28   : > { %v2310_v52 = vld [vmem:[%s3238_s1 + $0x90] sm:$0xff]   ;;  %3292 = vst [vmem:[#allocation20_spill] sm:$0xff] %v2644_v59  ;;  %v313_v61 = vshll.u32 %v2623_v47, 16  ;;  %v2653_v0 = vcombine.low %v2626_v48, %v2629_v51  ;;  %v2656_v2 = vld [vmem:[%s2453_s29 + $0x38] sm:$0xf]  ;;  %619 = vmatpush1.bf16.msra.mxu1 %v2309_v37  ;;  %v803_v6 = vshrl.u32 %v2583_v24, 16 }
  0x29   : > { %v2647_v60 = vld [vmem:[%s2453_s29 + $0x34] sm:$0x1]  ;;  %3293 = vst [vmem:[#allocation21_spill] sm:$0xff] %v2656_v2  ;;  %v2311_v4 = vld [vmem:[%s3238_s1 + $0x38] sm:$0xff]   ;;  %v807_v10 = vrot.slane %v805_v41, 1  ;;  %v810_v14 = vshrl.u32 %v2592_v30, 16  ;;  %620 = vmatprep.subr.bf16.mxu1 %v3245_v1  ;;  %1090 = vmatpush1.bf16.msra.mxu0 %v2310_v52  ;;  %v309_v29 = vor.u32 %v308_v54, %v304_v34 }
  0x2a   : > { %v2664_v19 = vld [vmem:[%s2453_s29 + $0x3c] sm:$0x1]  ;;  %838 = vrot.lane.b32.xlu0 %v794_v45, %s2388_s9  ;;  %v814_v20 = vrot.slane %v812_v46, 1  ;;  %v311_v25 = vshrl.u32 %v2623_v47, 16  ;;  %v318_v26 = vshrl.u32 %v2637_v57, 16  ;;  %v2672_v21 = vcombine.low %v2644_v59, %v2647_v60  ;;  %v2313_v27 = vld [vmem:[%s3238_s1 + $0x40] sm:$0xff]   ;;  %1091 = vmatprep.subr.bf16.mxu0 %v3245_v1 }
  0x2b   : > { %v2312_v24 = vld [vmem:[%s3238_s1 + $0x98] sm:$0xff]   ;;  %840 = vrot.lane.b32.xlu1 %v801_v53, %s2388_s9  ;;  %v320_v30 = vshll.u32 %v2637_v57, 16  ;;  %v819_v37 = vshll.u32 %v2641_v58, 16  ;;  %v2685_v40 = vcombine.low %v2656_v2, %v2664_v19  ;;  %v2688_v41 = vld [vmem:[%s2453_s29 + $0x10] sm:$0xf]  ;;  %v315_v46 = vrot.slane %v313_v61, 1 }
  0x2c   : > { %3294 = vst [vmem:[#allocation22_spill] sm:$0xff] %v2688_v41  ;;  %v2691_v45 = vld [vmem:[%s2453_s29 + $0x14] sm:$0x1]  ;;  %v817_v47 = vshrl.u32 %v2641_v58, 16  ;;  %v826_v34 = vshll.u32 %v2653_v0, 16  ;;  %v327_v52 = vshll.u32 %v2672_v21, 16  ;;  %621 = vmatpush1.bf16.msra.mxu1 %v2311_v4  ;;  %v808_v58 = vor.u32 %v807_v10, %v803_v6 }
  0x2d   : > { %v2698_v53 = vld [vmem:[%s2453_s29 + $0x18] sm:$0xf]  ;;  %v2701_v54 = vld [vmem:[%s2453_s29 + $0x1c] sm:$0x1]  ;;  %v2704_v57 = vld [vmem:[%s2453_s29 + $0x40] sm:$0xf]  ;;  %622 = vmatprep.subr.bf16.mxu1 %v3245_v1  ;;  %v2714_v59 = vcombine.low %v2688_v41, %v2691_v45  ;;  %1092 = vmatpush1.bf16.msra.mxu0 %v2312_v24 }
  0x2e   : > { %3295 = vst [vmem:[#allocation23_spill] sm:$0xff] %v2698_v53  ;;  %3296 = vst [vmem:[#allocation24_spill] sm:$0xff] %v2704_v57  ;;  %v2707_v2 = vld [vmem:[%s2453_s29 + $0x44] sm:$0x1]  ;;  %356 = vrot.lane.b32.xlu0 %v302_v5, %s2388_s9  ;;  %v334_v61 = vshll.u32 %v2685_v40, 16  ;;  %v815_v5 = vor.u32 %v814_v20, %v810_v14  ;;  %v322_v6 = vrot.slane %v320_v30, 1  ;;  %v2736_v24 = vcombine.low %v2698_v53, %v2701_v54 }
  0x2f   : > { %v2717_v4 = vld [vmem:[%s2453_s29 + $0x48] sm:$0xf]  ;;  %v2720_v48 = vld [vmem:[%s2453_s29 + $0x4c] sm:$0x1]  ;;  %v2314_v42 = vld [vmem:[%s3238_s1 + $0xa0] sm:$0xff]   ;;  %358 = vrot.lane.b32.xlu1 %v309_v29, %s2388_s9  ;;  %v821_v10 = vrot.slane %v819_v37, 1  ;;  %v2740_v3 = vcombine.low %v2704_v57, %v2707_v2 }
  0x30   : > { %3297 = vst [vmem:[#allocation25_spill] sm:$0xff] %v2717_v4  ;;  %v2727_v1 = vld [vmem:[%s2453_s29 + $0x20] sm:$0xf]  ;;  %v2730_v41 = vld [vmem:[%s2453_s29 + $0x24] sm:$0x1]  ;;  %v3299_v35 = vmov 0   ;;  %v2744_v14 = vcombine.low %v2717_v4, %v2720_v48  ;;  %623 = vmatpush1.bf16.msra.mxu1 %v2313_v27 }
  0x31   : > { %3298 = vst [vmem:[#allocation26_spill] sm:$0xff] %v2727_v1  ;;  %1093 = vmatprep.subr.bf16.mxu0 %v3299_v35  ;;  %v824_v31 = vshrl.u32 %v2653_v0, 16  ;;  %v2747_v20 = vld [vmem:[%s2453_s29 + $0x28] sm:$0xf]  ;;  %v316_v0 = vor.u32 %v315_v46, %v311_v25  ;;  %v828_v30 = vrot.slane %v826_v34, 1  ;;  %v325_v37 = vshrl.u32 %v2672_v21, 16  ;;  %624 = vmatprep.subr.bf16.mxu1 %v3299_v35 }
  0x32   : > { %3300 = vst [vmem:[#allocation27_spill] sm:$0xff] %v2747_v20  ;;  %v2315_v29 = vld [vmem:[%s3238_s1 + $0x48] sm:$0xff]   ;;  %v329_v53 = vrot.slane %v327_v52, 1  ;;  %842 = vrot.lane.b32.xlu0 %v808_v58, %s2388_s9  ;;  %v2759_v4 = vrot.slane %v334_v61, 1  ;;  %v1244_v62 = vshll.u32 %v2714_v59, 16  ;;  %v2764_v25 = vcombine.low %v2727_v1, %v2730_v41  ;;  %1094 = vmatpush1.bf16.msra.mxu0 %v2314_v42  ;;  %v2317_v46 = vld [vmem:[%s3238_s1 + $0x50] sm:$0xff]  }
  0x33   : > { %v2754_v57 = vld [vmem:[%s2453_s29 + $0x2c] sm:$0x1]  ;;  %844 = vrot.lane.b32.xlu1 %v815_v5, %s2388_s9  ;;  %v323_v34 = vor.u32 %v322_v6, %v318_v26  ;;  %v822_v52 = vor.u32 %v821_v10, %v817_v47  ;;  %v2778_v61 = vld [vmem:[%s2453_s29 + $0x40] sm:$0xf]  ;;  %v2781_v42 = vld [vmem:[%s2453_s29 + $0x44] sm:$0x1]  ;;  %1095 = vmatprep.subr.bf16.mxu0 %v3299_v35 }
  0x34   : > { %3301 = vst [vmem:[#allocation28_spill] sm:$0xff] %v2754_v57  ;;  %v2316_v21 = vld [vmem:[%s3238_s1 + $0xa8] sm:$0xff]   ;;  %v2775_v58 = vcombine.low %v2747_v20, %v2754_v57  ;;  %3302 = vst [vmem:[#allocation29_spill] sm:$0xff] %v2778_v61  ;;  %v1251_v5 = vshll.u32 %v2736_v24, 16  ;;  %v341_v26 = vshll.u32 %v2740_v3, 16  ;;  %v348_v47 = vshll.u32 %v2744_v14, 16  ;;  %625 = vmatpush1.bf16.msra.mxu1 %v2315_v29 }
  0x35   : > { %v2784_v27 = vld [vmem:[%s2453_s29 + $0x48] sm:$0xf]  ;;  %v2792_v6 = vld [vmem:[%s2453_s29 + $0x4c] sm:$0x1]  ;;  %v2318_v10 = vld [vmem:[%s3238_s1 + $0xb0] sm:$0xff]   ;;  %v829_v20 = vor.u32 %v828_v30, %v824_v31  ;;  %v330_v55 = vor.u32 %v329_v53, %v325_v37  ;;  %v1249_v49 = vshrl.u32 %v2736_v24, 16  ;;  %626 = vmatprep.subr.bf16.mxu1 %v3299_v35  ;;  %v2811_v31 = vcombine.low %v2778_v61, %v2781_v42 }
  0x36   : > { %3303 = vst [vmem:[#allocation30_spill] sm:$0xff] %v2784_v27  ;;  %v2800_v39 = vld [vmem:[%s2453_s29 + $0x30] sm:$0xf]  ;;  %v2803_v33 = vld [vmem:[%s2453_s29 + $0x34] sm:$0x1]  ;;  %360 = vrot.lane.b32.xlu0 %v316_v0, %s2388_s9  ;;  %v1258_v29 = vshll.u32 %v2764_v25, 16  ;;  %v2815_v53 = vcombine.low %v2784_v27, %v2792_v6  ;;  %1096 = vmatpush1.bf16.msra.mxu0 %v2316_v21 }
  0x37   : > { %3304 = vst [vmem:[#allocation31_spill] sm:$0xff] %v2800_v39  ;;  %3305 = vst [vmem:[#allocation32_spill] sm:$0xff] %v2803_v33  ;;  %v1265_v23 = vshll.u32 %v2775_v58, 16  ;;  %v2818_v24 = vld [vmem:[%s2453_s29 + $0x38] sm:$0xf]  ;;  %362 = vrot.lane.b32.xlu1 %v323_v34, %s2388_s9  ;;  %v1246_v37 = vrot.slane %v1244_v62, 1  ;;  %v2830_v27 = vcombine.low %v2800_v39, %v2803_v33  ;;  %1097 = vmatprep.subr.bf16.mxu0 %v3299_v35 }
  0x38   : > { %3306 = vst [vmem:[#allocation33_spill] sm:$0xff] %v2818_v24  ;;  %v2821_v30 = vld [vmem:[%s2453_s29 + $0x3c] sm:$0x1]  ;;  %v346_v1 = vshrl.u32 %v2744_v14, 16  ;;  %v2837_v18 = vld [vmem:[%s2453_s29 + $0x50] sm:$0xf]  ;;  %627 = vmatpush1.bf16.msra.mxu1 %v2317_v46 }
  0x39   : > { %3307 = vst [vmem:[#allocation34_spill] sm:$0xff] %v2821_v30  ;;  %v2319_v0 = vld [vmem:[%s3238_s1 + $0x58] sm:$0xff]   ;;  %v2834_v61 = vcombine.low %v2818_v24, %v2821_v30  ;;  %3308 = vst [vmem:[#allocation35_spill] sm:$0xff] %v2837_v18  ;;  %v2840_v21 = vld [vmem:[%s2453_s29 + $0x54] sm:$0x1]  ;;  %v1253_v16 = vrot.slane %v1251_v5, 1  ;;  %628 = vmatprep.subr.bf16.mxu1 %v3299_v35 }
  0x3a   : > { %3309 = vst [vmem:[#allocation36_spill] sm:$0xff] %v2840_v21  ;;  %v343_v34 = vrot.slane %v341_v26, 1  ;;  %v350_v62 = vrot.slane %v348_v47, 1  ;;  %v1286_v14 = vshll.u32 %v2811_v31, 16  ;;  %v2845_v12 = vld [vmem:[%s2453_s29 + $0x58] sm:$0xf]  ;;  %846 = vrot.lane.b32.xlu0 %v822_v52, %s2388_s9  ;;  %v2859_v46 = vcombine.low %v2837_v18, %v2840_v21  ;;  %1098 = vmatpush1.bf16.msra.mxu0 %v2318_v10 }
  0x3b   : > { %v1256_v39 = vshrl.u32 %v2764_v25, 16  ;;  %v1263_v7 = vshrl.u32 %v2775_v58, 16  ;;  %v1293_v24 = vshll.u32 %v2815_v53, 16  ;;  %v1272_v9 = vshll.u32 %v2830_v27, 16  ;;  %v2852_v30 = vld [vmem:[%s2453_s29 + $0x5c] sm:$0x1]  ;;  %848 = vrot.lane.b32.xlu1 %v829_v20, %s2388_s9  ;;  %1099 = vmatprep.subr.bf16.mxu0 %v3299_v35 }
  0x3c   : > { %v1260_v5 = vrot.slane %v1258_v29, 1  ;;  %v1267_v26 = vrot.slane %v1265_v23, 1  ;;  %v1279_v47 = vshll.u32 %v2834_v61, 16  ;;  %v2320_v25 = vld [vmem:[%s3238_s1 + $0xb8] sm:$0xff]   ;;  %v3310_v58 = vshrl.u32 %v2685_v40, 16  ;;  %629 = vmatpush1.bf16.msra.mxu1 %v2319_v0 }
  0x3d   : > { %v1284_v52 = vshrl.u32 %v2811_v31, 16  ;;  %v1291_v23 = vshrl.u32 %v2815_v53, 16  ;;  %v2872_v29 = vcombine.low %v2845_v12, %v2852_v30  ;;  %v1288_v10 = vrot.slane %v1286_v14, 1  ;;  %2184 = vmatprep.subr.bf16.mxu1 %v3299_v35  ;;  %v223_v0 = vld [vmem:[%s2453_s29 + $0x8] sm:$0xe] }
  0x3e   : > { %v337_v33 = vor.u32 %v2759_v4, %v3310_v58  ;;  %v1295_v18 = vrot.slane %v1293_v24, 1  ;;  %v1270_v21 = vshrl.u32 %v2830_v27, 16  ;;  %v1277_v20 = vshrl.u32 %v2834_v61, 16  ;;  %364 = vrot.lane.b32.xlu0 %v330_v55, %s2388_s9  ;;  %1100 = vmatpush1.bf16.msra.mxu0 %v2320_v25 }
  0x3f   : > { %v1274_v40 = vrot.slane %v1272_v9, 1  ;;  %v1281_v57 = vrot.slane %v1279_v47, 1  ;;  %v3311_v4 = vshrl.u32 %v2714_v59, 16  ;;  %v1298_v53 = vshrl.u32 %v2859_v46, 16  ;;  %1558 = vmatprep.subr.bf16.mxu0 %v3299_v35 }
  0x40   : > { %v1300_v58 = vshll.u32 %v2859_v46, 16  ;;  %366 = vrot.lane.b32.xlu1 %v337_v33, %s2388_s9  ;;  %v1254_v27 = vor.u32 %v1253_v16, %v1249_v49  ;;  %v1305_v9 = vshrl.u32 %v2872_v29, 16  ;;  %v1307_v61 = vshll.u32 %v2872_v29, 16  ;;  %v222_v49 = vld [vmem:[%s2453_s29] sm:$0xe] }
  0x41   : > { %v1247_v31 = vor.u32 %v1246_v37, %v3311_v4  ;;  %v3312_v55 = vshrl.u32 %v2740_v3, 16  ;;  %v351_v24 = vor.u32 %v350_v62, %v346_v1  ;;  %v1261_v33 = vor.u32 %v1260_v5, %v1256_v39  ;;  %v1999_v37 = vld [vmem:[%s2453_s29 + $0x8] sm:$0xe]  ;;  %v229_v46 = vld [vmem:[%s2453_s29 + $0x38] sm:$0xe] }
  0x42   : > { %v1268_v16 = vor.u32 %v1267_v26, %v1263_v7  ;;  %v1941_v14 = vcombine.low %v222_v49, %v2471_v11  ;;  %v1942_v3 = vcombine.low %v223_v0, %v2487_v17  ;;  %v2019_v47 = vcombine.low %v1999_v37, %v2462_v8  ;;  %v224_v17 = vld [vmem:[%s2453_s29 + $0x10] sm:$0xe] }
  0x43   : > { %1311 = vrot.lane.b32.xlu0 %v1247_v31, %s2388_s9  ;;  %v344_v59 = vor.u32 %v343_v34, %v3312_v55  ;;  %v2000_v34 = vld [vmem:[%s2453_s29 + $0x10] sm:$0xe]  ;;  %v1289_v1 = vor.u32 %v1288_v10, %v1284_v52  ;;  %v1296_v39 = vor.u32 %v1295_v18, %v1291_v23  ;;  %v1302_v62 = vrot.slane %v1300_v58, 1  ;;  %v225_v31 = vld [vmem:[%s2453_s29 + $0x18] sm:$0xe] }
  0x44   : > { %1313 = vrot.lane.b32.xlu1 %v1254_v27, %s2388_s9  ;;  %v2020_v7 = vcombine.low %v2000_v34, %v2477_v13  ;;  %v402_v5 = vrot.slane %v1941_v14, 1  ;;  %v403_v26 = vrot.slane %v1942_v3, 1  ;;  %v880_v11 = vrot.slane %v2019_v47, 1  ;;  %v2001_v18 = vld [vmem:[%s2453_s29 + $0x18] sm:$0xe] }
  0x45   : > { %v1309_v25 = vrot.slane %v1307_v61, 1  ;;  %v1943_v27 = vcombine.low %v224_v17, %v2532_v50  ;;  %v1944_v52 = vcombine.low %v225_v31, %v2544_v56  ;;  %v2002_v23 = vld [vmem:[%s2453_s29 + $0x20] sm:$0xe]  ;;  %v1275_v13 = vor.u32 %v1274_v40, %v1270_v21  ;;  %v228_v14 = vld [vmem:[%s2453_s29 + $0x30] sm:$0xe] }
  0x46   : > { %v881_v4 = vrot.slane %v2020_v7, 1  ;;  %v1953_v8 = vcombine.low %v402_v5, %v403_v26  ;;  %v2021_v58 = vcombine.low %v2001_v18, %v2496_v22  ;;  %v2022_v61 = vcombine.low %v2002_v23, %v2502_v28  ;;  %v2005_v34 = vld [vmem:[%s2453_s29 + $0x38] sm:$0xe]  ;;  %v2007_v26 = vld [vmem:[%s2453_s29 + $0x48] sm:$0xe] }
  0x47   : > { %368 = vrot.lane.b32.xlu0 %v344_v59, %s2388_s9  ;;  %v1282_v55 = vor.u32 %v1281_v57, %v1277_v20  ;;  %v2914_v50 = vrot.slane %v1943_v27, 1  ;;  %v2916_v56 = vrot.slane %v1944_v52, 1  ;;  %v226_v59 = vld [vmem:[%s2453_s29 + $0x20] sm:$0xe]  ;;  %v2003_v57 = vld [vmem:[%s2453_s29 + $0x28] sm:$0xe]  ;;  %v1303_v0 = vor.u32 %v1302_v62, %v1298_v53 }
  0x48   : > { %370 = vrot.lane.b32.xlu1 %v351_v24, %s2388_s9  ;;  %v2054_v10 = vcombine.low %v880_v11, %v881_v4  ;;  %1974 = vmatprep.mubr.msk.bf16.mxu1 %vm412_vm0, %v1953_v8  ;;  %v227_v24 = vld [vmem:[%s2453_s29 + $0x28] sm:$0xe]  ;;  %v2921_v21 = vrot.slane %v2021_v58, 1  ;;  %v2923_v40 = vrot.slane %v2022_v61, 1  ;;  %v1945_v22 = vcombine.low %v226_v59, %v2598_v32  ;;  %v2004_v20 = vld [vmem:[%s2453_s29 + $0x30] sm:$0xe] }
  0x49   : > { %v1946_v28 = vcombine.low %v227_v24, %v2606_v36  ;;  %v2024_v49 = vcombine.low %v2004_v20, %v2523_v44  ;;  %v1947_v53 = vcombine.low %v228_v14, %v2647_v60  ;;  %v2025_v29 = vcombine.low %v2005_v34, %v2562_v63  ;;  %v231_v4 = vld [vmem:[%s2453_s29 + $0x48] sm:$0xe]  ;;  %v2100_v23 = vld [vmem:[%s2453_s29 + $0x10] sm:$0xe]  ;;  %v3314_v14 = vld [vmem:[#allocation36_spill] sm:$0xff] }
  0x4a   : > { %2075 = vmatprep.mubr.msk.bf16.mxu0 %vm412_vm0, %v2054_v10  ;;  %v2056_v32 = vcombine.low %v2921_v21, %v2923_v40  ;;  %v2938_v36 = vrot.slane %v1945_v22, 1  ;;  %v2027_v11 = vcombine.low %v2007_v26, %v2616_v43  ;;  %v1950_v8 = vcombine.low %v231_v4, %v2720_v48  ;;  %v2101_v48 = vld [vmem:[%s2453_s29 + $0x18] sm:$0xe]  ;;  %v2106_v10 = vld [vmem:[%s2453_s29 + $0x40] sm:$0xe] }
  0x4b   : > { %1315 = vrot.lane.b32.xlu0 %v1261_v33, %s2388_s9  ;;  %v1955_v33 = vcombine.low %v2914_v50, %v2916_v56  ;;  %v2940_v37 = vrot.slane %v1946_v28, 1  ;;  %v2948_v3 = vrot.slane %v2024_v49, 1  ;;  %v2960_v7 = vrot.slane %v1947_v53, 1  ;;  %v2107_v58 = vld [vmem:[%s2453_s29 + $0x48] sm:$0xe]  ;;  %v3323_v56 = vld [vmem:[#allocation10_spill] sm:$0xff] }
  0x4c   : > { %1317 = vrot.lane.b32.xlu1 %v1268_v16, %s2388_s9  ;;  %v2023_v16 = vcombine.low %v2003_v57, %v2516_v38  ;;  %v1310_v38 = vor.u32 %v1309_v25, %v1305_v9  ;;  %v2966_v5 = vrot.slane %v2025_v29, 1  ;;  %v2983_v52 = vrot.slane %v2027_v11, 1  ;;  %v2102_v22 = vld [vmem:[%s2453_s29 + $0x20] sm:$0xe]  ;;  %v2103_v28 = vld [vmem:[%s2453_s29 + $0x28] sm:$0xe] }
  0x4d   : > { %v1957_v47 = vcombine.low %v2938_v36, %v2940_v37  ;;  %v2989_v18 = vrot.slane %v1950_v8, 1  ;;  %v2126_v59 = vcombine.low %v2106_v10, %v2781_v42  ;;  %v2127_v24 = vcombine.low %v2107_v58, %v2792_v6  ;;  %v2108_v57 = vld [vmem:[%s2453_s29 + $0x50] sm:$0xe]  ;;  %v2105_v34 = vld [vmem:[%s2453_s29 + $0x38] sm:$0xe]  ;;  %v3315_v29 = vld [vmem:[#allocation32_spill] sm:$0xff] }
  0x4e   : > { %v2946_v44 = vrot.slane %v2023_v16, 1  ;;  %v2122_v16 = vcombine.low %v2102_v22, %v2730_v41  ;;  %v3317_v10 = vld [vmem:[#allocation5_spill] sm:$0xff]  ;;  %v3319_v22 = vld [vmem:[#allocation6_spill] sm:$0xff]  ;;  %v3325_v40 = vld [vmem:[#allocation12_spill] sm:$0xff] }
  0x4f   : > { %1323 = vrot.lane.b32.xlu0 %v1289_v1, %s2388_s9  ;;  %v1948_v1 = vcombine.low %v229_v46, %v2664_v19  ;;  %v2008_v19 = vld [vmem:[%s2453_s29 + $0x50] sm:$0xe]  ;;  %v3017_v42 = vrot.slane %v2127_v24, 1  ;;  %v3330_v36 = vld [vmem:[#allocation17_spill] sm:$0xff] }
  0x50   : > { %1325 = vrot.lane.b32.xlu1 %v1296_v39, %s2388_s9  ;;  %v2006_v39 = vld [vmem:[%s2453_s29 + $0x40] sm:$0xe]  ;;  %v2058_v9 = vcombine.low %v2946_v44, %v2948_v3  ;;  %v2028_v25 = vcombine.low %v2008_v19, %v2629_v51  ;;  %v2104_v46 = vld [vmem:[%s2453_s29 + $0x30] sm:$0xe] }
  0x51   : > { %v2026_v62 = vcombine.low %v2006_v39, %v2576_v15  ;;  %v2964_v60 = vrot.slane %v1948_v1, 1  ;;  %v230_v15 = vld [vmem:[%s2453_s29 + $0x40] sm:$0xe]  ;;  %v3021_v1 = vrot.slane %v2122_v16, 1 }
  0x52   : > { %v1949_v31 = vcombine.low %v230_v15, %v2707_v2  ;;  %v2985_v43 = vrot.slane %v2028_v25, 1  ;;  %v3316_v25 = vld [vmem:[#allocation34_spill] sm:$0xff]  ;;  %v2325_v16 = vld [vmem:[%s3238_s1 + $0xc0] sm:$0xff]  }
  0x53   : > { %1319 = vrot.lane.b32.xlu0 %v1275_v13, %s2388_s9  ;;  %v2971_v63 = vrot.slane %v2026_v62, 1  ;;  %v1959_v17 = vcombine.low %v2960_v7, %v2964_v60  ;;  %v2120_v13 = vcombine.low %v2100_v23, %v2691_v45  ;;  %v3313_v45 = vld [vmem:[#allocation28_spill] sm:$0xff]  ;;  %v2124_v62 = vcombine.low %v2104_v46, %v3315_v29  ;;  %v2326_v29 = vld [vmem:[%s3238_s1 + $0xc8] sm:$0xff]  }
  0x54   : > { %1321 = vrot.lane.b32.xlu1 %v1282_v55, %s2388_s9  ;;  %v2987_v51 = vrot.slane %v1949_v31, 1  ;;  %v2062_v2 = vcombine.low %v2983_v52, %v2985_v43  ;;  %v2121_v55 = vcombine.low %v2101_v48, %v2701_v54  ;;  %v2123_v49 = vcombine.low %v2103_v28, %v3313_v45  ;;  %v3321_v46 = vld [vmem:[#allocation8_spill] sm:$0xff]  ;;  %v3334_v7 = vld [vmem:[#allocation21_spill] sm:$0xff] }
  0x55   : > { %v2060_v27 = vcombine.low %v2966_v5, %v2971_v63  ;;  %v3006_v20 = vrot.slane %v2120_v13, 1  ;;  %v3015_v54 = vrot.slane %v2126_v59, 1  ;;  %v2125_v15 = vcombine.low %v2105_v34, %v3316_v25  ;;  %v3318_v59 = vld [vmem:[#allocation4_spill] sm:$0xff]  ;;  %v2339_v5 = vld [vmem:[%s3238_s1 + $0xf0] sm:$0xff]  }
  0x56   : > { %v1961_v61 = vcombine.low %v2987_v51, %v2989_v18  ;;  %v3013_v53 = vrot.slane %v2121_v55, 1  ;;  %v3023_v39 = vrot.slane %v2123_v49, 1  ;;  %v3037_v4 = vrot.slane %v2124_v62, 1  ;;  %v3320_v49 = vld [vmem:[#allocation7_spill] sm:$0xff]  ;;  %v3322_v62 = vld [vmem:[#allocation9_spill] sm:$0xff]  ;;  %v2333_v44 = vld [vmem:[%s3238_s1 + $0xe0] sm:$0xff]  }
  0x57   : > { %1327 = vrot.lane.b32.xlu0 %v1303_v0, %s2388_s9  ;;  %v2109_v0 = vld [vmem:[%s2453_s29 + $0x58] sm:$0xe]  ;;  %v2161_v19 = vcombine.low %v3015_v54, %v3017_v42  ;;  %v3041_v8 = vrot.slane %v2125_v15, 1  ;;  %v2345_v52 = vld [vmem:[%s3238_s1 + $0x100] sm:$0xff]   ;;  %v3336_v51 = vld [vmem:[#allocation25_spill] sm:$0xff] }
  0x58   : > { %1329 = vrot.lane.b32.xlu1 %v1310_v38, %s2388_s9  ;;  %v2128_v38 = vcombine.low %v2108_v57, %v3314_v14  ;;  %v2129_v6 = vcombine.low %v2109_v0, %v2852_v30  ;;  %v2155_v26 = vcombine.low %v3006_v20, %v3013_v53  ;;  %v2157_v30 = vcombine.low %v3021_v1, %v3023_v39  ;;  %v3337_v53 = vld [vmem:[#allocation22_spill] sm:$0xff]  ;;  %v3345_v1 = vld [vmem:[#allocation33_spill] sm:$0xff] }
  0x59   : > { %v2159_v23 = vcombine.low %v3037_v4, %v3041_v8  ;;  %v3340_v42 = vld [vmem:[#allocation30_spill] sm:$0xff] }
  0x5a   : > { %v3025_v41 = vrot.slane %v2128_v38, 1  ;;  %v3032_v11 = vrot.slane %v2129_v6, 1 }
  0x5c   : > { %v2163_v31 = vcombine.low %v3025_v41, %v3032_v11  ;;  %v2389_v41 = vmov 0.0  }
  0x5d   : > { %1739 = vst [vmem:[#allocation2 + $0x60] sm:$0x1] %v2389_v41  ;;  %1749 = vst [vmem:[#allocation2 + $0x69] sm:$0x1] %v2389_v41 }
  0x5e   : > { %1723 = vst [vmem:[#allocation2 + $0x1] sm:$0xff] %v2389_v41  ;;  %1733 = vst [vmem:[#allocation2] sm:$0x1] %v2389_v41 }
  0x5f   : > { %1734 = vst [vmem:[#allocation2 + $0x10] sm:$0x1] %v2389_v41  ;;  %1735 = vst [vmem:[#allocation2 + $0x20] sm:$0x1] %v2389_v41 }
  0x60   : > { %1736 = vst [vmem:[#allocation2 + $0x30] sm:$0x1] %v2389_v41  ;;  %1737 = vst [vmem:[#allocation2 + $0x40] sm:$0x1] %v2389_v41 }
  0x61   : > { %1738 = vst [vmem:[#allocation2 + $0x50] sm:$0x1] %v2389_v41  ;;  %1740 = vst [vmem:[#allocation2 + $0x70] sm:$0x1] %v2389_v41 }
  0x62   : > { %1741 = vst [vmem:[#allocation2 + $0x80] sm:$0x1] %v2389_v41  ;;  %1743 = vst [vmem:[#allocation2 + $0x9] sm:$0x1] %v2389_v41 }
  0x63   : > { %1744 = vst [vmem:[#allocation2 + $0x19] sm:$0x1] %v2389_v41  ;;  %1745 = vst [vmem:[#allocation2 + $0x29] sm:$0x1] %v2389_v41 }
  0x64   : > { %1746 = vst [vmem:[#allocation2 + $0x39] sm:$0x1] %v2389_v41  ;;  %1747 = vst [vmem:[#allocation2 + $0x49] sm:$0x1] %v2389_v41 }
  0x65   : > { %1748 = vst [vmem:[#allocation2 + $0x59] sm:$0x1] %v2389_v41  ;;  %1750 = vst [vmem:[#allocation2 + $0x79] sm:$0x1] %v2389_v41 }
  0x66   : > { %1751 = vst [vmem:[#allocation2 + $0x89] sm:$0x1] %v2389_v41 }
  0x90   : > { %v831_v48 = vpop.permute.xlu0 %830 }
  0x91   : > { %v353_v13 = vpop.permute.xlu1 %352  ;;  %v892_v24 = vsel %vm412_vm0, %v3318_v59, %v831_v48  ;;  %v2332_v59 = vld [vmem:[%s3238_s1 + $0xd8] sm:$0xff]  }
  0x92   : > { %v415_v58 = vsel %vm412_vm0, %v3317_v10, %v353_v13  ;;  %v2327_v10 = vld [vmem:[%s3238_s1 + $0xd0] sm:$0xff]  }
  0x94   : > { %v833_v55 = vpop.permute.xlu0 %832 }
  0x95   : > { %v895_v28 = vsel %vm412_vm0, %v3319_v22, %v833_v55  ;;  %v355_v57 = vpop.permute.xlu1 %354 }
  0x96   : > { %v2053_v45 = vcombine.low %v892_v24, %v895_v28  ;;  %v418_v0 = vsel %vm412_vm0, %v3320_v49, %v355_v57  ;;  %v3326_v24 = vld [vmem:[#allocation13_spill] sm:$0xff] }
  0x97   : > { %v1952_v14 = vcombine.low %v415_v58, %v418_v0  ;;  %v3324_v58 = vld [vmem:[#allocation11_spill] sm:$0xff] }
  0x98   : > { %1110 = vmatmul.mubr.bf16.vlgmr.msra.gmra.mrb[0].mxu0 %v2053_v45  ;;  %v835_v38 = vpop.permute.xlu0 %834  ;;  %v3328_v0 = vld [vmem:[#allocation15_spill] sm:$0xff] }
  0x99   : > { %1559 = vmatpush1.bf16.msra.mxu0 %v2325_v16  ;;  %v898_v6 = vsel %vm412_vm0, %v3321_v46, %v835_v38  ;;  %639 = vmatmul.mubr.bf16.vlgmr.msra.gmra.mrb[0].mxu1 %v1952_v14  ;;  %v837_v34 = vpop.permute.xlu1 %836  ;;  %v3329_v38 = vld [vmem:[#allocation16_spill] sm:$0xff] }
  0x9a   : > { %2196 = vmatpush1.bf16.msra.mxu1 %v2325_v16  ;;  %v901_v25 = vsel %vm412_vm0, %v3322_v62, %v837_v34  ;;  %1560 = vmatprep.subr.bf16.mxu0 %v3299_v35  ;;  %v2338_v34 = vld [vmem:[%s3238_s1 + $0xe8] sm:$0xff]  }
  0x9b   : > { %2185 = vmatprep.subr.bf16.mxu1 %v3299_v35  ;;  %1975 = vmatprep.mubr.msk.bf16.mxu1 %vm412_vm0, %v1955_v33  ;;  %v2055_v15 = vcombine.low %v898_v6, %v901_v25 }
  0x9c   : > { %v839_v48 = vpop.permute.xlu0 %838  ;;  %2076 = vmatprep.mubr.msk.bf16.mxu0 %vm412_vm0, %v2056_v32 }
  0x9d   : > { %1561 = vmatpush1.bf16.msra.mxu0 %v2326_v29  ;;  %v841_v13 = vpop.permute.xlu1 %840  ;;  %v904_v33 = vsel %vm412_vm0, %v3323_v56, %v839_v48  ;;  %v3332_v48 = vld [vmem:[#allocation19_spill] sm:$0xff] }
  0x9e   : > { %2197 = vmatpush1.bf16.msra.mxu1 %v2326_v29  ;;  %1562 = vmatprep.subr.bf16.mxu0 %v3299_v35  ;;  %v907_v21 = vsel %vm412_vm0, %v3324_v58, %v841_v13 }
  0x9f   : > { %2186 = vmatprep.subr.bf16.mxu1 %v3299_v35  ;;  %v2057_v57 = vcombine.low %v904_v33, %v907_v21  ;;  %v2344_v33 = vld [vmem:[%s3238_s1 + $0xf8] sm:$0xff]  }
  0xa0   : > { %v357_v50 = vpop.permute.xlu0 %356  ;;  %1118 = vmatmul.mubr.bf16.gmra.mrb[4].mxu0 %v2055_v15 }
  0xa1   : > { %1563 = vmatpush1.bf16.msra.mxu0 %v2327_v10  ;;  %v421_v32 = vsel %vm412_vm0, %v3325_v40, %v357_v50  ;;  %v359_v55 = vpop.permute.xlu1 %358  ;;  %2077 = vmatprep.mubr.msk.bf16.mxu0 %vm412_vm0, %v2058_v9  ;;  %v3327_v9 = vld [vmem:[#allocation14_spill] sm:$0xff] }
  0xa2   : > { %2198 = vmatpush1.bf16.msra.mxu1 %v2327_v10  ;;  %v424_v22 = vsel %vm412_vm0, %v3326_v24, %v359_v55  ;;  %1564 = vmatprep.subr.bf16.mxu0 %v3299_v35  ;;  %v3333_v10 = vld [vmem:[#allocation20_spill] sm:$0xff] }
  0xa3   : > { %v1954_v28 = vcombine.low %v421_v32, %v424_v22  ;;  %2187 = vmatprep.subr.bf16.mxu1 %v3299_v35 }
  0xa4   : > { %v843_v16 = vpop.permute.xlu0 %842 }
  0xa5   : > { %1565 = vmatpush1.bf16.msra.mxu0 %v2332_v59  ;;  %647 = vmatmul.mubr.bf16.gmra.mrb[4].mxu1 %v1954_v28  ;;  %v845_v45 = vpop.permute.xlu1 %844  ;;  %v910_v49 = vsel %vm412_vm0, %v3327_v9, %v843_v16  ;;  %v2351_v28 = vld [vmem:[%s3238_s1 + $0x110] sm:$0xff]  }
  0xa6   : > { %2199 = vmatpush1.bf16.msra.mxu1 %v2332_v59  ;;  %1566 = vmatprep.subr.bf16.mxu0 %v3299_v35  ;;  %v913_v14 = vsel %vm412_vm0, %v3328_v0, %v845_v45  ;;  %v2350_v59 = vld [vmem:[%s3238_s1 + $0x108] sm:$0xff]  }
  0xa7   : > { %2188 = vmatprep.subr.bf16.mxu1 %v3299_v35  ;;  %1976 = vmatprep.mubr.msk.bf16.mxu1 %vm412_vm0, %v1957_v47  ;;  %v2059_v29 = vcombine.low %v910_v49, %v913_v14 }
  0xa8   : > { %v361_v3 = vpop.permute.xlu0 %360  ;;  %1126 = vmatmul.mubr.bf16.gmra.mrb[8].mxu0 %v2057_v57  ;;  %v3338_v57 = vld [vmem:[#allocation23_spill] sm:$0xff] }
  0xa9   : > { %1567 = vmatpush1.bf16.msra.mxu0 %v2333_v44  ;;  %v427_v46 = vsel %vm412_vm0, %v3329_v38, %v361_v3  ;;  %v363_v6 = vpop.permute.xlu1 %362  ;;  %2078 = vmatprep.mubr.msk.bf16.mxu0 %vm412_vm0, %v2060_v27  ;;  %v3331_v27 = vld [vmem:[#allocation18_spill] sm:$0xff]  ;;  %v3339_v3 = vld [vmem:[#allocation29_spill] sm:$0xff] }
  0xaa   : > { %2200 = vmatpush1.bf16.msra.mxu1 %v2333_v44  ;;  %v430_v37 = vsel %vm412_vm0, %v3330_v36, %v363_v6  ;;  %1568 = vmatprep.subr.bf16.mxu0 %v3299_v35  ;;  %v2352_v44 = vld [vmem:[%s3238_s1 + $0x118] sm:$0xff]  }
  0xab   : > { %v1956_v47 = vcombine.low %v427_v46, %v430_v37  ;;  %2189 = vmatprep.subr.bf16.mxu1 %v3299_v35  ;;  %v3341_v46 = vld [vmem:[#allocation26_spill] sm:$0xff] }
  0xac   : > { %v847_v62 = vpop.permute.xlu0 %846 }
  0xad   : > { %1569 = vmatpush1.bf16.msra.mxu0 %v2338_v34  ;;  %655 = vmatmul.mubr.bf16.gmra.mrb[8].mxu1 %v1956_v47  ;;  %v849_v25 = vpop.permute.xlu1 %848  ;;  %v916_v15 = vsel %vm412_vm0, %v3331_v27, %v847_v62 }
  0xae   : > { %2201 = vmatpush1.bf16.msra.mxu1 %v2338_v34  ;;  %1570 = vmatprep.subr.bf16.mxu0 %v3299_v35  ;;  %v919_v13 = vsel %vm412_vm0, %v3332_v48, %v849_v25  ;;  %v3342_v34 = vld [vmem:[#allocation27_spill] sm:$0xff] }
  0xaf   : > { %2190 = vmatprep.subr.bf16.mxu1 %v3299_v35  ;;  %1977 = vmatprep.mubr.msk.bf16.mxu1 %vm412_vm0, %v1959_v17  ;;  %v2061_v58 = vcombine.low %v916_v15, %v919_v13 }
  0xb0   : > { %v365_v63 = vpop.permute.xlu0 %364  ;;  %1134 = vmatmul.mubr.bf16.gmra.mrb[12].mxu0 %v2059_v29 }
  0xb1   : > { %1571 = vmatpush1.bf16.msra.mxu0 %v2339_v5  ;;  %v433_v50 = vsel %vm412_vm0, %v3333_v10, %v365_v63  ;;  %2079 = vmatprep.mubr.msk.bf16.mxu0 %vm412_vm0, %v2062_v2  ;;  %v3335_v2 = vld [vmem:[#allocation24_spill] sm:$0xff] }
  0xb2   : > { %v367_v56 = vpop.permute.xlu1 %366  ;;  %2202 = vmatpush1.bf16.msra.mxu1 %v2339_v5  ;;  %1572 = vmatprep.subr.bf16.mxu0 %v3299_v35  ;;  %v3344_v5 = vld [vmem:[#allocation31_spill] sm:$0xff] }
  0xb3   : > { %v436_v60 = vsel %vm412_vm0, %v3334_v7, %v367_v56  ;;  %2191 = vmatprep.subr.bf16.mxu1 %v3299_v35 }
  0xb4   : > { %v1958_v17 = vcombine.low %v433_v50, %v436_v60 }
  0xb5   : > { %v1312_v21 = vpop.permute.xlu0 %1311  ;;  %1573 = vmatpush1.bf16.msra.mxu0 %v2344_v33 }
  0xb6   : > { %663 = vmatmul.mubr.bf16.gmra.mrb[12].mxu1 %v1958_v17  ;;  %v1314_v40 = vpop.permute.xlu1 %1313  ;;  %1574 = vmatprep.subr.bf16.mxu0 %v3299_v35  ;;  %v1951_v17 = vld [vmem:[%s3239_s2] ss:$0 sm:$0xff] }
  0xb7   : > { %2203 = vmatpush1.bf16.msra.mxu1 %v2344_v33  ;;  %1978 = vmatprep.mubr.msk.bf16.mxu1 %vm412_vm0, %v1961_v61  ;;  %v1376_v16 = vsel %vm412_vm0, %v3338_v57, %v1314_v40 }
  0xb8   : > { %2192 = vmatprep.subr.bf16.mxu1 %v3299_v35  ;;  %1142 = vmatmul.mubr.bf16.gmra.mrb[16].mxu0 %v2061_v58 }
  0xb9   : > { %v369_v43 = vpop.permute.xlu0 %368  ;;  %1575 = vmatpush1.bf16.msra.mxu0 %v2345_v52  ;;  %2176 = vmatprep.mubr.msk.bf16.mxu0 %vm412_vm0, %v2155_v26  ;;  %v1373_v26 = vsel %vm412_vm0, %v3337_v53, %v1312_v21 }
  0xba   : > { %v439_v32 = vsel %vm412_vm0, %v3335_v2, %v369_v43  ;;  %v371_v55 = vpop.permute.xlu1 %370  ;;  %1576 = vmatprep.subr.bf16.mxu0 %v3299_v35  ;;  %v2154_v9 = vcombine.low %v1373_v26, %v1376_v16 }
  0xbb   : > { %2204 = vmatpush1.bf16.msra.mxu1 %v2345_v52  ;;  %v442_v18 = vsel %vm412_vm0, %v3336_v51, %v371_v55 }
  0xbc   : > { %v1960_v61 = vcombine.low %v439_v32, %v442_v18  ;;  %2193 = vmatprep.subr.bf16.mxu1 %v3299_v35 }
  0xbd   : > { %v1316_v24 = vpop.permute.xlu0 %1315  ;;  %1577 = vmatpush1.bf16.msra.mxu0 %v2350_v59 }
  0xbe   : > { %671 = vmatmul.mubr.bf16.gmra.mrb[16].mxu1 %v1960_v61  ;;  %v1318_v22 = vpop.permute.xlu1 %1317  ;;  %1578 = vmatprep.subr.bf16.mxu0 %v3299_v35  ;;  %v1379_v6 = vsel %vm412_vm0, %v3341_v46, %v1316_v24 }
  0xbf   : > { %2205 = vmatpush1.bf16.msra.mxu1 %v2350_v59  ;;  %2179 = vmatprep.mubr.msk.bf16.mxu1 %vm412_vm0, %v2161_v19  ;;  %v1382_v36 = vsel %vm412_vm0, %v3342_v34, %v1318_v22 }
  0xc0   : > { %2194 = vmatprep.subr.bf16.mxu1 %v3299_v35  ;;  %v2156_v62 = vcombine.low %v1379_v6, %v1382_v36 }
  0xc1   : > { %v1324_v20 = vpop.permute.xlu0 %1323  ;;  %1579 = vmatpush1.bf16.msra.mxu0 %v2351_v28 }
  0xc2   : > { %v1326_v45 = vpop.permute.xlu1 %1325  ;;  %1580 = vmatprep.subr.bf16.mxu0 %v3299_v35  ;;  %v1391_v54 = vsel %vm412_vm0, %v3339_v3, %v1324_v20 }
  0xc3   : > { %2206 = vmatpush1.bf16.msra.mxu1 %v2351_v28  ;;  %v1394_v19 = vsel %vm412_vm0, %v3340_v42, %v1326_v45 }
  0xc4   : > { %2195 = vmatprep.subr.bf16.mxu1 %v3299_v35  ;;  %v2160_v0 = vcombine.low %v1391_v54, %v1394_v19  ;;  %v3343_v35 = vld [vmem:[#allocation35_spill] sm:$0xff] }
  0xc5   : > { %v1320_v49 = vpop.permute.xlu0 %1319  ;;  %1581 = vmatpush1.bf16.msra.mxu0 %v2352_v44 }
  0xc6   : > { %v1322_v14 = vpop.permute.xlu1 %1321  ;;  %v1385_v63 = vsel %vm412_vm0, %v3344_v5, %v1320_v49 }
  0xc7   : > { %2207 = vmatpush1.bf16.msra.mxu1 %v2352_v44  ;;  %v1388_v39 = vsel %vm412_vm0, %v3345_v1, %v1322_v14 }
  0xc8   : > { %1591 = vmatmul.mubr.bf16.vlgmr.msra.gmra.mrb[0].mxu0 %v2154_v9 }
  0xc9   : > { %v1328_v38 = vpop.permute.xlu0 %1327  ;;  %2177 = vmatprep.mubr.msk.bf16.mxu0 %vm412_vm0, %v2157_v30 }
  0xca   : > { %1615 = vmatmul.mubr.bf16.vlgmr.msra.gmra.mrb[20].mxu1 %v2160_v0  ;;  %v1330_v37 = vpop.permute.xlu1 %1329  ;;  %v1397_v47 = vsel %vm412_vm0, %v3343_v35, %v1328_v38 }
  0xcb   : > { %v1400_v29 = vsel %vm412_vm0, %v2845_v12, %v1330_v37  ;;  %2180 = vmatprep.mubr.msk.bf16.mxu1 %vm412_vm0, %v2163_v31  ;;  %v2158_v12 = vcombine.low %v1385_v63, %v1388_v39 }
  0xcc   : > { %v2162_v25 = vcombine.low %v1397_v47, %v1400_v29 }
  0xd0   : > { %1599 = vmatmul.mubr.bf16.gmra.mrb[4].mxu0 %v2156_v62 }
  0xd1   : > { %2178 = vmatprep.mubr.msk.bf16.mxu0 %vm412_vm0, %v2159_v23 }
  0xd2   : > { %1623 = vmatmul.mubr.bf16.gmra.mrb[24].mxu1 %v2162_v25 }
  0xd8   : > { %1607 = vmatmul.mubr.bf16.gmra.mrb[8].mxu0 %v2158_v12 }
 0x16c   : > { %v640_v11 = vpop.f32.mrb[0].mxu1 }
 0x16d   : > { %v642_v30 = vpop.f32.mrb[1].mxu1 }
 0x16e   : > { %v643_v4 = vpop.f32.mrb[2].mxu1 }
 0x16f   : > { %v645_v31 = vpop.f32.mrb[3].mxu1  ;;  %v644_v16 = vadd.f32 %v1951_v17, %v643_v4 }
 0x170   : > { %v1753_v31 = vld [vmem:[#allocation2] sm:$0xff] }
 0x178   : > { %v648_v8 = vpop.f32.mrb[4].mxu1 }
 0x179   : > { %v650_v23 = vpop.f32.mrb[5].mxu1  ;;  %v649_v34 = vadd.f32 %v1951_v17, %v648_v8  ;;  %v1754_v8 = vld [vmem:[#allocation2 + $0x8] sm:$0x3] }
 0x17a   : > { %v651_v27 = vpop.f32.mrb[6].mxu1 }
 0x17b   : > { %v653_v15 = vpop.f32.mrb[7].mxu1  ;;  %v652_v37 = vadd.f32 %v1951_v17, %v651_v27 }
 0x180   : > { %v3215_v48 = vpop.f32.mrb[8].mxu1 }
 0x181   : > { %v658_v13 = vpop.f32.mrb[9].mxu1  ;;  %v657_v4 = vadd.f32 %v1951_v17, %v3215_v48 }
 0x182   : > { %v3217_v10 = vpop.f32.mrb[10].mxu1 }
 0x183   : > { %v661_v50 = vpop.f32.mrb[11].mxu1  ;;  %v1135_v56 = vpop.f32.mrb[12].mxu0  ;;  %v660_v13 = vadd.f32 %v1951_v17, %v3217_v10 }
 0x184   : > { %v1137_v33 = vpop.f32.mrb[13].mxu0 }
 0x185   : > { %v1138_v7 = vpop.f32.mrb[14].mxu0 }
 0x186   : > { %v1140_v60 = vpop.f32.mrb[15].mxu0 }
 0x189   : > { %v664_v58 = vpop.f32.mrb[12].mxu1 }
 0x18a   : > { %v665_v21 = vadd.f32 %v1951_v17, %v664_v58  ;;  %v666_v40 = vpop.f32.mrb[13].mxu1 }
 0x18b   : > { %v667_v52 = vpop.f32.mrb[14].mxu1  ;;  %v1143_v55 = vpop.f32.mrb[16].mxu0 }
 0x18c   : > { %v1156_v43 = vadd.f32 %v1135_v56, %v665_v21  ;;  %v668_v2 = vadd.f32 %v1951_v17, %v667_v52  ;;  %v669_v32 = vpop.f32.mrb[15].mxu1  ;;  %v1145_v59 = vpop.f32.mrb[17].mxu0 }
 0x18d   : > { %v1146_v18 = vpop.f32.mrb[18].mxu0 }
 0x18e   : > { %v1157_v51 = vadd.f32 %v1138_v7, %v668_v2  ;;  %v1148_v61 = vpop.f32.mrb[19].mxu0 }
 0x191   : > { %v672_v24 = vpop.f32.mrb[16].mxu1 }
 0x192   : > { %v673_v22 = vadd.f32 %v1951_v17, %v672_v24  ;;  %v674_v28 = vpop.f32.mrb[17].mxu1 }
 0x193   : > { %v675_v20 = vpop.f32.mrb[18].mxu1 }
 0x194   : > { %v677_v53 = vpop.f32.mrb[19].mxu1  ;;  %v1158_v26 = vadd.f32 %v1143_v55, %v673_v22 }
 0x19b   : > { %v1592_v57 = vpop.f32.mrb[0].mxu0 }
 0x19c   : > { %v1594_v44 = vpop.f32.mrb[1].mxu0 }
 0x19d   : > { %v1616_v45 = vpop.f32.mrb[20].mxu1  ;;  %v1595_v42 = vpop.f32.mrb[2].mxu0 }
 0x19e   : > { %v1637_v3 = vadd.f32 %v1616_v45, %v1156_v43  ;;  %v1618_v54 = vpop.f32.mrb[21].mxu1  ;;  %v2209_v19 = vadd.f32 %v1595_v42, %v644_v16  ;;  %v1597_v49 = vpop.f32.mrb[3].mxu0 }
 0x19f   : > { %v1619_v9 = vpop.f32.mrb[22].mxu1 }
 0x1a0   : > { %v1647_v0 = vmax.f32 %v1637_v3, 0.0  ;;  %v1638_v14 = vadd.f32 %v1619_v9, %v1157_v51  ;;  %v1621_v38 = vpop.f32.mrb[23].mxu1  ;;  %v1642_v46 = vmax.f32 %v2209_v19, 0.0 }
 0x1a2   : > { %1729 = vst [vmem:[#allocation2 + $0x61] sm:$0xff] %v1647_v0  ;;  %v1648_v6 = vmax.f32 %v1638_v14, 0.0  ;;  %1724 = vst [vmem:[#allocation2 + $0x11] sm:$0xff] %v1642_v46 }
 0x1a3   : > { %v1600_v36 = vpop.f32.mrb[4].mxu0 }
 0x1a4   : > { %1730 = vst [vmem:[#allocation2 + $0x71] sm:$0xff] %v1648_v6  ;;  %v2211_v35 = vadd.f32 %v1600_v36, %v649_v34  ;;  %v1602_v29 = vpop.f32.mrb[5].mxu0 }
 0x1a5   : > { %v1624_v47 = vpop.f32.mrb[24].mxu1  ;;  %v1603_v25 = vpop.f32.mrb[6].mxu0 }
 0x1a6   : > { %v1639_v62 = vadd.f32 %v1624_v47, %v1158_v26  ;;  %v1626_v5 = vpop.f32.mrb[25].mxu1  ;;  %v1643_v63 = vmax.f32 %v2211_v35, 0.0  ;;  %v2213_v1 = vadd.f32 %v1603_v25, %v652_v37  ;;  %v1605_v39 = vpop.f32.mrb[7].mxu0 }
 0x1a7   : > { %v1627_v12 = vpop.f32.mrb[26].mxu1 }
 0x1a8   : > { %v1649_v41 = vmax.f32 %v1639_v62, 0.0  ;;  %v1629_v11 = vpop.f32.mrb[27].mxu1  ;;  %1725 = vst [vmem:[#allocation2 + $0x21] sm:$0xff] %v1643_v63  ;;  %v1644_v30 = vmax.f32 %v2213_v1, 0.0 }
 0x1a9   : > { %v1762_v23 = vld [vmem:[#allocation2 + $0x10] sm:$0xff]  ;;  %v1763_v27 = vld [vmem:[#allocation2 + $0x18] sm:$0x3]  ;;  %v1759_v58 = vld [vmem:[#allocation2 + $0x60] sm:$0xff] }
 0x1aa   : > { %1731 = vst [vmem:[#allocation2 + $0x81] sm:$0xff] %v1649_v41  ;;  %1726 = vst [vmem:[#allocation2 + $0x31] sm:$0xff] %v1644_v30  ;;  %v1760_v21 = vld [vmem:[#allocation2 + $0x68] sm:$0x3]  ;;  %v1770_v40 = vmax.f32 %v1753_v31, %v1762_v23  ;;  %v1771_v52 = vmax.f32 %v1754_v8, %v1763_v27 }
 0x1ab   : > { %v1608_v15 = vpop.f32.mrb[8].mxu0  ;;  %v1768_v50 = vld [vmem:[#allocation2 + $0x70] sm:$0xff]  ;;  %v1769_v56 = vld [vmem:[#allocation2 + $0x78] sm:$0x3]  ;;  %v1784_v29 = vld [vmem:[#allocation2 + $0x68] sm:$0x3] }
 0x1ac   : > { %v2215_v33 = vadd.f32 %v1608_v15, %v657_v4  ;;  %v1610_v7 = vpop.f32.mrb[9].mxu0  ;;  %v1776_v32 = vmax.f32 %v1759_v58, %v1768_v50  ;;  %v1777_v55 = vmax.f32 %v1760_v21, %v1769_v56 }
 0x1ad   : > { %v1611_v60 = vpop.f32.mrb[10].mxu0 }
 0x1ae   : > { %v1645_v43 = vmax.f32 %v2215_v33, 0.0  ;;  %v2217_v2 = vadd.f32 %v1611_v60, %v660_v13  ;;  %v1613_v48 = vpop.f32.mrb[11].mxu0 }
 0x1af   : > { %v1755_v59 = vld [vmem:[#allocation2 + $0x20] sm:$0xff]  ;;  %v1780_v51 = vld [vmem:[#allocation2 + $0x28] sm:$0x3] }
 0x1b0   : > { %v1787_v18 = vmax.f32 %v1770_v40, %v1755_v59  ;;  %v1788_v61 = vmax.f32 %v1771_v52, %v1780_v51  ;;  %1727 = vst [vmem:[#allocation2 + $0x41] sm:$0xff] %v1645_v43  ;;  %v1646_v17 = vmax.f32 %v2217_v2, 0.0  ;;  %v1756_v26 = vld [vmem:[#allocation2 + $0x28] sm:$0x3] }
 0x1b1   : > { %v1785_v24 = vld [vmem:[#allocation2 + $0x80] sm:$0xff]  ;;  %v1786_v10 = vld [vmem:[#allocation2 + $0x88] sm:$0x3]  ;;  %v1764_v20 = vld [vmem:[#allocation2 + $0x30] sm:$0xff] }
 0x1b2   : > { %v1793_v22 = vmax.f32 %v1776_v32, %v1785_v24  ;;  %v1794_v28 = vmax.f32 %v1777_v55, %v1786_v10  ;;  %1795 = vst [vmem:[#allocation3] sm:$0xff] %v1787_v18  ;;  %1796 = vst [vmem:[#allocation3 + $0x8] sm:$0x3] %v1788_v61  ;;  %v1765_v53 = vld [vmem:[#allocation2 + $0x38] sm:$0x3]  ;;  %v1772_v57 = vmax.f32 %v1755_v59, %v1764_v20 }
 0x1b3   : > { %1728 = vst [vmem:[#allocation2 + $0x51] sm:$0xff] %v1646_v17  ;;  %v1773_v16 = vmax.f32 %v1756_v26, %v1765_v53 }
 0x1b4   : > { %1801 = vst [vmem:[#allocation3 + $0x30] sm:$0xff] %v1793_v22  ;;  %1802 = vst [vmem:[#allocation3 + $0x38] sm:$0x3] %v1794_v28 }
 0x1b7   : > { %v1757_v45 = vld [vmem:[#allocation2 + $0x40] sm:$0xff]  ;;  %v1782_v44 = vld [vmem:[#allocation2 + $0x48] sm:$0x3] }
 0x1b8   : > { %v1789_v3 = vmax.f32 %v1772_v57, %v1757_v45  ;;  %v1790_v54 = vmax.f32 %v1773_v16, %v1782_v44  ;;  %v1758_v6 = vld [vmem:[#allocation2 + $0x48] sm:$0x3] }
 0x1b9   : > { %v1803_v42 = vld [vmem:[#allocation3] ss:$2 sm:$0xf]  ;;  %v1811_v19 = vld [vmem:[#allocation3 + $0x1] ss:$2 sm:$0xf] }
 0x1ba   : > { %v1818_v9 = vmax.f32 %v1803_v42, %v1811_v19  ;;  %1797 = vst [vmem:[#allocation3 + $0x10] sm:$0xff] %v1789_v3  ;;  %1798 = vst [vmem:[#allocation3 + $0x18] sm:$0x3] %v1790_v54  ;;  %v1823_v0 = vld [vmem:[#allocation3 + $0x2] ss:$2 sm:$0xf] }
 0x1bb   : > { %v1809_v49 = vld [vmem:[#allocation3 + $0x30] ss:$2 sm:$0xf]  ;;  %v1817_v14 = vld [vmem:[#allocation3 + $0x31] ss:$2 sm:$0xf] }
 0x1bc   : > { %v1830_v38 = vmax.f32 %v1818_v9, %v1823_v0  ;;  %v1821_v46 = vmax.f32 %v1809_v49, %v1817_v14  ;;  %v1766_v34 = vld [vmem:[#allocation2 + $0x50] sm:$0xff]  ;;  %v1767_v36 = vld [vmem:[#allocation2 + $0x58] sm:$0x3] }
 0x1bd   : > { %v1829_v37 = vld [vmem:[#allocation3 + $0x32] ss:$2 sm:$0xf]  ;;  %v1774_v35 = vmax.f32 %v1757_v45, %v1766_v34  ;;  %v1775_v47 = vmax.f32 %v1758_v6, %v1767_v36 }
 0x1be   : > { %v1834_v62 = vpack.c.bf16 %v1830_v38, %v1830_v38  ;;  %v1833_v25 = vmax.f32 %v1821_v46, %v1829_v37 }
 0x1bf   : > { %v1791_v5 = vmax.f32 %v1774_v35, %v1759_v58  ;;  %v1792_v63 = vmax.f32 %v1775_v47, %v1784_v29 }
 0x1c0   : > { %1838 = vst [vmem:[%s199_s30] sm:$0x3] %v1834_v62  ;;  %v1837_v1 = vpack.c.bf16 %v1833_v25, %v1833_v25 }
 0x1c1   : > { %v1805_v39 = vld [vmem:[#allocation3 + $0x10] ss:$2 sm:$0xf]  ;;  %v1813_v12 = vld [vmem:[#allocation3 + $0x11] ss:$2 sm:$0xf] }
 0x1c2   : > { %1799 = vst [vmem:[#allocation3 + $0x20] sm:$0xff] %v1791_v5  ;;  %1800 = vst [vmem:[#allocation3 + $0x28] sm:$0x3] %v1792_v63  ;;  %v1819_v41 = vmax.f32 %v1805_v39, %v1813_v12  ;;  %v1825_v11 = vld [vmem:[#allocation3 + $0x12] ss:$2 sm:$0xf] }
 0x1c3   : > { %1841 = vst [vmem:[%s199_s30 + $0x6] sm:$0x3] %v1837_v1 }
 0x1c4   : > { %v1831_v30 = vmax.f32 %v1819_v41, %v1825_v11 }
 0x1c6   : > { %v1835_v4 = vpack.c.bf16 %v1831_v30, %v1831_v30 }
 0x1c8   : > { %1839 = vst [vmem:[%s199_s30 + $0x2] sm:$0x3] %v1835_v4 }
 0x1c9   : > { %v1807_v31 = vld [vmem:[#allocation3 + $0x20] ss:$2 sm:$0xf]  ;;  %v1815_v8 = vld [vmem:[#allocation3 + $0x21] ss:$2 sm:$0xf] }
 0x1ca   : > { %v1820_v23 = vmax.f32 %v1807_v31, %v1815_v8  ;;  %v1827_v27 = vld [vmem:[#allocation3 + $0x22] ss:$2 sm:$0xf] }
 0x1cc   : > { %v1832_v15 = vmax.f32 %v1820_v23, %v1827_v27 }
 0x1ce   : > { %v1836_v13 = vpack.c.bf16 %v1832_v15, %v1832_v15 }
 0x1d0   : > { %1840 = vst [vmem:[%s199_s30 + $0x4] sm:$0x3] %v1836_v13 }
 0x1d1 PF: > { %s13_s14 = sadd.s32 1, %s2385_s14   ;;  %s3346_s12 = smov %s2381_s13 }
 0x1d2   : > { %p10_p5 = scmp.ge.s32.totalorder %s13_s14, 4   ;;  %s3347_s13 = smov %s3349_s15 }
 0x1d4   :  { %12 = sbr.rel (!%p10_p5) target bundleno = 2 (0x2), region = 79 }

</bundles_post_ra>
